<compile_context>
chip_gen: v7x
topology: tpu7x:2x2x1
jax: 0.10.0
libtpu: 0.0.40
codegen_flags: <defaults>
</compile_context>

<pallas_src>
import functools

import jax
import jax.numpy as jnp
from jax.experimental import pallas as pl
from jax.experimental.pallas import tpu as pltpu

_LANES = 128
_BN_EPS = 1e-5
_VMEM_LIMIT = 32 * 1024 * 1024  # safe on v5e/v6e (128 MiB phys) and v7x (64 MiB)


def _ceil_to(x, m):
    return ((x + m - 1) // m) * m


def _pad_last(a, target):
    pad = target - a.shape[-1]
    if pad == 0:
        return a
    return jnp.pad(a, [(0, 0)] * (a.ndim - 1) + [(0, pad)])


# ---------------------------------------------------------------------------
# Kernel 1: [optional fused BN+ReLU pre-norm] -> fused 1px zero-pad ->
#           3x3 conv as ONE im2col matmul [+ bias] + per-image BN partial stats
# ---------------------------------------------------------------------------
def _conv_stage_kernel(x_ref, w_ref, b_ref, sc_ref, sh_ref,
                       o_ref, sum_ref, ssq_ref, xpad_ref,
                       *, H, W, do_bias, pre_norm):
    """Blocks (one image per grid step):
      x_ref   : [1, H, W, Cin_p]   bf16
      w_ref   : [9*Cin_p, Cout_p]  bf16  (taps row-major (dy, dx), channel-minor)
      b_ref   : [1, Cout_p]        f32
      sc_ref  : [1, Cin_p]         f32   (BN scale of the previous stage)
      sh_ref  : [1, Cin_p]         f32   (BN shift of the previous stage)
      o_ref   : [1, H, W, Cout_p]
      sum_ref : [1, 1, Cout_p]     f32   per-image channel sums of conv output
      ssq_ref : [1, 1, Cout_p]     f32   per-image channel sum-of-squares
      xpad_ref: [H+2, W+2, Cin_p]  bf16  VMEM scratch (fused zero pad)
    """
    cin_p = x_ref.shape[-1]
    cout_p = o_ref.shape[-1]

    x = x_ref[0]                                     # [H, W, Cin_p] bf16
    if pre_norm:                                     # fused BN + ReLU of previous stage
        xf = x.astype(jnp.float32)
        xf = jnp.maximum(xf * sc_ref[...] + sh_ref[...], 0.0)
        x = xf.astype(jnp.bfloat16)

    # Fused padding (stand-in for padding.get_padding: 1-pixel zero halo).
    xpad_ref[...] = jnp.zeros_like(xpad_ref)
    xpad_ref[1:H + 1, 1:W + 1, :] = x
    xpad = xpad_ref[...]

    # im2col: one [H*W, 9*Cin_p] operand -> single MXU matmul (K = 9*Cin_p).
    cols = [xpad[dy:dy + H, dx:dx + W, :] for dy in range(3) for dx in range(3)]
    im2col = jnp.concatenate(cols, axis=-1).reshape(H * W, 9 * cin_p)

    acc = jnp.dot(im2col, w_ref[...], preferred_element_type=jnp.float32)
    if do_bias:
        acc = acc + b_ref[...]

    # One-pass BN batch statistics (per image; reduced over N in the wrapper).
    sum_ref[0] = jnp.sum(acc, axis=0, keepdims=True)
    ssq_ref[0] = jnp.sum(acc * acc, axis=0, keepdims=True)

    o_ref[0] = acc.reshape(H, W, cout_p).astype(o_ref.dtype)


# ---------------------------------------------------------------------------
# Kernel 2: apply BatchNorm (precomputed global scale/shift) + ReLU
# ---------------------------------------------------------------------------
def _bn_relu_kernel(y_ref, sc_ref, sh_ref, o_ref):
    y = y_ref[...].astype(jnp.float32)               # [1, H, W, Cp]
    o_ref[...] = jnp.maximum(y * sc_ref[...] + sh_ref[...], 0.0).astype(o_ref.dtype)


# ---------------------------------------------------------------------------
# Stage wrappers
# ---------------------------------------------------------------------------
def _conv_stage(x, w2d, bias, in_scale, in_shift, *, do_bias, pre_norm, out_dtype):
    N, H, W, cin_p = x.shape
    cout_p = w2d.shape[-1]
    kernel = functools.partial(_conv_stage_kernel, H=H, W=W,
                               do_bias=do_bias, pre_norm=pre_norm)
    return pl.pallas_call(
        kernel,
        grid=(N,),
        in_specs=[
            pl.BlockSpec((1, H, W, cin_p), lambda n: (n, 0, 0, 0)),
            pl.BlockSpec((9 * cin_p, cout_p), lambda n: (0, 0)),
            pl.BlockSpec((1, cout_p), lambda n: (0, 0)),
            pl.BlockSpec((1, cin_p), lambda n: (0, 0)),
            pl.BlockSpec((1, cin_p), lambda n: (0, 0)),
        ],
        out_specs=(
            pl.BlockSpec((1, H, W, cout_p), lambda n: (n, 0, 0, 0)),
            pl.BlockSpec((1, 1, cout_p), lambda n: (n, 0, 0)),
            pl.BlockSpec((1, 1, cout_p), lambda n: (n, 0, 0)),
        ),
        out_shape=(
            jax.ShapeDtypeStruct((N, H, W, cout_p), out_dtype),
            jax.ShapeDtypeStruct((N, 1, cout_p), jnp.float32),
            jax.ShapeDtypeStruct((N, 1, cout_p), jnp.float32),
        ),
        scratch_shapes=[pltpu.VMEM((H + 2, W + 2, cin_p), jnp.bfloat16)],
        compiler_params=pltpu.CompilerParams(
            dimension_semantics=("parallel",),
            vmem_limit_bytes=_VMEM_LIMIT),
    )(x, w2d, bias, in_scale, in_shift)


def _bn_relu_stage(y, scale, shift, *, out_dtype):
    N, H, W, cp = y.shape
    return pl.pallas_call(
        _bn_relu_kernel,
        grid=(N,),
        in_specs=[
            pl.BlockSpec((1, H, W, cp), lambda n: (n, 0, 0, 0)),
            pl.BlockSpec((1, cp), lambda n: (0, 0)),
            pl.BlockSpec((1, cp), lambda n: (0, 0)),
        ],
        out_specs=pl.BlockSpec((1, H, W, cp), lambda n: (n, 0, 0, 0)),
        out_shape=jax.ShapeDtypeStruct((N, H, W, cp), out_dtype),
        compiler_params=pltpu.CompilerParams(
            dimension_semantics=("parallel",),
            vmem_limit_bytes=_VMEM_LIMIT),
    )(y, scale, shift)


def _bn_scale_shift(psum, pssq, gamma_p, beta_p, count):
    """Finalize training-mode BatchNorm2d batch stats from per-image partials."""
    mean = jnp.sum(psum, axis=0) / count                              # [1, Cp]
    var = jnp.maximum(jnp.sum(pssq, axis=0) / count - mean * mean, 0.0)
    scale = gamma_p * jax.lax.rsqrt(var + _BN_EPS)
    shift = beta_p - mean * scale
    return scale, shift


# ---------------------------------------------------------------------------
# Parameters & forward
# ---------------------------------------------------------------------------
def init_resblock_dec_params(key, in_channels, hidden_channels, out_channels,
                             final=False):
    k1, k2, k3 = jax.random.split(key, 3)
    return {
        "w1": 0.1 * jax.random.normal(k1, (9, in_channels, hidden_channels),
                                      jnp.float32),                       # conv1: no bias
        "g1": jnp.ones((1, hidden_channels), jnp.float32),
        "beta1": jnp.zeros((1, hidden_channels), jnp.float32),
        "w2": 0.1 * jax.random.normal(k2, (9, hidden_channels, out_channels),
                                      jnp.float32),
        "b2": (0.1 * jax.random.normal(k3, (1, out_channels), jnp.float32)
               if final else jnp.zeros((1, out_channels), jnp.float32)),   # bias iff Final
        "g2": jnp.ones((1, out_channels), jnp.float32),
        "beta2": jnp.zeros((1, out_channels), jnp.float32),
    }


def resblock_dec_forward(x_nhwc, level, params, final=False):
    """ResBlock_dec forward.  x_nhwc: [N, H, W, Cin] float32 (NHWC)."""
    # TODO(synk): padding.get_padding(x, level) stitches neighbouring
    # icosahedral charts by `level`; a fused in-kernel 1-pixel zero pad is used
    # as a stand-in, and PHDConv2d's hexagonal tap masking is approximated by a
    # full 3x3 kernel.  Running BN statistics are not tracked (forward only).
    del level
    N, H, W, cin = x_nhwc.shape
    chid = params["w1"].shape[-1]
    cout = params["w2"].shape[-1]
    cin_p, chid_p, cout_p = (_ceil_to(c, _LANES) for c in (cin, chid, cout))
    count = float(N * H * W)

    # Lane-dense channel padding; bf16 matmul operands (f32 accumulation in-kernel).
    x_p = _pad_last(x_nhwc.astype(jnp.float32), cin_p).astype(jnp.bfloat16)

    w1 = jnp.zeros((9, cin_p, chid_p), jnp.float32)
    w1 = w1.at[:, :cin, :chid].set(params["w1"]).reshape(9 * cin_p, chid_p)
    w1 = w1.astype(jnp.bfloat16)
    w2 = jnp.zeros((9, chid_p, cout_p), jnp.float32)
    w2 = w2.at[:, :chid, :cout].set(params["w2"]).reshape(9 * chid_p, cout_p)
    w2 = w2.astype(jnp.bfloat16)

    b2 = _pad_last(params["b2"].astype(jnp.float32), cout_p)
    g1 = _pad_last(params["g1"].astype(jnp.float32), chid_p)
    beta1 = _pad_last(params["beta1"].astype(jnp.float32), chid_p)
    g2 = _pad_last(params["g2"].astype(jnp.float32), cout_p)
    beta2 = _pad_last(params["beta2"].astype(jnp.float32), cout_p)

    ones_in = jnp.ones((1, cin_p), jnp.float32)       # pre-norm disabled for conv1
    zeros_in = jnp.zeros((1, cin_p), jnp.float32)
    zero_b1 = jnp.zeros((1, chid_p), jnp.float32)     # conv1 has no bias (dead add skipped)

    # Stage 1: pad -> conv1 (+ BN1 partial stats).
    h_raw, s1, ss1 = _conv_stage(x_p, w1, zero_b1, ones_in, zeros_in,
                                 do_bias=False, pre_norm=False,
                                 out_dtype=jnp.bfloat16)
    scale1, shift1 = _bn_scale_shift(s1, ss1, g1, beta1, count)

    # Stage 2: (BN1 + ReLU fused as pre-norm) -> pad -> conv2.
    if final:
        out_p, _, _ = _conv_stage(h_raw, w2, b2, scale1, shift1,
                                  do_bias=True, pre_norm=True,
                                  out_dtype=jnp.float32)
    else:
        y_raw, s2, ss2 = _conv_stage(h_raw, w2, b2, scale1, shift1,
                                     do_bias=False, pre_norm=True,
                                     out_dtype=jnp.bfloat16)
        scale2, shift2 = _bn_scale_shift(s2, ss2, g2, beta2, count)
        out_p = _bn_relu_stage(y_raw, scale2, shift2, out_dtype=jnp.float32)

    return out_p[..., :cout]


def resblock_dec_forward_nchw(x_nchw, level, params, final=False):
    """PyTorch-interface adapter (NCHW in / NCHW out)."""
    y = resblock_dec_forward(jnp.transpose(x_nchw, (0, 2, 3, 1)), level, params,
                             final=final)
    return jnp.transpose(y, (0, 3, 1, 2))


# ---------------------------------------------------------------------------
# Pure-JAX reference (same stand-in padding / full 3x3 taps) for validation
# ---------------------------------------------------------------------------
def _reference_forward(x_nhwc, params, final=False):
    def conv3x3(a, w9, bias=None):
        w = w9.reshape(3, 3, w9.shape[1], w9.shape[2])          # HWIO
        a_p = jnp.pad(a, ((0, 0), (1, 1), (1, 1), (0, 0)))
        y = jax.lax.conv_general_dilated(
            a_p, w, window_strides=(1, 1), padding="VALID",
            dimension_numbers=("NHWC", "HWIO", "NHWC"))
        if bias is not None:
            y = y + bias.reshape(1, 1, 1, -1)
        return y

    def bn(a, g, b):
        m = jnp.mean(a, axis=(0, 1, 2), keepdims=True)
        v = jnp.var(a, axis=(0, 1, 2), keepdims=True)
        return ((a - m) * jax.lax.rsqrt(v + _BN_EPS) * g.reshape(1, 1, 1, -1)
                + b.reshape(1, 1, 1, -1))

    h = jnp.maximum(bn(conv3x3(x_nhwc, params["w1"]),
                       params["g1"], params["beta1"]), 0.0)
    if final:
        return conv3x3(h, params["w2"], params["b2"])
    y = conv3x3(h, params["w2"])
    return jnp.maximum(bn(y, params["g2"], params["beta2"]), 0.0)


if __name__ == "__main__":
    key = jax.random.PRNGKey(0)
    kx, kp, kpf = jax.random.split(key, 3)

    N, C_in, C_hid, C_out, H, W = 2, 4, 8, 4, 16, 16
    level = 0  # only selects chart padding in the original module

    x = jax.random.normal(kx, (N, H, W, C_in), jnp.float32)   # NHWC end-to-end

    # Non-final block: conv1 -> BN1 -> ReLU -> conv2 -> BN2 -> ReLU.
    params = init_resblock_dec_params(kp, C_in, C_hid, C_out, final=False)
    fwd = jax.jit(lambda xx, pp: resblock_dec_forward(xx, level, pp, final=False))
    y = jax.block_until_ready(fwd(x, params))
    assert y.shape == (N, H, W, C_out), y.shape
    assert bool(jnp.all(jnp.isfinite(y)))
    y_ref = _reference_forward(x, params, final=False)
    assert float(jnp.max(jnp.abs(y - y_ref))) < 0.2  # bf16-matmul tolerance

    # Final block: conv1 -> BN1 -> ReLU -> conv2(+bias), no BN2/ReLU.
    params_f = init_resblock_dec_params(kpf, C_in, C_hid, C_out, final=True)
    fwd_f = jax.jit(lambda xx, pp: resblock_dec_forward(xx, level, pp, final=True))
    y_f = jax.block_until_ready(fwd_f(x, params_f))
    assert y_f.shape == (N, H, W, C_out), y_f.shape
    assert bool(jnp.all(jnp.isfinite(y_f)))
    y_f_ref = _reference_forward(x, params_f, final=True)
    assert float(jnp.max(jnp.abs(y_f - y_f_ref))) < 0.2

    print("KERNEL_OK")
</pallas_src>

<mosaic_0001>
module attributes {stable_mosaic.version = 11 : i64} {
  func.func @_conv_stage_kernel(%arg0: i32, %arg1: memref<1x16x16x128xbf16, #tpu.memory_space<vmem>>, %arg2: memref<1152x128xbf16, #tpu.memory_space<vmem>>, %arg3: memref<1x128xf32, #tpu.memory_space<vmem>>, %arg4: memref<1x128xf32, #tpu.memory_space<vmem>>, %arg5: memref<1x128xf32, #tpu.memory_space<vmem>>, %arg6: memref<1x16x16x128xbf16, #tpu.memory_space<vmem>>, %arg7: memref<1x1x128xf32, #tpu.memory_space<vmem>>, %arg8: memref<1x1x128xf32, #tpu.memory_space<vmem>>, %arg9: memref<18x18x128xbf16, #tpu.memory_space<vmem>>) attributes {dimension_semantics = [#tpu.dimension_semantics<parallel>], iteration_bounds = array<i64: 2>, scalar_prefetch = 0 : i64, scratch_operands = 1 : i64, tpu.core_type = #tpu.core_type<tc>, window_params = [{transform_indices = @transform_0, window_bounds = array<i64: 1, 16, 16, 128>}, {pipeline_mode = #tpu.pipeline_mode<synchronous>, transform_indices = @transform_1, window_bounds = array<i64: 1152, 128>}, {pipeline_mode = #tpu.pipeline_mode<synchronous>, transform_indices = @transform_2, window_bounds = array<i64: 1, 128>}, {pipeline_mode = #tpu.pipeline_mode<synchronous>, transform_indices = @transform_3, window_bounds = array<i64: 1, 128>}, {pipeline_mode = #tpu.pipeline_mode<synchronous>, transform_indices = @transform_4, window_bounds = array<i64: 1, 128>}, {transform_indices = @transform_5, window_bounds = array<i64: 1, 16, 16, 128>}, {transform_indices = @transform_6, window_bounds = array<i64: 1, 1, 128>}, {transform_indices = @transform_7, window_bounds = array<i64: 1, 1, 128>}]} {
    %c0 = arith.constant 0 : index
    %c0_0 = arith.constant 0 : index
    %c0_1 = arith.constant 0 : index
    %c0_2 = arith.constant 0 : index
    %0 = vector.load %arg1[%c0, %c0_0, %c0_1, %c0_2] : memref<1x16x16x128xbf16, #tpu.memory_space<vmem>>, vector<1x16x16x128xbf16>
    %1 = vector.shape_cast %0 : vector<1x16x16x128xbf16> to vector<16x16x128xbf16>
    %cst = arith.constant 0.000000e+00 : bf16
    %2 = vector.broadcast %cst : bf16 to vector<18x18x128xbf16>
    %c0_3 = arith.constant 0 : index
    %c0_4 = arith.constant 0 : index
    %c0_5 = arith.constant 0 : index
    %3 = vector.load %arg9[%c0_3, %c0_4, %c0_5] : memref<18x18x128xbf16, #tpu.memory_space<vmem>>, vector<18x18x128xbf16>
    tpu.vector_store %arg9[%c0_3, %c0_4, %c0_5], %2 {strides = array<i32>} : memref<18x18x128xbf16, #tpu.memory_space<vmem>>, vector<18x18x128xbf16>,
    %c1 = arith.constant 1 : index
    %c1_6 = arith.constant 1 : index
    %c0_7 = arith.constant 0 : index
    %4 = vector.load %arg9[%c1, %c1_6, %c0_7] : memref<18x18x128xbf16, #tpu.memory_space<vmem>>, vector<16x16x128xbf16>
    tpu.vector_store %arg9[%c1, %c1_6, %c0_7], %1 {strides = array<i32>} : memref<18x18x128xbf16, #tpu.memory_space<vmem>>, vector<16x16x128xbf16>,
    %c0_8 = arith.constant 0 : index
    %c0_9 = arith.constant 0 : index
    %c0_10 = arith.constant 0 : index
    %5 = vector.load %arg9[%c0_8, %c0_9, %c0_10] : memref<18x18x128xbf16, #tpu.memory_space<vmem>>, vector<18x18x128xbf16>
    %6 = vector.extract_strided_slice %5 {offsets = [0, 0, 0], sizes = [16, 16, 128], strides = [1, 1, 1]} : vector<18x18x128xbf16> to vector<16x16x128xbf16>
    %7 = vector.extract_strided_slice %5 {offsets = [0, 1, 0], sizes = [16, 16, 128], strides = [1, 1, 1]} : vector<18x18x128xbf16> to vector<16x16x128xbf16>
    %8 = vector.extract_strided_slice %5 {offsets = [0, 2, 0], sizes = [16, 16, 128], strides = [1, 1, 1]} : vector<18x18x128xbf16> to vector<16x16x128xbf16>
    %9 = vector.extract_strided_slice %5 {offsets = [1, 0, 0], sizes = [16, 16, 128], strides = [1, 1, 1]} : vector<18x18x128xbf16> to vector<16x16x128xbf16>
    %10 = vector.extract_strided_slice %5 {offsets = [1, 1, 0], sizes = [16, 16, 128], strides = [1, 1, 1]} : vector<18x18x128xbf16> to vector<16x16x128xbf16>
    %11 = vector.extract_strided_slice %5 {offsets = [1, 2, 0], sizes = [16, 16, 128], strides = [1, 1, 1]} : vector<18x18x128xbf16> to vector<16x16x128xbf16>
    %12 = vector.extract_strided_slice %5 {offsets = [2, 0, 0], sizes = [16, 16, 128], strides = [1, 1, 1]} : vector<18x18x128xbf16> to vector<16x16x128xbf16>
    %13 = vector.extract_strided_slice %5 {offsets = [2, 1, 0], sizes = [16, 16, 128], strides = [1, 1, 1]} : vector<18x18x128xbf16> to vector<16x16x128xbf16>
    %14 = vector.extract_strided_slice %5 {offsets = [2, 2, 0], sizes = [16, 16, 128], strides = [1, 1, 1]} : vector<18x18x128xbf16> to vector<16x16x128xbf16>
    %15 = tpu.concatenate %6, %7, %8, %9, %10, %11, %12, %13, %14 in 2 : vector<16x16x128xbf16>, vector<16x16x128xbf16>, vector<16x16x128xbf16>, vector<16x16x128xbf16>, vector<16x16x128xbf16>, vector<16x16x128xbf16>, vector<16x16x128xbf16>, vector<16x16x128xbf16>, vector<16x16x128xbf16> -> vector<16x16x1152xbf16>
    %16 = vector.shape_cast %15 : vector<16x16x1152xbf16> to vector<256x1152xbf16>
    %c0_11 = arith.constant 0 : index
    %c0_12 = arith.constant 0 : index
    %17 = vector.load %arg2[%c0_11, %c0_12] : memref<1152x128xbf16, #tpu.memory_space<vmem>>, vector<1152x128xbf16>
    %cst_13 = arith.constant dense<0.000000e+00> : vector<256x128xf32>
    %18 = tpu.matmul %16, %17, %cst_13 {dimension_numbers = #tpu.dot_dimension_numbers<[1], [0], [0], [1], [0, 0, 1, 1], [], []>} : vector<256x1152xbf16>, vector<1152x128xbf16>, vector<256x128xf32> -> vector<256x128xf32>
    %cst_14 = arith.constant dense<0.000000e+00> : vector<128xf32>
    %19 = vector.multi_reduction <add>, %18, %cst_14 [0] : vector<256x128xf32> to vector<128xf32>
    %20 = vector.shape_cast %19 : vector<128xf32> to vector<1x128xf32>
    %c0_15 = arith.constant 0 : index
    %c0_16 = arith.constant 0 : index
    %c0_17 = arith.constant 0 : index
    %21 = vector.load %arg7[%c0_15, %c0_16, %c0_17] : memref<1x1x128xf32, #tpu.memory_space<vmem>>, vector<1x1x128xf32>
    %22 = vector.shape_cast %21 : vector<1x1x128xf32> to vector<1x128xf32>
    %23 = vector.shape_cast %20 : vector<1x128xf32> to vector<1x1x128xf32>
    tpu.vector_store %arg7[%c0_15, %c0_16, %c0_17], %23 {strides = array<i32>} : memref<1x1x128xf32, #tpu.memory_space<vmem>>, vector<1x1x128xf32>,
    %24 = arith.mulf %18, %18 : vector<256x128xf32>
    %cst_18 = arith.constant dense<0.000000e+00> : vector<128xf32>
    %25 = vector.multi_reduction <add>, %24, %cst_18 [0] : vector<256x128xf32> to vector<128xf32>
    %26 = vector.shape_cast %25 : vector<128xf32> to vector<1x128xf32>
    %c0_19 = arith.constant 0 : index
    %c0_20 = arith.constant 0 : index
    %c0_21 = arith.constant 0 : index
    %27 = vector.load %arg8[%c0_19, %c0_20, %c0_21] : memref<1x1x128xf32, #tpu.memory_space<vmem>>, vector<1x1x128xf32>
    %28 = vector.shape_cast %27 : vector<1x1x128xf32> to vector<1x128xf32>
    %29 = vector.shape_cast %26 : vector<1x128xf32> to vector<1x1x128xf32>
    tpu.vector_store %arg8[%c0_19, %c0_20, %c0_21], %29 {strides = array<i32>} : memref<1x1x128xf32, #tpu.memory_space<vmem>>, vector<1x1x128xf32>,
    %30 = vector.shape_cast %18 : vector<256x128xf32> to vector<16x16x128xf32>
    %31 = arith.truncf %30 : vector<16x16x128xf32> to vector<16x16x128xbf16>
    %c0_22 = arith.constant 0 : index
    %c0_23 = arith.constant 0 : index
    %c0_24 = arith.constant 0 : index
    %c0_25 = arith.constant 0 : index
    %32 = vector.load %arg6[%c0_22, %c0_23, %c0_24, %c0_25] : memref<1x16x16x128xbf16, #tpu.memory_space<vmem>>, vector<1x16x16x128xbf16>
    %33 = vector.shape_cast %32 : vector<1x16x16x128xbf16> to vector<16x16x128xbf16>
    %34 = vector.shape_cast %31 : vector<16x16x128xbf16> to vector<1x16x16x128xbf16>
    tpu.vector_store %arg6[%c0_22, %c0_23, %c0_24, %c0_25], %34 {strides = array<i32>} : memref<1x16x16x128xbf16, #tpu.memory_space<vmem>>, vector<1x16x16x128xbf16>,
    return
  }
  func.func @transform_0(%arg0: i32) -> (i32, i32, i32, i32) {
    %c0_i32 = arith.constant 0 : i32
    %c0_i32_0 = arith.constant 0 : i32
    %c0_i32_1 = arith.constant 0 : i32
    %c0_i32_2 = arith.constant 0 : i32
    return %arg0, %c0_i32, %c0_i32_0, %c0_i32_1 : i32, i32, i32, i32
  }
  func.func @transform_1(%arg0: i32) -> (i32, i32) {
    %c0_i32 = arith.constant 0 : i32
    %c0_i32_0 = arith.constant 0 : i32
    %c0_i32_1 = arith.constant 0 : i32
    return %c0_i32, %c0_i32_0 : i32, i32
  }
  func.func @transform_2(%arg0: i32) -> (i32, i32) {
    %c0_i32 = arith.constant 0 : i32
    %c0_i32_0 = arith.constant 0 : i32
    %c0_i32_1 = arith.constant 0 : i32
    return %c0_i32, %c0_i32_0 : i32, i32
  }
  func.func @transform_3(%arg0: i32) -> (i32, i32) {
    %c0_i32 = arith.constant 0 : i32
    %c0_i32_0 = arith.constant 0 : i32
    %c0_i32_1 = arith.constant 0 : i32
    return %c0_i32, %c0_i32_0 : i32, i32
  }
  func.func @transform_4(%arg0: i32) -> (i32, i32) {
    %c0_i32 = arith.constant 0 : i32
    %c0_i32_0 = arith.constant 0 : i32
    %c0_i32_1 = arith.constant 0 : i32
    return %c0_i32, %c0_i32_0 : i32, i32
  }
  func.func @transform_5(%arg0: i32) -> (i32, i32, i32, i32) {
    %c0_i32 = arith.constant 0 : i32
    %c0_i32_0 = arith.constant 0 : i32
    %c0_i32_1 = arith.constant 0 : i32
    %c0_i32_2 = arith.constant 0 : i32
    return %arg0, %c0_i32, %c0_i32_0, %c0_i32_1 : i32, i32, i32, i32
  }
  func.func @transform_6(%arg0: i32) -> (i32, i32, i32) {
    %c0_i32 = arith.constant 0 : i32
    %c0_i32_0 = arith.constant 0 : i32
    %c0_i32_1 = arith.constant 0 : i32
    return %arg0, %c0_i32, %c0_i32_0 : i32, i32, i32
  }
  func.func @transform_7(%arg0: i32) -> (i32, i32, i32) {
    %c0_i32 = arith.constant 0 : i32
    %c0_i32_0 = arith.constant 0 : i32
    %c0_i32_1 = arith.constant 0 : i32
    return %arg0, %c0_i32, %c0_i32_0 : i32, i32, i32
  }
}

module attributes {stable_mosaic.version = 11 : i64} {
  func.func @_conv_stage_kernel(%arg0: i32, %arg1: memref<1x16x16x128xbf16, #tpu.memory_space<vmem>>, %arg2: memref<1152x128xbf16, #tpu.memory_space<vmem>>, %arg3: memref<1x128xf32, #tpu.memory_space<vmem>>, %arg4: memref<1x128xf32, #tpu.memory_space<vmem>>, %arg5: memref<1x128xf32, #tpu.memory_space<vmem>>, %arg6: memref<1x16x16x128xbf16, #tpu.memory_space<vmem>>, %arg7: memref<1x1x128xf32, #tpu.memory_space<vmem>>, %arg8: memref<1x1x128xf32, #tpu.memory_space<vmem>>, %arg9: memref<18x18x128xbf16, #tpu.memory_space<vmem>>) attributes {dimension_semantics = [#tpu.dimension_semantics<parallel>], iteration_bounds = array<i64: 2>, scalar_prefetch = 0 : i64, scratch_operands = 1 : i64, tpu.core_type = #tpu.core_type<tc>, window_params = [{transform_indices = @transform_0, window_bounds = array<i64: 1, 16, 16, 128>}, {pipeline_mode = #tpu.pipeline_mode<synchronous>, transform_indices = @transform_1, window_bounds = array<i64: 1152, 128>}, {pipeline_mode = #tpu.pipeline_mode<synchronous>, transform_indices = @transform_2, window_bounds = array<i64: 1, 128>}, {pipeline_mode = #tpu.pipeline_mode<synchronous>, transform_indices = @transform_3, window_bounds = array<i64: 1, 128>}, {pipeline_mode = #tpu.pipeline_mode<synchronous>, transform_indices = @transform_4, window_bounds = array<i64: 1, 128>}, {transform_indices = @transform_5, window_bounds = array<i64: 1, 16, 16, 128>}, {transform_indices = @transform_6, window_bounds = array<i64: 1, 1, 128>}, {transform_indices = @transform_7, window_bounds = array<i64: 1, 1, 128>}]} {
    %c0 = arith.constant 0 : index
    %c0_0 = arith.constant 0 : index
    %c0_1 = arith.constant 0 : index
    %c0_2 = arith.constant 0 : index
    %0 = vector.load %arg1[%c0, %c0_0, %c0_1, %c0_2] : memref<1x16x16x128xbf16, #tpu.memory_space<vmem>>, vector<1x16x16x128xbf16>
    %1 = vector.shape_cast %0 : vector<1x16x16x128xbf16> to vector<16x16x128xbf16>
    %2 = arith.extf %1 : vector<16x16x128xbf16> to vector<16x16x128xf32>
    %c0_3 = arith.constant 0 : index
    %c0_4 = arith.constant 0 : index
    %3 = vector.load %arg4[%c0_3, %c0_4] : memref<1x128xf32, #tpu.memory_space<vmem>>, vector<1x128xf32>
    %4 = vector.shape_cast %3 : vector<1x128xf32> to vector<1x1x128xf32>
    %5 = vector.broadcast %4 : vector<1x1x128xf32> to vector<16x16x128xf32>
    %6 = arith.mulf %2, %5 : vector<16x16x128xf32>
    %c0_5 = arith.constant 0 : index
    %c0_6 = arith.constant 0 : index
    %7 = vector.load %arg5[%c0_5, %c0_6] : memref<1x128xf32, #tpu.memory_space<vmem>>, vector<1x128xf32>
    %8 = vector.shape_cast %7 : vector<1x128xf32> to vector<1x1x128xf32>
    %9 = vector.broadcast %8 : vector<1x1x128xf32> to vector<16x16x128xf32>
    %10 = arith.addf %6, %9 : vector<16x16x128xf32>
    %cst = arith.constant 0.000000e+00 : f32
    %11 = vector.broadcast %cst : f32 to vector<16x16x128xf32>
    %12 = arith.maximumf %10, %11 : vector<16x16x128xf32>
    %13 = arith.truncf %12 : vector<16x16x128xf32> to vector<16x16x128xbf16>
    %cst_7 = arith.constant 0.000000e+00 : bf16
    %14 = vector.broadcast %cst_7 : bf16 to vector<18x18x128xbf16>
    %c0_8 = arith.constant 0 : index
    %c0_9 = arith.constant 0 : index
    %c0_10 = arith.constant 0 : index
    %15 = vector.load %arg9[%c0_8, %c0_9, %c0_10] : memref<18x18x128xbf16, #tpu.memory_space<vmem>>, vector<18x18x128xbf16>
    tpu.vector_store %arg9[%c0_8, %c0_9, %c0_10], %14 {strides = array<i32>} : memref<18x18x128xbf16, #tpu.memory_space<vmem>>, vector<18x18x128xbf16>,
    %c1 = arith.constant 1 : index
    %c1_11 = arith.constant 1 : index
    %c0_12 = arith.constant 0 : index
    %16 = vector.load %arg9[%c1, %c1_11, %c0_12] : memref<18x18x128xbf16, #tpu.memory_space<vmem>>, vector<16x16x128xbf16>
    tpu.vector_store %arg9[%c1, %c1_11, %c0_12], %13 {strides = array<i32>} : memref<18x18x128xbf16, #tpu.memory_space<vmem>>, vector<16x16x128xbf16>,
    %c0_13 = arith.constant 0 : index
    %c0_14 = arith.constant 0 : index
    %c0_15 = arith.constant 0 : index
    %17 = vector.load %arg9[%c0_13, %c0_14, %c0_15] : memref<18x18x128xbf16, #tpu.memory_space<vmem>>, vector<18x18x128xbf16>
    %18 = vector.extract_strided_slice %17 {offsets = [0, 0, 0], sizes = [16, 16, 128], strides = [1, 1, 1]} : vector<18x18x128xbf16> to vector<16x16x128xbf16>
    %19 = vector.extract_strided_slice %17 {offsets = [0, 1, 0], sizes = [16, 16, 128], strides = [1, 1, 1]} : vector<18x18x128xbf16> to vector<16x16x128xbf16>
    %20 = vector.extract_strided_slice %17 {offsets = [0, 2, 0], sizes = [16, 16, 128], strides = [1, 1, 1]} : vector<18x18x128xbf16> to vector<16x16x128xbf16>
    %21 = vector.extract_strided_slice %17 {offsets = [1, 0, 0], sizes = [16, 16, 128], strides = [1, 1, 1]} : vector<18x18x128xbf16> to vector<16x16x128xbf16>
    %22 = vector.extract_strided_slice %17 {offsets = [1, 1, 0], sizes = [16, 16, 128], strides = [1, 1, 1]} : vector<18x18x128xbf16> to vector<16x16x128xbf16>
    %23 = vector.extract_strided_slice %17 {offsets = [1, 2, 0], sizes = [16, 16, 128], strides = [1, 1, 1]} : vector<18x18x128xbf16> to vector<16x16x128xbf16>
    %24 = vector.extract_strided_slice %17 {offsets = [2, 0, 0], sizes = [16, 16, 128], strides = [1, 1, 1]} : vector<18x18x128xbf16> to vector<16x16x128xbf16>
    %25 = vector.extract_strided_slice %17 {offsets = [2, 1, 0], sizes = [16, 16, 128], strides = [1, 1, 1]} : vector<18x18x128xbf16> to vector<16x16x128xbf16>
    %26 = vector.extract_strided_slice %17 {offsets = [2, 2, 0], sizes = [16, 16, 128], strides = [1, 1, 1]} : vector<18x18x128xbf16> to vector<16x16x128xbf16>
    %27 = tpu.concatenate %18, %19, %20, %21, %22, %23, %24, %25, %26 in 2 : vector<16x16x128xbf16>, vector<16x16x128xbf16>, vector<16x16x128xbf16>, vector<16x16x128xbf16>, vector<16x16x128xbf16>, vector<16x16x128xbf16>, vector<16x16x128xbf16>, vector<16x16x128xbf16>, vector<16x16x128xbf16> -> vector<16x16x1152xbf16>
    %28 = vector.shape_cast %27 : vector<16x16x1152xbf16> to vector<256x1152xbf16>
    %c0_16 = arith.constant 0 : index
    %c0_17 = arith.constant 0 : index
    %29 = vector.load %arg2[%c0_16, %c0_17] : memref<1152x128xbf16, #tpu.memory_space<vmem>>, vector<1152x128xbf16>
    %cst_18 = arith.constant dense<0.000000e+00> : vector<256x128xf32>
    %30 = tpu.matmul %28, %29, %cst_18 {dimension_numbers = #tpu.dot_dimension_numbers<[1], [0], [0], [1], [0, 0, 1, 1], [], []>} : vector<256x1152xbf16>, vector<1152x128xbf16>, vector<256x128xf32> -> vector<256x128xf32>
    %cst_19 = arith.constant dense<0.000000e+00> : vector<128xf32>
    %31 = vector.multi_reduction <add>, %30, %cst_19 [0] : vector<256x128xf32> to vector<128xf32>
    %32 = vector.shape_cast %31 : vector<128xf32> to vector<1x128xf32>
    %c0_20 = arith.constant 0 : index
    %c0_21 = arith.constant 0 : index
    %c0_22 = arith.constant 0 : index
    %33 = vector.load %arg7[%c0_20, %c0_21, %c0_22] : memref<1x1x128xf32, #tpu.memory_space<vmem>>, vector<1x1x128xf32>
    %34 = vector.shape_cast %33 : vector<1x1x128xf32> to vector<1x128xf32>
    %35 = vector.shape_cast %32 : vector<1x128xf32> to vector<1x1x128xf32>
    tpu.vector_store %arg7[%c0_20, %c0_21, %c0_22], %35 {strides = array<i32>} : memref<1x1x128xf32, #tpu.memory_space<vmem>>, vector<1x1x128xf32>,
    %36 = arith.mulf %30, %30 : vector<256x128xf32>
    %cst_23 = arith.constant dense<0.000000e+00> : vector<128xf32>
    %37 = vector.multi_reduction <add>, %36, %cst_23 [0] : vector<256x128xf32> to vector<128xf32>
    %38 = vector.shape_cast %37 : vector<128xf32> to vector<1x128xf32>
    %c0_24 = arith.constant 0 : index
    %c0_25 = arith.constant 0 : index
    %c0_26 = arith.constant 0 : index
    %39 = vector.load %arg8[%c0_24, %c0_25, %c0_26] : memref<1x1x128xf32, #tpu.memory_space<vmem>>, vector<1x1x128xf32>
    %40 = vector.shape_cast %39 : vector<1x1x128xf32> to vector<1x128xf32>
    %41 = vector.shape_cast %38 : vector<1x128xf32> to vector<1x1x128xf32>
    tpu.vector_store %arg8[%c0_24, %c0_25, %c0_26], %41 {strides = array<i32>} : memref<1x1x128xf32, #tpu.memory_space<vmem>>, vector<1x1x128xf32>,
    %42 = vector.shape_cast %30 : vector<256x128xf32> to vector<16x16x128xf32>
    %43 = arith.truncf %42 : vector<16x16x128xf32> to vector<16x16x128xbf16>
    %c0_27 = arith.constant 0 : index
    %c0_28 = arith.constant 0 : index
    %c0_29 = arith.constant 0 : index
    %c0_30 = arith.constant 0 : index
    %44 = vector.load %arg6[%c0_27, %c0_28, %c0_29, %c0_30] : memref<1x16x16x128xbf16, #tpu.memory_space<vmem>>, vector<1x16x16x128xbf16>
    %45 = vector.shape_cast %44 : vector<1x16x16x128xbf16> to vector<16x16x128xbf16>
    %46 = vector.shape_cast %43 : vector<16x16x128xbf16> to vector<1x16x16x128xbf16>
    tpu.vector_store %arg6[%c0_27, %c0_28, %c0_29, %c0_30], %46 {strides = array<i32>} : memref<1x16x16x128xbf16, #tpu.memory_space<vmem>>, vector<1x16x16x128xbf16>,
    return
  }
  func.func @transform_0(%arg0: i32) -> (i32, i32, i32, i32) {
    %c0_i32 = arith.constant 0 : i32
    %c0_i32_0 = arith.constant 0 : i32
    %c0_i32_1 = arith.constant 0 : i32
    %c0_i32_2 = arith.constant 0 : i32
    return %arg0, %c0_i32, %c0_i32_0, %c0_i32_1 : i32, i32, i32, i32
  }
  func.func @transform_1(%arg0: i32) -> (i32, i32) {
    %c0_i32 = arith.constant 0 : i32
    %c0_i32_0 = arith.constant 0 : i32
    %c0_i32_1 = arith.constant 0 : i32
    return %c0_i32, %c0_i32_0 : i32, i32
  }
  func.func @transform_2(%arg0: i32) -> (i32, i32) {
    %c0_i32 = arith.constant 0 : i32
    %c0_i32_0 = arith.constant 0 : i32
    %c0_i32_1 = arith.constant 0 : i32
    return %c0_i32, %c0_i32_0 : i32, i32
  }
  func.func @transform_3(%arg0: i32) -> (i32, i32) {
    %c0_i32 = arith.constant 0 : i32
    %c0_i32_0 = arith.constant 0 : i32
    %c0_i32_1 = arith.constant 0 : i32
    return %c0_i32, %c0_i32_0 : i32, i32
  }
  func.func @transform_4(%arg0: i32) -> (i32, i32) {
    %c0_i32 = arith.constant 0 : i32
    %c0_i32_0 = arith.constant 0 : i32
    %c0_i32_1 = arith.constant 0 : i32
    return %c0_i32, %c0_i32_0 : i32, i32
  }
  func.func @transform_5(%arg0: i32) -> (i32, i32, i32, i32) {
    %c0_i32 = arith.constant 0 : i32
    %c0_i32_0 = arith.constant 0 : i32
    %c0_i32_1 = arith.constant 0 : i32
    %c0_i32_2 = arith.constant 0 : i32
    return %arg0, %c0_i32, %c0_i32_0, %c0_i32_1 : i32, i32, i32, i32
  }
  func.func @transform_6(%arg0: i32) -> (i32, i32, i32) {
    %c0_i32 = arith.constant 0 : i32
    %c0_i32_0 = arith.constant 0 : i32
    %c0_i32_1 = arith.constant 0 : i32
    return %arg0, %c0_i32, %c0_i32_0 : i32, i32, i32
  }
  func.func @transform_7(%arg0: i32) -> (i32, i32, i32) {
    %c0_i32 = arith.constant 0 : i32
    %c0_i32_0 = arith.constant 0 : i32
    %c0_i32_1 = arith.constant 0 : i32
    return %arg0, %c0_i32, %c0_i32_0 : i32, i32, i32
  }
}

module attributes {stable_mosaic.version = 11 : i64} {
  func.func @_bn_relu_kernel(%arg0: i32, %arg1: memref<1x16x16x128xbf16, #tpu.memory_space<vmem>>, %arg2: memref<1x128xf32, #tpu.memory_space<vmem>>, %arg3: memref<1x128xf32, #tpu.memory_space<vmem>>, %arg4: memref<1x16x16x128xf32, #tpu.memory_space<vmem>>) attributes {dimension_semantics = [#tpu.dimension_semantics<parallel>], iteration_bounds = array<i64: 2>, scalar_prefetch = 0 : i64, scratch_operands = 0 : i64, tpu.core_type = #tpu.core_type<tc>, window_params = [{transform_indices = @transform_0, window_bounds = array<i64: 1, 16, 16, 128>}, {pipeline_mode = #tpu.pipeline_mode<synchronous>, transform_indices = @transform_1, window_bounds = array<i64: 1, 128>}, {pipeline_mode = #tpu.pipeline_mode<synchronous>, transform_indices = @transform_2, window_bounds = array<i64: 1, 128>}, {transform_indices = @transform_3, window_bounds = array<i64: 1, 16, 16, 128>}]} {
    %c0 = arith.constant 0 : index
    %c0_0 = arith.constant 0 : index
    %c0_1 = arith.constant 0 : index
    %c0_2 = arith.constant 0 : index
    %0 = vector.load %arg1[%c0, %c0_0, %c0_1, %c0_2] : memref<1x16x16x128xbf16, #tpu.memory_space<vmem>>, vector<1x16x16x128xbf16>
    %1 = arith.extf %0 : vector<1x16x16x128xbf16> to vector<1x16x16x128xf32>
    %c0_3 = arith.constant 0 : index
    %c0_4 = arith.constant 0 : index
    %2 = vector.load %arg2[%c0_3, %c0_4] : memref<1x128xf32, #tpu.memory_space<vmem>>, vector<1x128xf32>
    %3 = vector.shape_cast %2 : vector<1x128xf32> to vector<1x1x1x128xf32>
    %4 = vector.broadcast %3 : vector<1x1x1x128xf32> to vector<1x16x16x128xf32>
    %5 = arith.mulf %1, %4 : vector<1x16x16x128xf32>
    %c0_5 = arith.constant 0 : index
    %c0_6 = arith.constant 0 : index
    %6 = vector.load %arg3[%c0_5, %c0_6] : memref<1x128xf32, #tpu.memory_space<vmem>>, vector<1x128xf32>
    %7 = vector.shape_cast %6 : vector<1x128xf32> to vector<1x1x1x128xf32>
    %8 = vector.broadcast %7 : vector<1x1x1x128xf32> to vector<1x16x16x128xf32>
    %9 = arith.addf %5, %8 : vector<1x16x16x128xf32>
    %cst = arith.constant 0.000000e+00 : f32
    %10 = vector.broadcast %cst : f32 to vector<1x16x16x128xf32>
    %11 = arith.maximumf %9, %10 : vector<1x16x16x128xf32>
    %c0_7 = arith.constant 0 : index
    %c0_8 = arith.constant 0 : index
    %c0_9 = arith.constant 0 : index
    %c0_10 = arith.constant 0 : index
    %12 = vector.load %arg4[%c0_7, %c0_8, %c0_9, %c0_10] : memref<1x16x16x128xf32, #tpu.memory_space<vmem>>, vector<1x16x16x128xf32>
    tpu.vector_store %arg4[%c0_7, %c0_8, %c0_9, %c0_10], %11 {strides = array<i32>} : memref<1x16x16x128xf32, #tpu.memory_space<vmem>>, vector<1x16x16x128xf32>,
    return
  }
  func.func @transform_0(%arg0: i32) -> (i32, i32, i32, i32) {
    %c0_i32 = arith.constant 0 : i32
    %c0_i32_0 = arith.constant 0 : i32
    %c0_i32_1 = arith.constant 0 : i32
    %c0_i32_2 = arith.constant 0 : i32
    return %arg0, %c0_i32, %c0_i32_0, %c0_i32_1 : i32, i32, i32, i32
  }
  func.func @transform_1(%arg0: i32) -> (i32, i32) {
    %c0_i32 = arith.constant 0 : i32
    %c0_i32_0 = arith.constant 0 : i32
    %c0_i32_1 = arith.constant 0 : i32
    return %c0_i32, %c0_i32_0 : i32, i32
  }
  func.func @transform_2(%arg0: i32) -> (i32, i32) {
    %c0_i32 = arith.constant 0 : i32
    %c0_i32_0 = arith.constant 0 : i32
    %c0_i32_1 = arith.constant 0 : i32
    return %c0_i32, %c0_i32_0 : i32, i32
  }
  func.func @transform_3(%arg0: i32) -> (i32, i32, i32, i32) {
    %c0_i32 = arith.constant 0 : i32
    %c0_i32_0 = arith.constant 0 : i32
    %c0_i32_1 = arith.constant 0 : i32
    %c0_i32_2 = arith.constant 0 : i32
    return %arg0, %c0_i32, %c0_i32_0, %c0_i32_1 : i32, i32, i32, i32
  }
}

</mosaic_0001>

<bundles_post_ra>
// kernel: _lambda_.5
= control target key start
LH: loop header
LB: loop body
LE: loop exit
PB: predicated region body
PF: predicated region fallthrough
CT: control target
= control target key end

     0   :  { %s562_s12 = smov 0   ;;  %s709_s0 = inlined_call_operand.vmem [shape: bf16[2,16,16,128], index: 0, kind: input, shape index: {}]   ;;  %s710_s1 = inlined_call_operand.vmem [shape: f32[1,128], index: 1, kind: input, shape index: {}]   ;;  %s711_s2 = inlined_call_operand.vmem [shape: f32[1,128], index: 2, kind: input, shape index: {}]   ;;  %s712_s3 = inlined_call_operand.vmem [shape: f32[2,16,16,128], index: 3, kind: output, shape index: {}]  }
   0x1 LB: > { %s432_s13 = sadd.s32 4294967295, %s540_s12   ;;  %p436_p0 = scmp.ge.s32.totalorder %s540_s12, 1  ;;  %s540_s12 = sphi %s562_s12, %s13_s12  }
   0x2   : > { %p137_p1 = scmp.lt.s32.totalorder %s540_s12, 3 }
   0x4   : > { %p138_p2 = pnand %p436_p0, %p137_p1 }
   0x5   : > { %p161_p3 = scmp.lt.s32.totalorder (!%p138_p2), %s432_s13, 1  ;;  %v581_v0 = vld [vmem:[%s710_s1] ss:$0 sm:$0xff] (!%p138_p2) }
   0x6   : > { %141 = sbr.rel (%p138_p2) target bundleno = 53 (0x35), region = 32  ;;  %v590_v9 = vld [vmem:[%s711_s2] ss:$0 sm:$0xff] (!%p138_p2) }
   0xd   : > { %s714_s13 = smov (!%p161_p3, %s432_s13), 1 }
   0xe   : > { %s445_s14 = sshll.u32 %s714_s13, 7  ;;  %s446_s22 = sshll.u32 %s714_s13, 8 }
   0xf   : > { %s576_s17 = scalar_lea.vmem %s709_s0, %s445_s14  ;;  %s608_s25 = scalar_lea.vmem %s712_s3, %s446_s22 }
  0x10   : > { %v448_v1 = vld [vmem:[%s576_s17] sm:$0xff]   ;;  %v511_v2 = vld [vmem:[%s576_s17 + $0x8] sm:$0xff]   ;;  %v512_v3 = vld [vmem:[%s576_s17 + $0x10] sm:$0xff]  }
  0x11   : > { %v449_v4 = vunpack.c.l.bf16 %v448_v1  ;;  %v450_v5 = vunpack.c.h.bf16 %v448_v1  ;;  %v453_v6 = vunpack.c.l.bf16 %v511_v2  ;;  %v454_v7 = vunpack.c.h.bf16 %v511_v2  ;;  %v513_v8 = vld [vmem:[%s576_s17 + $0x18] sm:$0xff]   ;;  %v514_v30 = vld [vmem:[%s576_s17 + $0x20] sm:$0xff]   ;;  %v515_v31 = vld [vmem:[%s576_s17 + $0x28] sm:$0xff]  }
  0x12   : > { %v457_v10 = vunpack.c.l.bf16 %v512_v3  ;;  %v458_v11 = vunpack.c.h.bf16 %v512_v3  ;;  %v461_v12 = vunpack.c.l.bf16 %v513_v8  ;;  %v462_v13 = vunpack.c.h.bf16 %v513_v8  ;;  %v516_v36 = vld [vmem:[%s576_s17 + $0x30] sm:$0xff]   ;;  %v517_v37 = vld [vmem:[%s576_s17 + $0x38] sm:$0xff]   ;;  %v518_v3 = vld [vmem:[%s576_s17 + $0x40] sm:$0xff]  }
  0x13   : > { %v242_v14 = vmul.f32 %v449_v4, %v581_v0  ;;  %v243_v15 = vmul.f32 %v450_v5, %v581_v0  ;;  %v244_v16 = vmul.f32 %v453_v6, %v581_v0  ;;  %v245_v17 = vmul.f32 %v454_v7, %v581_v0  ;;  %v519_v4 = vld [vmem:[%s576_s17 + $0x48] sm:$0xff]  }
  0x14   : > { %v246_v18 = vmul.f32 %v457_v10, %v581_v0  ;;  %v247_v19 = vmul.f32 %v458_v11, %v581_v0  ;;  %v248_v20 = vmul.f32 %v461_v12, %v581_v0  ;;  %v249_v21 = vmul.f32 %v462_v13, %v581_v0  ;;  %v520_v10 = vld [vmem:[%s576_s17 + $0x50] sm:$0xff]   ;;  %v521_v11 = vld [vmem:[%s576_s17 + $0x58] sm:$0xff]  }
  0x15   : > { %v281_v22 = vadd.f32 %v590_v9, %v242_v14  ;;  %v282_v23 = vadd.f32 %v590_v9, %v243_v15  ;;  %v283_v24 = vadd.f32 %v590_v9, %v244_v16  ;;  %v284_v25 = vadd.f32 %v590_v9, %v245_v17 }
  0x16   : > { %v285_v26 = vadd.f32 %v590_v9, %v246_v18  ;;  %v286_v27 = vadd.f32 %v590_v9, %v247_v19  ;;  %v287_v28 = vadd.f32 %v590_v9, %v248_v20  ;;  %v288_v29 = vadd.f32 %v590_v9, %v249_v21 }
  0x17   : > { %v313_v32 = vmax.f32 %v281_v22, 0.0  ;;  %v314_v33 = vmax.f32 %v282_v23, 0.0  ;;  %v315_v34 = vmax.f32 %v283_v24, 0.0  ;;  %v316_v35 = vmax.f32 %v284_v25, 0.0 }
  0x18   : > { %v317_v38 = vmax.f32 %v285_v26, 0.0  ;;  %v318_v39 = vmax.f32 %v286_v27, 0.0  ;;  %v319_v40 = vmax.f32 %v287_v28, 0.0  ;;  %v320_v41 = vmax.f32 %v288_v29, 0.0 }
  0x19   : > { %345 = vst [vmem:[%s608_s25] sm:$0xff] %v313_v32  ;;  %346 = vst [vmem:[%s608_s25 + $0x8] sm:$0xff] %v314_v33  ;;  %v465_v42 = vunpack.c.l.bf16 %v514_v30  ;;  %v466_v43 = vunpack.c.h.bf16 %v514_v30  ;;  %v469_v44 = vunpack.c.l.bf16 %v515_v31  ;;  %v470_v45 = vunpack.c.h.bf16 %v515_v31 }
  0x1a   : > { %347 = vst [vmem:[%s608_s25 + $0x10] sm:$0xff] %v315_v34  ;;  %348 = vst [vmem:[%s608_s25 + $0x18] sm:$0xff] %v316_v35  ;;  %v473_v46 = vunpack.c.l.bf16 %v516_v36  ;;  %v474_v47 = vunpack.c.h.bf16 %v516_v36  ;;  %v477_v48 = vunpack.c.l.bf16 %v517_v37  ;;  %v478_v49 = vunpack.c.h.bf16 %v517_v37 }
  0x1b   : > { %349 = vst [vmem:[%s608_s25 + $0x20] sm:$0xff] %v317_v38  ;;  %350 = vst [vmem:[%s608_s25 + $0x28] sm:$0xff] %v318_v39  ;;  %v250_v50 = vmul.f32 %v465_v42, %v581_v0  ;;  %v251_v51 = vmul.f32 %v466_v43, %v581_v0  ;;  %v252_v52 = vmul.f32 %v469_v44, %v581_v0  ;;  %v481_v16 = vunpack.c.l.bf16 %v518_v3 }
  0x1c   : > { %351 = vst [vmem:[%s608_s25 + $0x30] sm:$0xff] %v319_v40  ;;  %352 = vst [vmem:[%s608_s25 + $0x38] sm:$0xff] %v320_v41  ;;  %v253_v53 = vmul.f32 %v470_v45, %v581_v0  ;;  %v254_v54 = vmul.f32 %v473_v46, %v581_v0  ;;  %v255_v55 = vmul.f32 %v474_v47, %v581_v0  ;;  %v482_v17 = vunpack.c.h.bf16 %v518_v3  ;;  %v522_v40 = vld [vmem:[%s576_s17 + $0x60] sm:$0xff]   ;;  %v523_v41 = vld [vmem:[%s576_s17 + $0x68] sm:$0xff]  }
  0x1d   : > { %v256_v56 = vmul.f32 %v477_v48, %v581_v0  ;;  %v257_v57 = vmul.f32 %v478_v49, %v581_v0  ;;  %v289_v58 = vadd.f32 %v590_v9, %v250_v50  ;;  %v290_v59 = vadd.f32 %v590_v9, %v251_v51  ;;  %v524_v46 = vld [vmem:[%s576_s17 + $0x70] sm:$0xff]   ;;  %v525_v47 = vld [vmem:[%s576_s17 + $0x78] sm:$0xff]  }
  0x1e   : > { %v291_v60 = vadd.f32 %v590_v9, %v252_v52  ;;  %v292_v61 = vadd.f32 %v590_v9, %v253_v53  ;;  %v293_v62 = vadd.f32 %v590_v9, %v254_v54  ;;  %v294_v63 = vadd.f32 %v590_v9, %v255_v55 }
  0x1f   : > { %v295_v1 = vadd.f32 %v590_v9, %v256_v56  ;;  %v296_v2 = vadd.f32 %v590_v9, %v257_v57  ;;  %v321_v5 = vmax.f32 %v289_v58, 0.0  ;;  %v322_v6 = vmax.f32 %v290_v59, 0.0 }
  0x20   : > { %v323_v7 = vmax.f32 %v291_v60, 0.0  ;;  %v324_v8 = vmax.f32 %v292_v61, 0.0  ;;  %v325_v12 = vmax.f32 %v293_v62, 0.0  ;;  %v326_v13 = vmax.f32 %v294_v63, 0.0 }
  0x21   : > { %v327_v14 = vmax.f32 %v295_v1, 0.0  ;;  %v328_v15 = vmax.f32 %v296_v2, 0.0  ;;  %353 = vst [vmem:[%s608_s25 + $0x40] sm:$0xff] %v321_v5  ;;  %354 = vst [vmem:[%s608_s25 + $0x48] sm:$0xff] %v322_v6  ;;  %v485_v18 = vunpack.c.l.bf16 %v519_v4  ;;  %v486_v19 = vunpack.c.h.bf16 %v519_v4 }
  0x22   : > { %355 = vst [vmem:[%s608_s25 + $0x50] sm:$0xff] %v323_v7  ;;  %356 = vst [vmem:[%s608_s25 + $0x58] sm:$0xff] %v324_v8  ;;  %v489_v20 = vunpack.c.l.bf16 %v520_v10  ;;  %v490_v21 = vunpack.c.h.bf16 %v520_v10  ;;  %v493_v22 = vunpack.c.l.bf16 %v521_v11  ;;  %v494_v23 = vunpack.c.h.bf16 %v521_v11 }
  0x23   : > { %357 = vst [vmem:[%s608_s25 + $0x60] sm:$0xff] %v325_v12  ;;  %358 = vst [vmem:[%s608_s25 + $0x68] sm:$0xff] %v326_v13  ;;  %v258_v24 = vmul.f32 %v481_v16, %v581_v0  ;;  %v259_v25 = vmul.f32 %v482_v17, %v581_v0  ;;  %v260_v26 = vmul.f32 %v485_v18, %v581_v0  ;;  %v497_v52 = vunpack.c.l.bf16 %v522_v40 }
  0x24   : > { %359 = vst [vmem:[%s608_s25 + $0x70] sm:$0xff] %v327_v14  ;;  %360 = vst [vmem:[%s608_s25 + $0x78] sm:$0xff] %v328_v15  ;;  %v261_v27 = vmul.f32 %v486_v19, %v581_v0  ;;  %v262_v28 = vmul.f32 %v489_v20, %v581_v0  ;;  %v263_v29 = vmul.f32 %v490_v21, %v581_v0  ;;  %v498_v53 = vunpack.c.h.bf16 %v522_v40 }
  0x25   : > { %v264_v30 = vmul.f32 %v493_v22, %v581_v0  ;;  %v265_v31 = vmul.f32 %v494_v23, %v581_v0  ;;  %v297_v32 = vadd.f32 %v590_v9, %v258_v24  ;;  %v298_v33 = vadd.f32 %v590_v9, %v259_v25 }
  0x26   : > { %v299_v34 = vadd.f32 %v590_v9, %v260_v26  ;;  %v300_v35 = vadd.f32 %v590_v9, %v261_v27  ;;  %v301_v36 = vadd.f32 %v590_v9, %v262_v28  ;;  %v302_v37 = vadd.f32 %v590_v9, %v263_v29 }
  0x27   : > { %v303_v38 = vadd.f32 %v590_v9, %v264_v30  ;;  %v304_v39 = vadd.f32 %v590_v9, %v265_v31  ;;  %v329_v42 = vmax.f32 %v297_v32, 0.0  ;;  %v330_v43 = vmax.f32 %v298_v33, 0.0 }
  0x28   : > { %v331_v44 = vmax.f32 %v299_v34, 0.0  ;;  %v332_v45 = vmax.f32 %v300_v35, 0.0  ;;  %v333_v48 = vmax.f32 %v301_v36, 0.0  ;;  %v334_v49 = vmax.f32 %v302_v37, 0.0 }
  0x29   : > { %v335_v50 = vmax.f32 %v303_v38, 0.0  ;;  %v336_v51 = vmax.f32 %v304_v39, 0.0  ;;  %361 = vst [vmem:[%s608_s25 + $0x80] sm:$0xff] %v329_v42  ;;  %362 = vst [vmem:[%s608_s25 + $0x88] sm:$0xff] %v330_v43  ;;  %v501_v54 = vunpack.c.l.bf16 %v523_v41  ;;  %v502_v55 = vunpack.c.h.bf16 %v523_v41 }
  0x2a   : > { %363 = vst [vmem:[%s608_s25 + $0x90] sm:$0xff] %v331_v44  ;;  %364 = vst [vmem:[%s608_s25 + $0x98] sm:$0xff] %v332_v45  ;;  %v505_v56 = vunpack.c.l.bf16 %v524_v46  ;;  %v506_v57 = vunpack.c.h.bf16 %v524_v46  ;;  %v509_v58 = vunpack.c.l.bf16 %v525_v47  ;;  %v510_v59 = vunpack.c.h.bf16 %v525_v47 }
  0x2b   : > { %365 = vst [vmem:[%s608_s25 + $0xa0] sm:$0xff] %v333_v48  ;;  %366 = vst [vmem:[%s608_s25 + $0xa8] sm:$0xff] %v334_v49  ;;  %v266_v60 = vmul.f32 %v497_v52, %v581_v0  ;;  %v267_v61 = vmul.f32 %v498_v53, %v581_v0  ;;  %v268_v62 = vmul.f32 %v501_v54, %v581_v0 }
  0x2c   : > { %367 = vst [vmem:[%s608_s25 + $0xb0] sm:$0xff] %v335_v50  ;;  %368 = vst [vmem:[%s608_s25 + $0xb8] sm:$0xff] %v336_v51  ;;  %v269_v63 = vmul.f32 %v502_v55, %v581_v0  ;;  %v270_v1 = vmul.f32 %v505_v56, %v581_v0  ;;  %v271_v2 = vmul.f32 %v506_v57, %v581_v0 }
  0x2d   : > { %v272_v3 = vmul.f32 %v509_v58, %v581_v0  ;;  %v273_v4 = vmul.f32 %v510_v59, %v581_v0  ;;  %v305_v5 = vadd.f32 %v590_v9, %v266_v60  ;;  %v306_v6 = vadd.f32 %v590_v9, %v267_v61 }
  0x2e   : > { %v307_v7 = vadd.f32 %v590_v9, %v268_v62  ;;  %v308_v8 = vadd.f32 %v590_v9, %v269_v63  ;;  %v309_v10 = vadd.f32 %v590_v9, %v270_v1  ;;  %v310_v11 = vadd.f32 %v590_v9, %v271_v2 }
  0x2f   : > { %v311_v0 = vadd.f32 %v590_v9, %v272_v3  ;;  %v312_v12 = vadd.f32 %v590_v9, %v273_v4  ;;  %v337_v13 = vmax.f32 %v305_v5, 0.0  ;;  %v338_v14 = vmax.f32 %v306_v6, 0.0 }
  0x30   : > { %v339_v15 = vmax.f32 %v307_v7, 0.0  ;;  %v340_v16 = vmax.f32 %v308_v8, 0.0  ;;  %v341_v17 = vmax.f32 %v309_v10, 0.0  ;;  %v342_v18 = vmax.f32 %v310_v11, 0.0 }
  0x31   : > { %v343_v19 = vmax.f32 %v311_v0, 0.0  ;;  %v344_v20 = vmax.f32 %v312_v12, 0.0  ;;  %369 = vst [vmem:[%s608_s25 + $0xc0] sm:$0xff] %v337_v13  ;;  %370 = vst [vmem:[%s608_s25 + $0xc8] sm:$0xff] %v338_v14 }
  0x32   : > { %371 = vst [vmem:[%s608_s25 + $0xd0] sm:$0xff] %v339_v15  ;;  %372 = vst [vmem:[%s608_s25 + $0xd8] sm:$0xff] %v340_v16 }
  0x33   : > { %373 = vst [vmem:[%s608_s25 + $0xe0] sm:$0xff] %v341_v17  ;;  %374 = vst [vmem:[%s608_s25 + $0xe8] sm:$0xff] %v342_v18 }
  0x34   : > { %375 = vst [vmem:[%s608_s25 + $0xf0] sm:$0xff] %v343_v19  ;;  %376 = vst [vmem:[%s608_s25 + $0xf8] sm:$0xff] %v344_v20 }
  0x35 PF: > { %s13_s12 = sadd.s32 1, %s540_s12  }
  0x36   : > { %p10_p4 = scmp.ge.s32.totalorder %s13_s12, 4  }
  0x38   :  { %12 = sbr.rel (!%p10_p4) target bundleno = 1 (0x1), region = 62 }

// kernel: _lambda_.3
= control target key start
LH: loop header
LB: loop body
LE: loop exit
PB: predicated region body
PF: predicated region fallthrough
CT: control target
= control target key end

     0   :  { %s4094_s24 = smov 0   ;;  %s5218_s0 = inlined_call_operand.vmem [shape: bf16[2,16,16,128], index: 0, kind: input, shape index: {}]   ;;  %s5219_s1 = inlined_call_operand.vmem [shape: bf16[1152,128], index: 1, kind: input, shape index: {}]   ;;  %s5220_s2 = inlined_call_operand.vmem [shape: f32[1,128], index: 2, kind: input, shape index: {}, may-alias: {2,4}]   ;;  %s5221_s3 = inlined_call_operand.vmem [shape: f32[1,128], index: 3, kind: input, shape index: {}]   ;;  %s5222_s4 = inlined_call_operand.vmem [shape: f32[1,128], index: 4, kind: input, shape index: {}, may-alias: {2,4}]   ;;  %s5223_s5 = inlined_call_operand.vmem [shape: bf16[2,16,16,128], index: 5, kind: output, shape index: {0}]   ;;  %s5224_s6 = inlined_call_operand.vmem [shape: f32[2,1,128], index: 6, kind: output, shape index: {1}]   ;;  %s5225_s7 = inlined_call_operand.vmem [shape: f32[2,1,128], index: 7, kind: output, shape index: {2}]  }
   0x1 LB: > { %s3102_s2 = sadd.s32 4294967295, %s4051_s24   ;;  %p3106_p0 = scmp.ge.s32.totalorder %s4051_s24, 1  ;;  %s4051_s24 = sphi %s4094_s24, %s18_s24  }
   0x2   : > { %p242_p1 = scmp.lt.s32.totalorder %s4051_s24, 3 }
   0x4   : > { %p243_p2 = pnand %p3106_p0, %p242_p1 }
   0x5   : > { %v3927_v0 = vld [vmem:[%s5219_s1 + $0x40] sm:$0xff] (!%p243_p2)   ;;  %v4053_v2 = vmov (!%p243_p2), 0   ;;  %v3929_v3 = vld [vmem:[%s5219_s1 + $0x48] sm:$0xff] (!%p243_p2)   ;;  %v3931_v5 = vld [vmem:[%s5219_s1 + $0x50] sm:$0xff] (!%p243_p2)   ;;  %p280_p3 = scmp.lt.s32.totalorder (!%p243_p2), %s3102_s2, 1  ;;  %vm707_vm0 = vcmask (!%p243_p2), 1043456  }
   0x6   : > { %246 = sbr.rel (%p243_p2) target bundleno = 583 (0x247), region = 40  ;;  %v3928_v1 = vld [vmem:[%s5219_s1] sm:$0xff] (!%p243_p2)   ;;  %329 = vst [vmem:[#allocation2] sm:$0xf] (!%p243_p2), %v4053_v2  ;;  %330 = vst [vmem:[#allocation2 + $0x4] sm:$0xf] (!%p243_p2), %v4053_v2  ;;  %3382 = vmatprep.subr.bf16.mxu0 (!%p243_p2), %v3927_v0  ;;  %3902 = vmatprep.subr.bf16.mxu1 (!%p243_p2), %v3927_v0 }
   0x7   : > { %331 = vst [vmem:[#allocation2 + $0x8] sm:$0x1] (!%p243_p2), %v4053_v2  ;;  %332 = vst [vmem:[#allocation2 + $0xc] sm:$0xf] (!%p243_p2), %v4053_v2  ;;  %3383 = vmatpush3.bf16.msra.mxu0 (!%p243_p2), %v3928_v1  ;;  %3910 = vmatpush3.bf16.msra.mxu1 (!%p243_p2), %v3928_v1  ;;  %v3930_v4 = vld [vmem:[%s5219_s1 + $0x8] sm:$0xff] (!%p243_p2)   ;;  %v3932_v6 = vld [vmem:[%s5219_s1 + $0x10] sm:$0xff] (!%p243_p2)  }
   0x8   : > { %333 = vst [vmem:[#allocation2 + $0x10] sm:$0xf] (!%p243_p2), %v4053_v2  ;;  %334 = vst [vmem:[#allocation2 + $0x14] sm:$0x1] (!%p243_p2), %v4053_v2  ;;  %3384 = vmatprep.subr.bf16.mxu0 (!%p243_p2), %v3929_v3  ;;  %3903 = vmatprep.subr.bf16.mxu1 (!%p243_p2), %v3929_v3  ;;  %v3933_v7 = vld [vmem:[%s5219_s1 + $0x58] sm:$0xff] (!%p243_p2)   ;;  %v3935_v9 = vld [vmem:[%s5219_s1 + $0x60] sm:$0xff] (!%p243_p2)  }
   0x9   : > { %335 = vst [vmem:[#allocation2 + $0x18] sm:$0xf] (!%p243_p2), %v4053_v2  ;;  %336 = vst [vmem:[#allocation2 + $0x1c] sm:$0xf] (!%p243_p2), %v4053_v2  ;;  %v3934_v8 = vld [vmem:[%s5219_s1 + $0x18] sm:$0xff] (!%p243_p2)   ;;  %v3936_v10 = vld [vmem:[%s5219_s1 + $0x20] sm:$0xff] (!%p243_p2)  }
   0xa   : > { %337 = vst [vmem:[#allocation2 + $0x20] sm:$0x1] (!%p243_p2), %v4053_v2  ;;  %338 = vst [vmem:[#allocation2 + $0x24] sm:$0xf] (!%p243_p2), %v4053_v2  ;;  %v3937_v11 = vld [vmem:[%s5219_s1 + $0x68] sm:$0xff] (!%p243_p2)   ;;  %vm714_vm1 = vcmask (!%p243_p2), 1040384  }
   0xb   : > { %339 = vst [vmem:[#allocation2 + $0x28] sm:$0xf] (!%p243_p2), %v4053_v2  ;;  %340 = vst [vmem:[#allocation2 + $0x2c] sm:$0x1] (!%p243_p2), %v4053_v2  ;;  %3385 = vmatpush3.bf16.msra.mxu0 (!%p243_p2), %v3930_v4  ;;  %3911 = vmatpush3.bf16.msra.mxu1 (!%p243_p2), %v3930_v4  ;;  %vm1231_vm2 = vcmask (!%p243_p2), 1046528   ;;  %v3938_v16 = vld [vmem:[%s5219_s1 + $0x28] sm:$0xff] (!%p243_p2)  }
   0xc   : > { %341 = vst [vmem:[#allocation2 + $0x30] sm:$0xf] (!%p243_p2), %v4053_v2  ;;  %342 = vst [vmem:[#allocation2 + $0x34] sm:$0xf] (!%p243_p2), %v4053_v2  ;;  %3386 = vmatprep.subr.bf16.mxu0 (!%p243_p2), %v3931_v5  ;;  %3904 = vmatprep.subr.bf16.mxu1 (!%p243_p2), %v3931_v5  ;;  %vm1022_vm3 = vsmask.f32 (!%p243_p2), 7424 }
   0xd   : > { %343 = vst [vmem:[#allocation2 + $0x38] sm:$0x1] %v4053_v2  ;;  %344 = vst [vmem:[#allocation2 + $0x3c] sm:$0xf] %v4053_v2  ;;  %s5233_s2 = smov (!%p280_p3, %s3102_s2), 1  ;;  %v4149_v12 = vld [vmem:[#allocation2] sm:$0xff]  }
   0xe   : > { %345 = vst [vmem:[#allocation2 + $0x40] sm:$0xf] %v4053_v2  ;;  %346 = vst [vmem:[#allocation2 + $0x44] sm:$0x1] %v4053_v2  ;;  %s3253_s18 = sshll.u32 %s5233_s2, 7  ;;  %v1024_v17 = vshrl.u32 %v4149_v12, 16  ;;  %s292_s17 = scalar_lea.vmem %s5224_s6, %s5233_s2 }
   0xf   : > { %347 = vst [vmem:[#allocation2 + $0x48] sm:$0xf] %v4053_v2  ;;  %348 = vst [vmem:[#allocation2 + $0x4c] sm:$0xf] %v4053_v2  ;;  %3387 = vmatpush3.bf16.msra.mxu0 %v3932_v6  ;;  %3912 = vmatpush3.bf16.msra.mxu1 %v3932_v6  ;;  %s4147_s4 = scalar_lea.vmem %s5218_s0, %s3253_s18  ;;  %vm383_vm4 = vsmask.f32 256  ;;  %s5139_s15 = scalar_lea.vmem %s5223_s5, %s3253_s18 }
  0x10   : > { %349 = vst [vmem:[#allocation2 + $0x50] sm:$0x1] %v4053_v2  ;;  %350 = vst [vmem:[#allocation2 + $0x54] sm:$0xf] %v4053_v2  ;;  %3388 = vmatprep.subr.bf16.mxu0 %v3933_v7  ;;  %3905 = vmatprep.subr.bf16.mxu1 %v3933_v7  ;;  %v319_v14 = vld [vmem:[%s4147_s4 + $0x58] sm:$0xf]  ;;  %s295_s21 = scalar_lea.vmem %s5225_s7, %s5233_s2 }
  0x11   : > { %351 = vst [vmem:[#allocation2 + $0x58] sm:$0xf] %v4053_v2  ;;  %352 = vst [vmem:[#allocation2 + $0x5c] sm:$0x1] %v4053_v2  ;;  %v320_v15 = vld [vmem:[%s4147_s4 + $0x5c] sm:$0xf] }
  0x12   : > { %353 = vst [vmem:[#allocation2 + $0x60] sm:$0xf] %v4053_v2  ;;  %354 = vst [vmem:[#allocation2 + $0x64] sm:$0xf] %v4053_v2  ;;  %v1026_v18 = vshll.u32 %v4149_v12, 16  ;;  %v3939_v21 = vld [vmem:[%s5219_s1 + $0x70] sm:$0xff]  }
  0x13   : > { %355 = vst [vmem:[#allocation2 + $0x68] sm:$0x1] %v4053_v2  ;;  %356 = vst [vmem:[#allocation2 + $0x6c] sm:$0xf] %v4053_v2  ;;  %3389 = vmatpush3.bf16.msra.mxu0 %v3934_v8  ;;  %3913 = vmatpush3.bf16.msra.mxu1 %v3934_v8  ;;  %vm384_vm5 = vsmask.f32 4368 }
  0x14   : > { %357 = vst [vmem:[#allocation2 + $0x70] sm:$0xf] %v4053_v2  ;;  %358 = vst [vmem:[#allocation2 + $0x74] sm:$0x1] %v4053_v2  ;;  %3390 = vmatprep.subr.bf16.mxu0 %v3935_v9  ;;  %3906 = vmatprep.subr.bf16.mxu1 %v3935_v9  ;;  %v574_v22 = vshrl.u32 %v319_v14, 16  ;;  %v577_v23 = vshll.u32 %v319_v14, 16 }
  0x15   : > { %359 = vst [vmem:[#allocation2 + $0x78] sm:$0xf] %v4053_v2  ;;  %360 = vst [vmem:[#allocation2 + $0x7c] sm:$0xf] %v4053_v2  ;;  %v582_v24 = vshrl.u32 %v320_v15, 16  ;;  %v3940_v26 = vld [vmem:[%s5219_s1 + $0x30] sm:$0xff]  }
  0x16   : > { %361 = vst [vmem:[#allocation2 + $0x80] sm:$0x1] %v4053_v2  ;;  %362 = vst [vmem:[#allocation2 + $0x84] sm:$0xf] %v4053_v2  ;;  %v1028_v27 = vrot.slane %v1026_v18, 1  ;;  %v585_v30 = vshll.u32 %v320_v15, 16 }
  0x17   : > { %363 = vst [vmem:[#allocation2 + $0x88] sm:$0xf] %v4053_v2  ;;  %364 = vst [vmem:[#allocation2 + $0x8c] sm:$0x1] %v4053_v2  ;;  %3391 = vmatpush3.bf16.msra.mxu0 %v3936_v10  ;;  %3914 = vmatpush3.bf16.msra.mxu1 %v3936_v10  ;;  %vm708_vm8 = vsmask.f32 7938 }
  0x18   : > { %365 = vst [vmem:[#allocation2 + $0x90] sm:$0xf] %v4053_v2  ;;  %366 = vst [vmem:[#allocation2 + $0x94] sm:$0xf] %v4053_v2  ;;  %3392 = vmatprep.subr.bf16.mxu0 %v3937_v11  ;;  %3907 = vmatprep.subr.bf16.mxu1 %v3937_v11  ;;  %v3941_v32 = vld [vmem:[%s5219_s1 + $0x78] sm:$0xff]   ;;  %v576_v33 = vrot.slane %v574_v22, 7  ;;  %v1029_v37 = vor.u32 %v1028_v27, %v1024_v17 }
  0x19   : > { %367 = vst [vmem:[#allocation2 + $0x98] sm:$0x1] %v4053_v2  ;;  %368 = vst [vmem:[#allocation2 + $0x9c] sm:$0xf] %v4053_v2  ;;  %v584_v34 = vrot.slane %v582_v24, 7  ;;  %v1232_v43 = vrot.slane %v4149_v12, 1 }
  0x1a   : > { %369 = vst [vmem:[#allocation2 + $0xa0] sm:$0xf] %v4053_v2  ;;  %370 = vst [vmem:[#allocation2 + $0xa4] sm:$0x1] %v4053_v2  ;;  %v579_v38 = vor.u32 %v577_v23, %v576_v33  ;;  %v580_v39 = vrot.slane %v576_v33, 4  ;;  %v3942_v44 = vld [vmem:[%s5219_s1 + $0x38] sm:$0xff]  }
  0x1b   : > { %371 = vst [vmem:[#allocation2 + $0xa8] sm:$0xf] %v4053_v2  ;;  %372 = vst [vmem:[#allocation2 + $0xac] sm:$0xf] %v4053_v2  ;;  %3393 = vmatpush3.bf16.msra.mxu0 %v3938_v16  ;;  %3915 = vmatpush3.bf16.msra.mxu1 %v3938_v16  ;;  %v587_v40 = vor.u32 %v585_v30, %v584_v34  ;;  %v589_v41 = vrot.slane %v584_v34, 4  ;;  %v3947_v48 = vld [vmem:[%s5219_s1 + $0xc0] sm:$0xff]  }
  0x1c   : > { %373 = vst [vmem:[#allocation2 + $0xb0] sm:$0x1] %v4053_v2  ;;  %374 = vst [vmem:[#allocation2 + $0xb4] sm:$0xf] %v4053_v2  ;;  %3394 = vmatprep.subr.bf16.mxu0 %v3939_v21  ;;  %3908 = vmatprep.subr.bf16.mxu1 %v3939_v21  ;;  %v3948_v50 = vld [vmem:[%s5219_s1 + $0x140] sm:$0xff]   ;;  %v3962_v33 = vld [vmem:[%s5219_s1 + $0x108] sm:$0xff]  }
  0x1d   : > { %375 = vst [vmem:[#allocation2 + $0xb8] sm:$0xf] %v4053_v2  ;;  %376 = vst [vmem:[#allocation2 + $0xbc] sm:$0x1] %v4053_v2  ;;  %v297_v51 = vld [vmem:[%s4147_s4] sm:$0xf] }
  0x1e   : > { %377 = vst [vmem:[#allocation2 + $0xc0] sm:$0xf] %v4053_v2  ;;  %378 = vst [vmem:[#allocation2 + $0xc4] sm:$0xf] %v4053_v2  ;;  %v298_v52 = vld [vmem:[%s4147_s4 + $0x4] sm:$0xf] }
  0x1f   : > { %379 = vst [vmem:[#allocation2 + $0xc8] sm:$0x1] %v4053_v2  ;;  %380 = vst [vmem:[#allocation2 + $0xcc] sm:$0xf] %v4053_v2  ;;  %v789_v31 = vld [vmem:[#allocation2 + $0x90] sm:$0xf]  ;;  %3395 = vmatpush3.bf16.msra.mxu0 %v3940_v26  ;;  %3916 = vmatpush3.bf16.msra.mxu1 %v3940_v26 }
  0x20   : > { %381 = vst [vmem:[#allocation2 + $0xd0] sm:$0xf] %v4053_v2  ;;  %382 = vst [vmem:[#allocation2 + $0xd4] sm:$0x1] %v4053_v2  ;;  %v793_v36 = vld [vmem:[#allocation2 + $0x98] sm:$0x1]  ;;  %3396 = vmatprep.subr.bf16.mxu0 %v3941_v32  ;;  %3909 = vmatprep.subr.bf16.mxu1 %v3941_v32 }
  0x21   : > { %v3944_v13 = vld [vmem:[#allocation2 + $0x8] ss:$0 sps:$4 sm:$0x11]   ;;  %vm4163_vm6 = vmand %vm714_vm1, %vm383_vm4  ;;  %v387_v53 = vshrl.u32 %v297_v51, 16  ;;  %v390_v54 = vshll.u32 %v297_v51, 16  ;;  %v395_v55 = vshrl.u32 %v298_v52, 16 }
  0x22   : > { %v1031_v19 = vshll.u32 %v3944_v13, 16  ;;  %v1233_v20 = vrot.slane %v3944_v13, 1  ;;  %vm4171_vm7 = vmor %vm383_vm4, %vm384_vm5  ;;  %v794_v47 = vsel %vm4163_vm6, %v589_v41, %v793_v36  ;;  %v398_v56 = vshll.u32 %v298_v52, 16  ;;  %v710_v57 = vld [vmem:[#allocation2 + $0xc] sm:$0xf]  ;;  %v3950_v60 = vld [vmem:[%s5219_s1 + $0x100] sm:$0xff]  }
  0x23   : > { %vm4179_vm9 = vmand %vm707_vm0, %vm708_vm8  ;;  %v588_v45 = vsel %vm4171_vm7, %v580_v39, %v587_v40  ;;  %795 = vst [vmem:[#allocation2 + $0x98] sm:$0x1] %v794_v47  ;;  %v321_v58 = vld [vmem:[%s4147_s4 + $0x60] sm:$0xf]  ;;  %v322_v59 = vld [vmem:[%s4147_s4 + $0x64] sm:$0xf]  ;;  %3397 = vmatpush3.bf16.msra.mxu0 %v3942_v44  ;;  %3917 = vmatpush3.bf16.msra.mxu1 %v3942_v44 }
  0x24   : > { %v1033_v28 = vrot.slane %v1031_v19, 1  ;;  %v790_v46 = vsel %vm4179_vm9, %v579_v38, %v789_v31  ;;  %792 = vst [vmem:[#allocation2 + $0x94] sm:$0xf] %v588_v45  ;;  %v4198_v49 = vsel %vm1231_vm2, %v1232_v43, %v1233_v20  ;;  %v389_v61 = vrot.slane %v387_v53, 7  ;;  %v716_v63 = vld [vmem:[#allocation2 + $0x14] sm:$0x1]  ;;  %3494 = vmatprep.subr.bf16.mxu1 %v3947_v48  ;;  %3606 = vmatprep.subr.bf16.mxu0 %v3948_v50 }
  0x25   : > { %791 = vst [vmem:[#allocation2 + $0x90] sm:$0xf] %v790_v46  ;;  %v397_v62 = vrot.slane %v395_v55, 7  ;;  %v591_v0 = vshrl.u32 %v321_v58, 16  ;;  %v594_v1 = vshll.u32 %v321_v58, 16  ;;  %v599_v2 = vshrl.u32 %v322_v59, 16 }
  0x26   : > { %v1034_v42 = vsel %vm1022_vm3, %v1029_v37, %v1033_v28  ;;  %v602_v3 = vshll.u32 %v322_v59, 16  ;;  %v392_v4 = vor.u32 %v390_v54, %v389_v61  ;;  %v393_v5 = vrot.slane %v389_v61, 4  ;;  %v796_v8 = vld [vmem:[#allocation2 + $0x9c] sm:$0xf]  ;;  %v800_v16 = vld [vmem:[#allocation2 + $0xa4] sm:$0x1] }
  0x27   : > { %1956 = vmatprep.mubr.bf16.mxu0 %v1034_v42  ;;  %v400_v6 = vor.u32 %v398_v56, %v397_v62  ;;  %v402_v7 = vrot.slane %v397_v62, 4  ;;  %v593_v15 = vrot.slane %v591_v0, 7  ;;  %v601_v17 = vrot.slane %v599_v2, 7  ;;  %v299_v34 = vld [vmem:[%s4147_s4 + $0x8] sm:$0xf]  ;;  %v3949_v37 = vld [vmem:[%s5219_s1 + $0x80] sm:$0xff]  }
  0x28   : > { %1957 = vmatmul.mubr.bf16.vlgmr.msra.gmra.mrb[0].mxu0 %v4149_v12  ;;  %v711_v13 = vsel %vm4179_vm9, %v392_v4, %v710_v57  ;;  %v3960_v12 = vld [vmem:[%s5219_s1 + $0x148] sm:$0xff]   ;;  %v404_v39 = vshrl.u32 %v299_v34, 16  ;;  %v407_v40 = vshll.u32 %v299_v34, 16  ;;  %v719_v48 = vld [vmem:[#allocation2 + $0x18] sm:$0xf]  ;;  %v3957_v58 = vld [vmem:[%s5219_s1 + $0xd0] sm:$0xff]  }
  0x29   : > { %3607 = vmatpush3.bf16.msra.mxu0 %v3950_v60  ;;  %v401_v11 = vsel %vm4171_vm7, %v393_v5, %v400_v6  ;;  %v717_v14 = vsel %vm4163_vm6, %v402_v7, %v716_v63  ;;  %712 = vst [vmem:[#allocation2 + $0xc] sm:$0xf] %v711_v13  ;;  %v596_v21 = vor.u32 %v594_v1, %v593_v15  ;;  %v597_v22 = vrot.slane %v593_v15, 4  ;;  %v300_v36 = vld [vmem:[%s4147_s4 + $0xc] sm:$0xf]  ;;  %v3958_v1 = vld [vmem:[%s5219_s1 + $0x90] sm:$0xff]  }
  0x2a   : > { %v3946_v10 = vld [vmem:[#allocation2 + $0x98] ss:$0 sps:$4 sm:$0x11]   ;;  %713 = vst [vmem:[#allocation2 + $0x10] sm:$0xf] %v401_v11  ;;  %v604_v23 = vor.u32 %v602_v3, %v601_v17  ;;  %v606_v24 = vrot.slane %v601_v17, 4  ;;  %3608 = vmatprep.subr.bf16.mxu0 %v3960_v12 }
  0x2b   : > { %718 = vst [vmem:[#allocation2 + $0x14] sm:$0x1] %v717_v14  ;;  %v1175_v20 = vshll.u32 %v3946_v10, 16  ;;  %v797_v28 = vsel %vm4179_vm9, %v596_v21, %v796_v8  ;;  %v3951_v38 = vld [vmem:[%s5219_s1 + $0xc8] sm:$0xff]   ;;  %v412_v41 = vshrl.u32 %v300_v36, 16  ;;  %v415_v42 = vshll.u32 %v300_v36, 16 }
  0x2c   : > { %v3945_v9 = vld [vmem:[#allocation2 + $0x90] sm:$0xff]   ;;  %v605_v30 = vsel %vm4171_vm7, %v597_v22, %v604_v23  ;;  %798 = vst [vmem:[#allocation2 + $0x9c] sm:$0xf] %v797_v28  ;;  %v801_v31 = vsel %vm4163_vm6, %v606_v24, %v800_v16  ;;  %v406_v46 = vrot.slane %v404_v39, 7  ;;  %v723_v50 = vld [vmem:[#allocation2 + $0x20] sm:$0x1] }
  0x2d   : > { %v1168_v18 = vshrl.u32 %v3945_v9, 16  ;;  %v1170_v19 = vshll.u32 %v3945_v9, 16  ;;  %v1177_v27 = vrot.slane %v1175_v20, 1  ;;  %799 = vst [vmem:[#allocation2 + $0xa0] sm:$0xf] %v605_v30  ;;  %3609 = vmatpush3.bf16.msra.mxu0 %v3962_v33  ;;  %v414_v47 = vrot.slane %v412_v41, 7 }
  0x2e   : > { %802 = vst [vmem:[#allocation2 + $0xa4] sm:$0x1] %v801_v31  ;;  %v323_v51 = vld [vmem:[%s4147_s4 + $0x68] sm:$0xf]  ;;  %v409_v56 = vor.u32 %v407_v40, %v406_v46  ;;  %v324_v57 = vld [vmem:[%s4147_s4 + $0x6c] sm:$0xf] }
  0x2f   : > { %v1172_v26 = vrot.slane %v1170_v19, 1  ;;  %v3952_v52 = vld [vmem:[%s5219_s1 + $0x88] sm:$0xff]   ;;  %v410_v59 = vrot.slane %v406_v46, 4  ;;  %v417_v60 = vor.u32 %v415_v42, %v414_v47  ;;  %v419_v61 = vrot.slane %v414_v47, 4  ;;  %v3959_v17 = vld [vmem:[%s5219_s1 + $0xd8] sm:$0xff]   ;;  %v3967_v31 = vld [vmem:[%s5219_s1 + $0xe0] sm:$0xff]  }
  0x30   : > { %v608_v62 = vshrl.u32 %v323_v51, 16  ;;  %v720_v2 = vsel %vm4179_vm9, %v409_v56, %v719_v48  ;;  %v611_v8 = vshll.u32 %v323_v51, 16  ;;  %v616_v10 = vshrl.u32 %v324_v57, 16  ;;  %v803_v13 = vld [vmem:[#allocation2 + $0xa8] sm:$0xf] }
  0x31   : > { %v1173_v32 = vor.u32 %v1172_v26, %v1168_v18  ;;  %v4241_v44 = vld [vmem:[#allocation2 + $0xc] sm:$0xff]   ;;  %v418_v5 = vsel %vm4171_vm7, %v410_v59, %v417_v60  ;;  %721 = vst [vmem:[#allocation2 + $0x18] sm:$0xf] %v720_v2  ;;  %v724_v6 = vsel %vm4163_vm6, %v419_v61, %v723_v50  ;;  %v619_v11 = vshll.u32 %v324_v57, 16  ;;  %v3961_v26 = vld [vmem:[%s5219_s1 + $0x98] sm:$0xff]  }
  0x32   : > { %v4243_v45 = vld [vmem:[#allocation2 + $0x14] ss:$0 sps:$4 sm:$0x11]   ;;  %v1036_v53 = vshrl.u32 %v4241_v44, 16  ;;  %v1038_v54 = vshll.u32 %v4241_v44, 16  ;;  %v610_v7 = vrot.slane %v608_v62, 7 }
  0x33   : > { %v4238_v43 = vsel %vm1022_vm3, %v1173_v32, %v1177_v27  ;;  %v1043_v55 = vshll.u32 %v4243_v45, 16  ;;  %722 = vst [vmem:[#allocation2 + $0x1c] sm:$0xf] %v418_v5  ;;  %725 = vst [vmem:[#allocation2 + $0x20] sm:$0x1] %v724_v6  ;;  %v618_v21 = vrot.slane %v616_v10, 7 }
  0x34   : > { %2052 = vmatprep.mubr.bf16.mxu1 %v4238_v43  ;;  %v1040_v63 = vrot.slane %v1038_v54, 1  ;;  %v3955_v3 = vld [vmem:[#allocation2 + $0x9c] sm:$0xff]   ;;  %v613_v12 = vor.u32 %v611_v8, %v610_v7  ;;  %v807_v18 = vld [vmem:[#allocation2 + $0xb0] sm:$0x1]  ;;  %v614_v20 = vrot.slane %v610_v7, 4  ;;  %v3969_v48 = vld [vmem:[%s5219_s1 + $0xe8] sm:$0xff]  }
  0x35   : > { %2053 = vmatmul.mubr.bf16.vlgmr.msra.gmra.mrb[0].mxu1 %v3945_v9  ;;  %v1045_v0 = vrot.slane %v1043_v55, 1  ;;  %v3956_v4 = vld [vmem:[#allocation2 + $0xa4] ss:$0 sps:$4 sm:$0x11]   ;;  %v1180_v14 = vshrl.u32 %v3955_v3, 16  ;;  %v1182_v15 = vshll.u32 %v3955_v3, 16  ;;  %v621_v27 = vor.u32 %v619_v11, %v618_v21 }
  0x36   : > { %3495 = vmatpush3.bf16.msra.mxu1 %v3949_v37  ;;  %v1041_v9 = vor.u32 %v1040_v63, %v1036_v53  ;;  %v1187_v16 = vshll.u32 %v3956_v4, 16  ;;  %v804_v24 = vsel %vm4179_vm9, %v613_v12, %v803_v13  ;;  %v623_v28 = vrot.slane %v618_v21, 4  ;;  %v301_v32 = vld [vmem:[%s4147_s4 + $0x10] sm:$0xf]  ;;  %v302_v33 = vld [vmem:[%s4147_s4 + $0x14] sm:$0xf] }
  0x37   : > { %3496 = vmatprep.subr.bf16.mxu1 %v3951_v38  ;;  %v1184_v22 = vrot.slane %v1182_v15, 1  ;;  %805 = vst [vmem:[#allocation2 + $0xa8] sm:$0xf] %v804_v24  ;;  %v622_v34 = vsel %vm4171_vm7, %v614_v20, %v621_v27  ;;  %v3968_v37 = vld [vmem:[%s5219_s1 + $0xa0] sm:$0xff]   ;;  %v421_v38 = vshrl.u32 %v301_v32, 16  ;;  %v424_v39 = vshll.u32 %v301_v32, 16 }
  0x38   : > { %v4269_v19 = vsel %vm1022_vm3, %v1041_v9, %v1045_v0  ;;  %v1189_v23 = vrot.slane %v1187_v16, 1  ;;  %v808_v36 = vsel %vm4163_vm6, %v623_v28, %v807_v18  ;;  %806 = vst [vmem:[#allocation2 + $0xac] sm:$0xf] %v622_v34  ;;  %v429_v42 = vshrl.u32 %v302_v33, 16  ;;  %v726_v46 = vld [vmem:[#allocation2 + $0x24] sm:$0xf] }
  0x39   : > { %1964 = vmatprep.mubr.bf16.mxu0 %v4269_v19  ;;  %v1185_v30 = vor.u32 %v1184_v22, %v1180_v14  ;;  %809 = vst [vmem:[#allocation2 + $0xb0] sm:$0x1] %v808_v36  ;;  %v423_v50 = vrot.slane %v421_v38, 7  ;;  %v432_v51 = vshll.u32 %v302_v33, 16  ;;  %v325_v56 = vld [vmem:[%s4147_s4 + $0x70] sm:$0xf] }
  0x3a   : > { %3497 = vmatpush3.bf16.msra.mxu1 %v3952_v52  ;;  %1965 = vmatmul.mubr.bf16.gmra.mrb[4].mxu0 %v4241_v44  ;;  %v4293_v41 = vld [vmem:[#allocation2 + $0x18] sm:$0xff]   ;;  %v4296_v47 = vld [vmem:[#allocation2 + $0x20] ss:$0 sps:$4 sm:$0x11]   ;;  %v730_v52 = vld [vmem:[#allocation2 + $0x2c] sm:$0x1] }
  0x3b   : > { %3498 = vmatprep.subr.bf16.mxu1 %v3957_v58  ;;  %v4291_v40 = vsel %vm1022_vm3, %v1185_v30, %v1189_v23  ;;  %v1048_v53 = vshrl.u32 %v4293_v41, 16  ;;  %v1050_v54 = vshll.u32 %v4293_v41, 16  ;;  %v431_v55 = vrot.slane %v429_v42, 7  ;;  %v3976_v57 = vld [vmem:[%s5219_s1 + $0x150] sm:$0xff]   ;;  %v3970_v5 = vld [vmem:[%s5219_s1 + $0xa8] sm:$0xff]   ;;  %v3979_v24 = vld [vmem:[%s5219_s1 + $0xf8] sm:$0xff]  }
  0x3c   : > { %2060 = vmatprep.mubr.bf16.mxu1 %v4291_v40  ;;  %v1055_v58 = vshll.u32 %v4296_v47, 16  ;;  %v426_v59 = vor.u32 %v424_v39, %v423_v50  ;;  %v427_v60 = vrot.slane %v423_v50, 4  ;;  %v326_v61 = vld [vmem:[%s4147_s4 + $0x74] sm:$0xf]  ;;  %v625_v62 = vshrl.u32 %v325_v56, 16  ;;  %3610 = vmatprep.subr.bf16.mxu0 %v3976_v57  ;;  %v3980_v38 = vld [vmem:[%s5219_s1 + $0xb8] sm:$0xff]  }
  0x3d   : > { %2061 = vmatmul.mubr.bf16.gmra.mrb[4].mxu1 %v3955_v3  ;;  %v1052_v63 = vrot.slane %v1050_v54, 1  ;;  %v434_v0 = vor.u32 %v432_v51, %v431_v55  ;;  %v628_v2 = vshll.u32 %v325_v56, 16  ;;  %v3978_v3 = vld [vmem:[%s5219_s1 + $0x110] sm:$0xff]   ;;  %v633_v8 = vshrl.u32 %v326_v61, 16  ;;  %v814_v18 = vld [vmem:[#allocation2 + $0xbc] sm:$0x1] }
  0x3e   : > { %3499 = vmatpush3.bf16.msra.mxu1 %v3958_v1  ;;  %v436_v1 = vrot.slane %v431_v55, 4  ;;  %v1057_v4 = vrot.slane %v1055_v58, 1  ;;  %v727_v6 = vsel %vm4179_vm9, %v426_v59, %v726_v46  ;;  %v627_v7 = vrot.slane %v625_v62, 7  ;;  %v810_v14 = vld [vmem:[#allocation2 + $0xb4] sm:$0xf]  ;;  %3611 = vmatpush3.bf16.msra.mxu0 %v3978_v3  ;;  %v3983_v42 = vld [vmem:[%s5219_s1 + $0x1c0] sm:$0xff]  }
  0x3f   : > { %3500 = vmatprep.subr.bf16.mxu1 %v3959_v17  ;;  %v1053_v9 = vor.u32 %v1052_v63, %v1048_v53  ;;  %v435_v10 = vsel %vm4171_vm7, %v427_v60, %v434_v0  ;;  %728 = vst [vmem:[#allocation2 + $0x24] sm:$0xf] %v727_v6  ;;  %v636_v13 = vshll.u32 %v326_v61, 16  ;;  %v3975_v15 = vld [vmem:[%s5219_s1 + $0xf0] sm:$0xff]   ;;  %v3965_v16 = vld [vmem:[#allocation2 + $0xa8] sm:$0xff]   ;;  %v635_v23 = vrot.slane %v633_v8, 7 }
  0x40   : > { %v731_v11 = vsel %vm4163_vm6, %v436_v1, %v730_v52  ;;  %729 = vst [vmem:[#allocation2 + $0x28] sm:$0xf] %v435_v10  ;;  %v630_v17 = vor.u32 %v628_v2, %v627_v7  ;;  %v631_v12 = vrot.slane %v627_v7, 4  ;;  %v3977_v20 = vld [vmem:[%s5219_s1 + $0xb0] sm:$0xff]   ;;  %v1194_v27 = vshll.u32 %v3965_v16, 16  ;;  %v3985_v52 = vld [vmem:[%s5219_s1 + $0x158] sm:$0xff]  }
  0x41   : > { %732 = vst [vmem:[#allocation2 + $0x2c] sm:$0x1] %v731_v11  ;;  %v4328_v21 = vsel %vm1022_vm3, %v1053_v9, %v1057_v4  ;;  %v3966_v22 = vld [vmem:[#allocation2 + $0xb0] ss:$0 sps:$4 sm:$0x11]   ;;  %v640_v32 = vrot.slane %v635_v23, 4  ;;  %3612 = vmatprep.subr.bf16.mxu0 %v3985_v52 }
  0x42   : > { %3501 = vmatpush3.bf16.msra.mxu1 %v3961_v26  ;;  %1972 = vmatprep.mubr.bf16.mxu0 %v4328_v21  ;;  %v1192_v26 = vshrl.u32 %v3965_v16, 16  ;;  %v811_v28 = vsel %vm4179_vm9, %v630_v17, %v810_v14  ;;  %v1199_v30 = vshll.u32 %v3966_v22, 16  ;;  %v1196_v33 = vrot.slane %v1194_v27, 1  ;;  %v303_v51 = vld [vmem:[%s4147_s4 + $0x18] sm:$0xf]  ;;  %v3991_v27 = vld [vmem:[%s5219_s1 + $0x160] sm:$0xff]  }
  0x43   : > { %3502 = vmatprep.subr.bf16.mxu1 %v3967_v31  ;;  %1973 = vmatmul.mubr.bf16.gmra.mrb[8].mxu0 %v4293_v41  ;;  %v638_v31 = vor.u32 %v636_v13, %v635_v23  ;;  %812 = vst [vmem:[#allocation2 + $0xb4] sm:$0xf] %v811_v28  ;;  %v304_v55 = vld [vmem:[%s4147_s4 + $0x1c] sm:$0xf]  ;;  %v438_v56 = vshrl.u32 %v303_v51, 16  ;;  %v441_v57 = vshll.u32 %v303_v51, 16 }
  0x44   : > { %v1201_v34 = vrot.slane %v1199_v30, 1  ;;  %v1197_v39 = vor.u32 %v1196_v33, %v1192_v26  ;;  %v446_v59 = vshrl.u32 %v304_v55, 16  ;;  %v449_v60 = vshll.u32 %v304_v55, 16  ;;  %v3986_v61 = vld [vmem:[%s5219_s1 + $0x118] sm:$0xff]   ;;  %v733_v0 = vld [vmem:[#allocation2 + $0x30] sm:$0xf] }
  0x45   : > { %v639_v36 = vsel %vm4171_vm7, %v631_v12, %v638_v31  ;;  %v440_v63 = vrot.slane %v438_v56, 7  ;;  %v737_v1 = vld [vmem:[#allocation2 + $0x38] sm:$0x1]  ;;  %3613 = vmatpush3.bf16.msra.mxu0 %v3986_v61  ;;  %v306_v23 = vld [vmem:[%s4147_s4 + $0x24] sm:$0xf]  ;;  %v4019_v25 = vld [vmem:[%s5219_s1 + $0x208] sm:$0xff]  }
  0x46   : > { %3503 = vmatpush3.bf16.msra.mxu1 %v3968_v37  ;;  %v815_v37 = vsel %vm4163_vm6, %v640_v32, %v814_v18  ;;  %813 = vst [vmem:[#allocation2 + $0xb8] sm:$0xf] %v639_v36  ;;  %v448_v3 = vrot.slane %v446_v59, 7  ;;  %v463_v30 = vshrl.u32 %v306_v23, 16  ;;  %v466_v31 = vshll.u32 %v306_v23, 16  ;;  %3614 = vmatprep.subr.bf16.mxu0 %v3991_v27  ;;  %v3994_v27 = vld [vmem:[%s5219_s1 + $0x188] sm:$0xff]  }
  0x47   : > { %3504 = vmatprep.subr.bf16.mxu1 %v3969_v48  ;;  %816 = vst [vmem:[#allocation2 + $0xbc] sm:$0x1] %v815_v37  ;;  %v4347_v46 = vld [vmem:[#allocation2 + $0x24] sm:$0xff]   ;;  %v4350_v48 = vsel %vm1022_vm3, %v1197_v39, %v1201_v34  ;;  %v443_v6 = vor.u32 %v441_v57, %v440_v63  ;;  %v444_v7 = vrot.slane %v440_v63, 4  ;;  %v740_v32 = vld [vmem:[#allocation2 + $0x3c] sm:$0xf] }
  0x48   : > { %v4352_v50 = vld [vmem:[#allocation2 + $0x2c] ss:$0 sps:$4 sm:$0x11]   ;;  %2068 = vmatprep.mubr.bf16.mxu1 %v4350_v48  ;;  %v1060_v53 = vshrl.u32 %v4347_v46, 16  ;;  %v1062_v54 = vshll.u32 %v4347_v46, 16  ;;  %v451_v9 = vor.u32 %v449_v60, %v448_v3  ;;  %v453_v10 = vrot.slane %v448_v3, 4 }
  0x49   : > { %2069 = vmatmul.mubr.bf16.gmra.mrb[8].mxu1 %v3965_v16  ;;  %v1067_v58 = vshll.u32 %v4352_v50, 16  ;;  %v1235_v34 = vrot.slane %v4241_v44, 1  ;;  %v307_v36 = vld [vmem:[%s4147_s4 + $0x28] sm:$0xf]  ;;  %v308_v37 = vld [vmem:[%s4147_s4 + $0x2c] sm:$0xf] }
  0x4a   : > { %3505 = vmatpush3.bf16.msra.mxu1 %v3970_v5  ;;  %v1064_v62 = vrot.slane %v1062_v54, 1  ;;  %v452_v17 = vsel %vm4171_vm7, %v444_v7, %v451_v9  ;;  %v738_v12 = vsel %vm4163_vm6, %v453_v10, %v737_v1  ;;  %v465_v39 = vrot.slane %v463_v30, 7  ;;  %v747_v57 = vld [vmem:[#allocation2 + $0x48] sm:$0xf]  ;;  %v3984_v9 = vld [vmem:[%s5219_s1 + $0x180] sm:$0xff]  }
  0x4b   : > { %3506 = vmatprep.subr.bf16.mxu1 %v3975_v15  ;;  %v1069_v2 = vrot.slane %v1067_v58, 1  ;;  %v734_v15 = vsel %vm4179_vm9, %v443_v6, %v733_v0  ;;  %736 = vst [vmem:[#allocation2 + $0x34] sm:$0xf] %v452_v17  ;;  %739 = vst [vmem:[#allocation2 + $0x38] sm:$0x1] %v738_v12  ;;  %v472_v51 = vshrl.u32 %v307_v36, 16 }
  0x4c   : > { %v1065_v4 = vor.u32 %v1064_v62, %v1060_v53  ;;  %735 = vst [vmem:[#allocation2 + $0x30] sm:$0xf] %v734_v15  ;;  %v475_v52 = vshll.u32 %v307_v36, 16  ;;  %v480_v55 = vshrl.u32 %v308_v37, 16  ;;  %v483_v56 = vshll.u32 %v308_v37, 16  ;;  %v3993_v58 = vld [vmem:[%s5219_s1 + $0x120] sm:$0xff]  }
  0x4d   : > { %v3973_v5 = vld [vmem:[#allocation2 + $0xb4] sm:$0xff]   ;;  %v468_v59 = vor.u32 %v466_v31, %v465_v39  ;;  %v470_v60 = vrot.slane %v465_v39, 4  ;;  %v474_v61 = vrot.slane %v472_v51, 7  ;;  %v751_v62 = vld [vmem:[#allocation2 + $0x50] sm:$0x1]  ;;  %3615 = vmatpush3.bf16.msra.mxu0 %v3993_v58  ;;  %v1236_v15 = vrot.slane %v4243_v45, 1 }
  0x4e   : > { %3507 = vmatpush3.bf16.msra.mxu1 %v3977_v20  ;;  %v3974_v8 = vld [vmem:[#allocation2 + $0xbc] ss:$0 sps:$4 sm:$0x11]   ;;  %v4367_v11 = vsel %vm1022_vm3, %v1065_v4, %v1069_v2  ;;  %v1204_v13 = vshrl.u32 %v3973_v5, 16  ;;  %v1206_v14 = vshll.u32 %v3973_v5, 16  ;;  %v482_v1 = vrot.slane %v480_v55, 7 }
  0x4f   : > { %3508 = vmatprep.subr.bf16.mxu1 %v3979_v24  ;;  %1980 = vmatprep.mubr.bf16.mxu0 %v4367_v11  ;;  %v1211_v16 = vshll.u32 %v3974_v8, 16  ;;  %v305_v20 = vld [vmem:[%s4147_s4 + $0x20] sm:$0xf]  ;;  %v478_v6 = vrot.slane %v474_v61, 4  ;;  %v309_v23 = vld [vmem:[%s4147_s4 + $0x30] sm:$0xf] }
  0x50   : > { %v1208_v18 = vrot.slane %v1206_v14, 1  ;;  %1981 = vmatmul.mubr.bf16.gmra.mrb[12].mxu0 %v4347_v46  ;;  %v455_v24 = vshrl.u32 %v305_v20, 16  ;;  %v458_v26 = vshll.u32 %v305_v20, 16  ;;  %v485_v10 = vor.u32 %v483_v56, %v482_v1  ;;  %v3992_v20 = vld [vmem:[%s5219_s1 + $0x1c8] sm:$0xff]   ;;  %v754_v36 = vld [vmem:[#allocation2 + $0x54] sm:$0xf] }
  0x51   : > { %v1213_v22 = vrot.slane %v1211_v16, 1  ;;  %v3997_v45 = vld [vmem:[%s5219_s1 + $0x168] sm:$0xff]   ;;  %v489_v30 = vshrl.u32 %v309_v23, 16  ;;  %v492_v31 = vshll.u32 %v309_v23, 16 }
  0x52   : > { %3509 = vmatpush3.bf16.msra.mxu1 %v3980_v38  ;;  %v1209_v28 = vor.u32 %v1208_v18, %v1204_v13  ;;  %v457_v33 = vrot.slane %v455_v24, 7  ;;  %v4397_v2 = vld [vmem:[#allocation2 + $0x38] ss:$0 sps:$4 sm:$0x11]   ;;  %v487_v13 = vrot.slane %v482_v1, 4  ;;  %v486_v12 = vsel %vm4171_vm7, %v478_v6, %v485_v10  ;;  %3616 = vmatprep.subr.bf16.mxu0 %v3997_v45  ;;  %v3998_v51 = vld [vmem:[%s5219_s1 + $0x128] sm:$0xff]  }
  0x53   : > { %3718 = vmatprep.subr.bf16.mxu1 %v3983_v42  ;;  %v744_v42 = vld [vmem:[#allocation2 + $0x44] sm:$0x1]  ;;  %v4392_v63 = vld [vmem:[#allocation2 + $0x30] sm:$0xff]   ;;  %v1079_v14 = vshll.u32 %v4397_v2, 16  ;;  %750 = vst [vmem:[#allocation2 + $0x4c] sm:$0xf] %v486_v12  ;;  %3617 = vmatpush3.bf16.msra.mxu0 %v3998_v51 }
  0x54   : > { %v4386_v38 = vsel %vm1022_vm3, %v1209_v28, %v1213_v22  ;;  %v460_v53 = vor.u32 %v458_v26, %v457_v33  ;;  %v461_v54 = vrot.slane %v457_v33, 4  ;;  %v745_v4 = vsel %vm4163_vm6, %v470_v60, %v744_v42  ;;  %v310_v28 = vld [vmem:[%s4147_s4 + $0x34] sm:$0xf]  ;;  %v758_v42 = vld [vmem:[#allocation2 + $0x5c] sm:$0x1] }
  0x55   : > { %2076 = vmatprep.mubr.bf16.mxu1 %v4386_v38  ;;  %v1072_v7 = vshrl.u32 %v4392_v63, 16  ;;  %v1074_v8 = vshll.u32 %v4392_v63, 16  ;;  %746 = vst [vmem:[#allocation2 + $0x44] sm:$0x1] %v745_v4  ;;  %v752_v18 = vsel %vm4163_vm6, %v487_v13, %v751_v62  ;;  %v1081_v22 = vrot.slane %v1079_v14, 1  ;;  %v4001_v60 = vld [vmem:[%s5219_s1 + $0x1d0] sm:$0xff]  }
  0x56   : > { %2077 = vmatmul.mubr.bf16.gmra.mrb[12].mxu1 %v3973_v5  ;;  %v741_v0 = vsel %vm4179_vm9, %v460_v53, %v740_v32  ;;  %v469_v3 = vsel %vm4171_vm7, %v461_v54, %v468_v59  ;;  %v477_v5 = vor.u32 %v475_v52, %v474_v61  ;;  %753 = vst [vmem:[#allocation2 + $0x50] sm:$0x1] %v752_v18  ;;  %v1238_v26 = vrot.slane %v4293_v41, 1  ;;  %v312_v14 = vld [vmem:[%s4147_s4 + $0x3c] sm:$0xf] }
  0x57   : > { %2117 = vmatprep.mubr.bf16.mxu1 %v4241_v44  ;;  %742 = vst [vmem:[#allocation2 + $0x3c] sm:$0xf] %v741_v0  ;;  %743 = vst [vmem:[#allocation2 + $0x40] sm:$0xf] %v469_v3  ;;  %v1076_v17 = vrot.slane %v1074_v8, 1  ;;  %v497_v32 = vshrl.u32 %v310_v28, 16  ;;  %v4451_v62 = vsel %vm1231_vm2, %v1235_v34, %v1236_v15 }
  0x58   : > { %v748_v16 = vsel %vm4179_vm9, %v477_v5, %v747_v57  ;;  %v500_v33 = vshll.u32 %v310_v28, 16  ;;  %v491_v39 = vrot.slane %v489_v30, 7  ;;  %v1239_v8 = vrot.slane %v4296_v47, 1 }
  0x59   : > { %749 = vst [vmem:[#allocation2 + $0x48] sm:$0xf] %v748_v16  ;;  %v1077_v24 = vor.u32 %v1076_v17, %v1072_v7  ;;  %v4002_v17 = vld [vmem:[%s5219_s1 + $0x190] sm:$0xff]   ;;  %v514_v18 = vshrl.u32 %v312_v14, 16  ;;  %v517_v47 = vshll.u32 %v312_v14, 16  ;;  %v1241_v28 = vrot.slane %v4347_v46, 1 }
  0x5a   : > { %v494_v54 = vor.u32 %v492_v31, %v491_v39  ;;  %v495_v55 = vrot.slane %v491_v39, 4  ;;  %v4483_v31 = vsel %vm1231_vm2, %v1238_v26, %v1239_v8  ;;  %v313_v39 = vld [vmem:[%s4147_s4 + $0x40] sm:$0xf] }
  0x5b   : > { %v4430_v37 = vsel %vm1022_vm3, %v1077_v24, %v1081_v22  ;;  %v765_v24 = vld [vmem:[#allocation2 + $0x68] sm:$0x1]  ;;  %v516_v30 = vrot.slane %v514_v18, 7  ;;  %v526_v26 = vshll.u32 %v313_v39, 16 }
  0x5c   : > { %1988 = vmatprep.mubr.bf16.mxu0 %v4430_v37  ;;  %v4440_v53 = vld [vmem:[#allocation2 + $0x44] ss:$0 sps:$4 sm:$0x11]   ;;  %v755_v1 = vsel %vm4179_vm9, %v494_v54, %v754_v36 }
  0x5d   : > { %1989 = vmatmul.mubr.bf16.gmra.mrb[16].mxu0 %v4392_v63  ;;  %v1091_v61 = vshll.u32 %v4440_v53, 16  ;;  %v4457_v4 = vld [vmem:[#allocation2 + $0x50] ss:$0 sps:$4 sm:$0x11]   ;;  %756 = vst [vmem:[#allocation2 + $0x54] sm:$0xf] %v755_v1  ;;  %v519_v51 = vor.u32 %v517_v47, %v516_v30 }
  0x5e   : > { %2118 = vmatmul.mubr.bf16.vlgmr.msra.gmra.mrb[16].mxu1 %v4198_v49  ;;  %v4437_v52 = vld [vmem:[#allocation2 + $0x3c] sm:$0xff]   ;;  %v499_v49 = vrot.slane %v497_v32, 7  ;;  %v1103_v13 = vshll.u32 %v4457_v4, 16  ;;  %v1242_v32 = vrot.slane %v4352_v50, 1  ;;  %v314_v54 = vld [vmem:[%s4147_s4 + $0x44] sm:$0xf] }
  0x5f   : > { %3719 = vmatpush3.bf16.msra.mxu1 %v3984_v9  ;;  %2125 = vmatprep.mubr.bf16.mxu1 %v4293_v41  ;;  %v1084_v56 = vshrl.u32 %v4437_v52, 16  ;;  %v1086_v57 = vshll.u32 %v4437_v52, 16  ;;  %v1093_v34 = vrot.slane %v1091_v61, 1  ;;  %v311_v9 = vld [vmem:[%s4147_s4 + $0x38] sm:$0xf]  ;;  %v1244_v47 = vrot.slane %v4392_v63, 1 }
  0x60   : > { %3720 = vmatprep.subr.bf16.mxu1 %v3992_v20  ;;  %v502_v58 = vor.u32 %v500_v33, %v499_v49  ;;  %v504_v59 = vrot.slane %v499_v49, 4  ;;  %v4453_v0 = vld [vmem:[#allocation2 + $0x48] sm:$0xff]   ;;  %v506_v15 = vshrl.u32 %v311_v9, 16  ;;  %v509_v16 = vshll.u32 %v311_v9, 16  ;;  %v761_v20 = vld [vmem:[#allocation2 + $0x60] sm:$0xf] }
  0x61   : > { %v1088_v3 = vrot.slane %v1086_v57, 1  ;;  %v1096_v6 = vshrl.u32 %v4453_v0, 16  ;;  %v1098_v7 = vshll.u32 %v4453_v0, 16  ;;  %v1105_v23 = vrot.slane %v1103_v13, 1  ;;  %v772_v9 = vld [vmem:[#allocation2 + $0x74] sm:$0x1] }
  0x62   : > { %v503_v5 = vsel %vm4171_vm7, %v495_v55, %v502_v58  ;;  %v759_v44 = vsel %vm4163_vm6, %v504_v59, %v758_v42  ;;  %v508_v45 = vrot.slane %v506_v15, 7  ;;  %v521_v49 = vrot.slane %v516_v30, 4 }
  0x63   : > { %3721 = vmatpush3.bf16.msra.mxu1 %v3994_v27  ;;  %757 = vst [vmem:[#allocation2 + $0x58] sm:$0xf] %v503_v5  ;;  %760 = vst [vmem:[#allocation2 + $0x5c] sm:$0x1] %v759_v44  ;;  %v1089_v10 = vor.u32 %v1088_v3, %v1084_v56  ;;  %v1100_v12 = vrot.slane %v1098_v7, 1  ;;  %v531_v59 = vshrl.u32 %v314_v54, 16  ;;  %v4520_v18 = vsel %vm1231_vm2, %v1241_v28, %v1242_v32 }
  0x64   : > { %3722 = vmatprep.subr.bf16.mxu1 %v4001_v60  ;;  %v511_v33 = vor.u32 %v509_v16, %v508_v45  ;;  %v512_v36 = vrot.slane %v508_v45, 4  ;;  %v766_v57 = vsel %vm4163_vm6, %v521_v49, %v765_v24  ;;  %v4005_v60 = vld [vmem:[%s5219_s1 + $0x170] sm:$0xff]   ;;  %v534_v3 = vshll.u32 %v314_v54, 16  ;;  %v768_v5 = vld [vmem:[#allocation2 + $0x6c] sm:$0xf] }
  0x65   : > { %v4475_v22 = vsel %vm1022_vm3, %v1089_v10, %v1093_v34  ;;  %v1101_v27 = vor.u32 %v1100_v12, %v1096_v6  ;;  %767 = vst [vmem:[#allocation2 + $0x68] sm:$0x1] %v766_v57  ;;  %v4006_v44 = vld [vmem:[%s5219_s1 + $0x130] sm:$0xff]   ;;  %v533_v8 = vrot.slane %v531_v59, 7  ;;  %3618 = vmatprep.subr.bf16.mxu0 %v4005_v60  ;;  %v4009_v10 = vld [vmem:[%s5219_s1 + $0x1d8] sm:$0xff]  }
  0x66   : > { %2126 = vmatmul.mubr.bf16.gmra.mrb[20].mxu1 %v4451_v62  ;;  %1996 = vmatprep.mubr.bf16.mxu0 %v4475_v22  ;;  %v762_v41 = vsel %vm4179_vm9, %v511_v33, %v761_v20  ;;  %v520_v50 = vsel %vm4171_vm7, %v512_v36, %v519_v51  ;;  %v315_v20 = vld [vmem:[%s4147_s4 + $0x48] sm:$0xf]  ;;  %v1245_v36 = vrot.slane %v4397_v2, 1  ;;  %v4010_v51 = vld [vmem:[%s5219_s1 + $0x198] sm:$0xff]  }
  0x67   : > { %2133 = vmatprep.mubr.bf16.mxu1 %v4347_v46  ;;  %3723 = vmatpush3.bf16.msra.mxu1 %v4002_v17  ;;  %v4488_v42 = vsel %vm1022_vm3, %v1101_v27, %v1105_v23  ;;  %v523_v46 = vshrl.u32 %v313_v39, 16  ;;  %763 = vst [vmem:[#allocation2 + $0x60] sm:$0xf] %v762_v41  ;;  %764 = vst [vmem:[#allocation2 + $0x64] sm:$0xf] %v520_v50  ;;  %v536_v15 = vor.u32 %v534_v3, %v533_v8  ;;  %v4011_v59 = vld [vmem:[%s5219_s1 + $0x178] sm:$0xff]  }
  0x68   : > { %1997 = vmatmul.mubr.bf16.gmra.mrb[20].mxu0 %v4437_v52  ;;  %v538_v16 = vrot.slane %v533_v8, 4  ;;  %3724 = vmatprep.subr.bf16.mxu1 %v4009_v10  ;;  %v316_v23 = vld [vmem:[%s4147_s4 + $0x4c] sm:$0xf]  ;;  %v540_v27 = vshrl.u32 %v315_v20, 16  ;;  %v543_v30 = vshll.u32 %v315_v20, 16 }
  0x69   : > { %2004 = vmatprep.mubr.bf16.mxu0 %v4488_v42  ;;  %v525_v58 = vrot.slane %v523_v46, 7  ;;  %3619 = vmatpush3.bf16.msra.mxu0 %v4006_v44  ;;  %v548_v28 = vshrl.u32 %v316_v23, 16  ;;  %v551_v32 = vshll.u32 %v316_v23, 16  ;;  %v775_v39 = vld [vmem:[#allocation2 + $0x78] sm:$0xf]  ;;  %v4015_v23 = vld [vmem:[%s5219_s1 + $0x1e0] sm:$0xff]  }
  0x6a   : > { %v4492_v55 = vld [vmem:[#allocation2 + $0x54] sm:$0xff]   ;;  %v4496_v56 = vld [vmem:[#allocation2 + $0x5c] ss:$0 sps:$4 sm:$0x11]   ;;  %v773_v24 = vsel %vm4163_vm6, %v538_v16, %v772_v9  ;;  %v542_v54 = vrot.slane %v540_v27, 7  ;;  %3620 = vmatprep.subr.bf16.mxu0 %v4011_v59  ;;  %v4560_v9 = vsel %vm1231_vm2, %v1244_v47, %v1245_v36 }
  0x6b   : > { %v1108_v61 = vshrl.u32 %v4492_v55, 16  ;;  %v1110_v1 = vshll.u32 %v4492_v55, 16  ;;  %v1115_v34 = vshll.u32 %v4496_v56, 16  ;;  %v528_v6 = vor.u32 %v526_v26, %v525_v58  ;;  %774 = vst [vmem:[#allocation2 + $0x74] sm:$0x1] %v773_v24  ;;  %3725 = vmatpush3.bf16.msra.mxu1 %v4010_v51  ;;  %v4012_v44 = vld [vmem:[%s5219_s1 + $0x138] sm:$0xff]  }
  0x6c   : > { %v529_v7 = vrot.slane %v525_v58, 4  ;;  %v779_v46 = vld [vmem:[#allocation2 + $0x80] sm:$0x1]  ;;  %v4540_v41 = vld [vmem:[#allocation2 + $0x68] ss:$0 sps:$4 sm:$0x11]   ;;  %v545_v57 = vor.u32 %v543_v30, %v542_v54  ;;  %3726 = vmatprep.subr.bf16.mxu1 %v4015_v23 }
  0x6d   : > { %v1112_v13 = vrot.slane %v1110_v1, 1  ;;  %v1117_v14 = vrot.slane %v1115_v34, 1  ;;  %v769_v17 = vsel %vm4179_vm9, %v528_v6, %v768_v5  ;;  %v550_v2 = vrot.slane %v548_v28, 7  ;;  %3621 = vmatpush3.bf16.msra.mxu0 %v4012_v44  ;;  %v318_v20 = vld [vmem:[%s4147_s4 + $0x54] sm:$0xf]  ;;  %v4020_v23 = vld [vmem:[%s5219_s1 + $0x1a8] sm:$0xff]  }
  0x6e   : > { %2134 = vmatmul.mubr.bf16.gmra.mrb[24].mxu1 %v4483_v31  ;;  %770 = vst [vmem:[#allocation2 + $0x6c] sm:$0xf] %v769_v17  ;;  %v537_v45 = vsel %vm4171_vm7, %v529_v7, %v536_v15  ;;  %v4537_v49 = vld [vmem:[#allocation2 + $0x60] sm:$0xff]   ;;  %v546_v58 = vrot.slane %v542_v54, 4  ;;  %v1127_v60 = vshll.u32 %v4540_v41, 16  ;;  %v776_v5 = vsel %vm4179_vm9, %v545_v57, %v775_v39 }
  0x6f   : > { %2141 = vmatprep.mubr.bf16.mxu1 %v4392_v63  ;;  %v1113_v12 = vor.u32 %v1112_v13, %v1108_v61  ;;  %771 = vst [vmem:[#allocation2 + $0x70] sm:$0xf] %v537_v45  ;;  %v1120_v26 = vshrl.u32 %v4537_v49, 16  ;;  %v1122_v50 = vshll.u32 %v4537_v49, 16  ;;  %v553_v61 = vor.u32 %v551_v32, %v550_v2  ;;  %777 = vst [vmem:[#allocation2 + $0x78] sm:$0xf] %v776_v5 }
  0x70   : > { %2005 = vmatmul.mubr.bf16.gmra.mrb[24].mxu0 %v4453_v0  ;;  %v555_v1 = vrot.slane %v550_v2, 4  ;;  %v1129_v34 = vrot.slane %v1127_v60, 1  ;;  %v317_v15 = vld [vmem:[%s4147_s4 + $0x50] sm:$0xf]  ;;  %v565_v27 = vshrl.u32 %v318_v20, 16  ;;  %v568_v30 = vshll.u32 %v318_v20, 16 }
  0x71   : > { %v4530_v33 = vsel %vm1022_vm3, %v1113_v12, %v1117_v14  ;;  %v1124_v3 = vrot.slane %v1122_v50, 1  ;;  %v554_v6 = vsel %vm4171_vm7, %v546_v58, %v553_v61  ;;  %v1247_v14 = vrot.slane %v4437_v52, 1  ;;  %v782_v36 = vld [vmem:[#allocation2 + $0x84] sm:$0xf]  ;;  %v786_v51 = vld [vmem:[#allocation2 + $0x8c] sm:$0x1] }
  0x72   : > { %2012 = vmatprep.mubr.bf16.mxu0 %v4530_v33  ;;  %v780_v7 = vsel %vm4163_vm6, %v555_v1, %v779_v46  ;;  %778 = vst [vmem:[#allocation2 + $0x7c] sm:$0xf] %v554_v6  ;;  %v4564_v13 = vld [vmem:[#allocation2 + $0x74] ss:$0 sps:$4 sm:$0x11]   ;;  %v557_v47 = vshrl.u32 %v317_v15, 16 }
  0x73   : > { %v1125_v8 = vor.u32 %v1124_v3, %v1120_v26  ;;  %781 = vst [vmem:[#allocation2 + $0x80] sm:$0x1] %v780_v7  ;;  %v1139_v45 = vshll.u32 %v4564_v13, 16  ;;  %v560_v24 = vshll.u32 %v317_v15, 16  ;;  %v1248_v32 = vrot.slane %v4440_v53, 1  ;;  %v4585_v54 = vld [vmem:[%s5219_s1 + $0x200] sm:$0xff]  }
  0x74   : > { %v559_v39 = vrot.slane %v557_v47, 7  ;;  %v567_v2 = vrot.slane %v565_v27, 7  ;;  %3854 = vmatprep.subr.bf16.mxu0 %v4585_v54  ;;  %v4017_v58 = vld [vmem:[%s5219_s1 + $0x1a0] sm:$0xff]   ;;  %v1251_v20 = vrot.slane %v4457_v4, 1  ;;  %v4023_v27 = vld [vmem:[%s5219_s1 + $0x1b0] sm:$0xff]   ;;  %v1260_v35 = vrot.slane %v4564_v13, 1 }
  0x75   : > { %v4569_v16 = vsel %vm1022_vm3, %v1125_v8, %v1129_v34  ;;  %v1141_v46 = vrot.slane %v1139_v45, 1  ;;  %v4598_v1 = vsel %vm1231_vm2, %v1247_v14, %v1248_v32  ;;  %3727 = vmatpush3.bf16.msra.mxu1 %v4017_v58  ;;  %v1250_v14 = vrot.slane %v4453_v0, 1  ;;  %v4021_v45 = vld [vmem:[%s5219_s1 + $0x1f0] sm:$0xff]   ;;  %v327_v58 = vld [vmem:[%s4147_s4 + $0x78] sm:$0xf] }
  0x76   : > { %2142 = vmatmul.mubr.bf16.gmra.mrb[28].mxu1 %v4520_v18  ;;  %v4562_v10 = vld [vmem:[#allocation2 + $0x6c] sm:$0xff]   ;;  %v562_v50 = vor.u32 %v560_v24, %v559_v39  ;;  %v563_v57 = vrot.slane %v559_v39, 4  ;;  %v570_v59 = vor.u32 %v568_v30, %v567_v2  ;;  %v572_v60 = vrot.slane %v567_v2, 4 }
  0x77   : > { %2149 = vmatprep.mubr.bf16.mxu1 %v4437_v52  ;;  %v1132_v17 = vshrl.u32 %v4562_v10, 16  ;;  %v1134_v12 = vshll.u32 %v4562_v10, 16  ;;  %v4631_v4 = vsel %vm1231_vm2, %v1250_v14, %v1251_v20  ;;  %v1253_v39 = vrot.slane %v4492_v55, 1 }
  0x78   : > { %2013 = vmatmul.mubr.bf16.gmra.mrb[28].mxu0 %v4492_v55  ;;  %v783_v5 = vsel %vm4179_vm9, %v562_v50, %v782_v36  ;;  %v571_v6 = vsel %vm4171_vm7, %v563_v57, %v570_v59  ;;  %v787_v7 = vsel %vm4163_vm6, %v572_v60, %v786_v51  ;;  %v4024_v51 = vld [vmem:[%s5219_s1 + $0x1f8] sm:$0xff]   ;;  %v1254_v2 = vrot.slane %v4496_v56, 1 }
  0x79   : > { %2020 = vmatprep.mubr.bf16.mxu0 %v4569_v16  ;;  %v1136_v28 = vrot.slane %v1134_v12, 1  ;;  %v4592_v53 = vld [vmem:[#allocation2 + $0x78] sm:$0xff]   ;;  %784 = vst [vmem:[#allocation2 + $0x84] sm:$0xf] %v783_v5  ;;  %785 = vst [vmem:[#allocation2 + $0x88] sm:$0xf] %v571_v6 }
  0x7a   : > { %v4600_v3 = vld [vmem:[#allocation2 + $0x80] ss:$0 sps:$4 sm:$0x11]   ;;  %v1144_v44 = vshrl.u32 %v4592_v53, 16  ;;  %v1146_v34 = vshll.u32 %v4592_v53, 16  ;;  %v4026_v57 = vld [vmem:[%s5219_s1 + $0x1b8] sm:$0xff]   ;;  %v4657_v6 = vsel %vm1231_vm2, %v1253_v39, %v1254_v2 }
  0x7b   : > { %v1137_v26 = vor.u32 %v1136_v28, %v1132_v17  ;;  %v1151_v8 = vshll.u32 %v4600_v3, 16  ;;  %788 = vst [vmem:[#allocation2 + $0x8c] sm:$0x1] %v787_v7  ;;  %v4018_v17 = vld [vmem:[%s5219_s1 + $0x1e8] sm:$0xff]   ;;  %v328_v59 = vld [vmem:[%s4147_s4 + $0x7c] sm:$0xf] }
  0x7c   : > { %v1148_v15 = vrot.slane %v1146_v34, 1  ;;  %3728 = vmatprep.subr.bf16.mxu1 %v4018_v17  ;;  %v642_v5 = vshrl.u32 %v327_v58, 16  ;;  %v650_v34 = vshrl.u32 %v328_v59, 16  ;;  %v653_v56 = vshll.u32 %v328_v59, 16  ;;  %v817_v7 = vld [vmem:[#allocation2 + $0xc0] sm:$0xf] }
  0x7d   : > { %v4595_v61 = vsel %vm1022_vm3, %v1137_v26, %v1141_v46  ;;  %v1153_v12 = vrot.slane %v1151_v8, 1  ;;  %3729 = vmatpush3.bf16.msra.mxu1 %v4020_v23  ;;  %v1256_v17 = vrot.slane %v4537_v49, 1  ;;  %v1257_v23 = vrot.slane %v4540_v41, 1  ;;  %v4028_v2 = vld [vmem:[%s5219_s1 + $0x220] sm:$0xff]   ;;  %v4030_v59 = vld [vmem:[%s5219_s1 + $0x230] sm:$0xff]  }
  0x7e   : > { %2150 = vmatmul.mubr.bf16.gmra.mrb[32].mxu1 %v4560_v9  ;;  %v1149_v47 = vor.u32 %v1148_v15, %v1144_v44  ;;  %3730 = vmatprep.subr.bf16.mxu1 %v4021_v45  ;;  %v645_v44 = vshll.u32 %v327_v58, 16  ;;  %v644_v14 = vrot.slane %v642_v5, 7  ;;  %v652_v15 = vrot.slane %v650_v34, 7  ;;  %v4037_v5 = vld [vmem:[#allocation2 + $0x98] ss:$0 sps:$4 sm:$0x11]  }
  0x7f   : > { %2157 = vmatprep.mubr.bf16.mxu1 %v4453_v0  ;;  %v4676_v41 = vsel %vm1231_vm2, %v1256_v17, %v1257_v23  ;;  %v1259_v29 = vrot.slane %v4562_v10, 1  ;;  %v1262_v13 = vrot.slane %v4592_v53, 1  ;;  %v4031_v34 = vld [vmem:[%s5219_s1 + $0x238] sm:$0xff]   ;;  %v4041_v23 = vld [vmem:[#allocation2 + $0xb0] ss:$0 sps:$4 sm:$0x11]  }
  0x80   : > { %2021 = vmatmul.mubr.bf16.gmra.mrb[32].mxu0 %v4537_v49  ;;  %v4627_v24 = vsel %vm1022_vm3, %v1149_v47, %v1153_v12  ;;  %v4636_v30 = vld [vmem:[#allocation2 + $0x84] sm:$0xff]   ;;  %v647_v12 = vor.u32 %v645_v44, %v644_v14  ;;  %v648_v20 = vrot.slane %v644_v14, 4  ;;  %v655_v47 = vor.u32 %v653_v56, %v652_v15 }
  0x81   : > { %2028 = vmatprep.mubr.bf16.mxu0 %v4595_v61  ;;  %v1156_v28 = vshrl.u32 %v4636_v30, 16  ;;  %v1158_v32 = vshll.u32 %v4636_v30, 16  ;;  %3731 = vmatpush3.bf16.msra.mxu1 %v4023_v27  ;;  %v657_v45 = vrot.slane %v652_v15, 4  ;;  %v821_v27 = vld [vmem:[#allocation2 + $0xc8] sm:$0x1]  ;;  %v1269_v44 = vrot.slane %v4037_v5, 1 }
  0x82   : > { %v4638_v36 = vld [vmem:[#allocation2 + $0x8c] ss:$0 sps:$4 sm:$0x11]   ;;  %3732 = vmatprep.subr.bf16.mxu1 %v4024_v51  ;;  %v4022_v51 = vld [vmem:[%s5219_s1 + $0x210] sm:$0xff]  }
  0x83   : > { %v1163_v46 = vshll.u32 %v4638_v36, 16  ;;  %v1160_v26 = vrot.slane %v1158_v32, 1  ;;  %v818_v32 = vsel %vm4179_vm9, %v647_v12, %v817_v7  ;;  %v822_v39 = vsel %vm4163_vm6, %v657_v45, %v821_v27  ;;  %v4740_v7 = vld [vmem:[#allocation2 + $0xa8] sm:$0xff]   ;;  %v4039_v15 = vld [vmem:[#allocation2 + $0xa4] ss:$0 sps:$4 sm:$0x11]  }
  0x84   : > { %819 = vst [vmem:[#allocation2 + $0xc0] sm:$0xf] %v818_v32  ;;  %823 = vst [vmem:[#allocation2 + $0xc8] sm:$0x1] %v822_v39  ;;  %v1272_v17 = vrot.slane %v4039_v15, 1  ;;  %v1275_v45 = vrot.slane %v4041_v23, 1 }
  0x85   : > { %v1165_v50 = vrot.slane %v1163_v46, 1  ;;  %v1161_v60 = vor.u32 %v1160_v26, %v1156_v28  ;;  %3733 = vmatpush3.bf16.msra.mxu1 %v4026_v57  ;;  %v656_v28 = vsel %vm4171_vm7, %v648_v20, %v655_v47  ;;  %v1265_v26 = vrot.slane %v4636_v30, 1  ;;  %v4029_v57 = vld [vmem:[%s5219_s1 + $0x228] sm:$0xff]   ;;  %v4750_v20 = vld [vmem:[#allocation2 + $0xb4] sm:$0xff]  }
  0x86   : > { %2158 = vmatmul.mubr.bf16.gmra.mrb[36].mxu1 %v4598_v1  ;;  %820 = vst [vmem:[#allocation2 + $0xc4] sm:$0xf] %v656_v28  ;;  %v1274_v47 = vrot.slane %v4740_v7, 1  ;;  %v1277_v32 = vrot.slane %v4750_v20, 1 }
  0x87   : > { %2165 = vmatprep.mubr.bf16.mxu1 %v4492_v55  ;;  %v4660_v8 = vsel %vm1022_vm3, %v1161_v60, %v1165_v50  ;;  %v1266_v50 = vrot.slane %v4638_v36, 1  ;;  %v4727_v36 = vld [vmem:[#allocation2 + $0x9c] sm:$0xff]  }
  0x88   : > { %2029 = vmatmul.mubr.bf16.gmra.mrb[36].mxu0 %v4562_v10  ;;  %v1271_v14 = vrot.slane %v4727_v36, 1  ;;  %v4757_v27 = vsel %vm1231_vm2, %v1274_v47, %v1275_v45  ;;  %v4042_v39 = vld [vmem:[#allocation2 + $0xbc] ss:$0 sps:$4 sm:$0x11]  }
  0x89   : > { %2036 = vmatprep.mubr.bf16.mxu0 %v4627_v24  ;;  %v4721_v58 = vsel %vm1231_vm2, %v1265_v26, %v1266_v50 }
  0x8a   : > { %v4747_v12 = vsel %vm1231_vm2, %v1271_v14, %v1272_v17 }
  0x8b   : > { %v4032_v50 = vld [vmem:[#allocation2 + $0xc8] ss:$0 sps:$4 sm:$0x11]  }
  0x8c   : > { %v1313_v47 = vshll.u32 %v4032_v50, 16 }
  0x8d   : > { %v4759_v28 = vld [vmem:[#allocation2 + $0xc0] sm:$0xff]  }
  0x8e   : > { %2166 = vmatmul.mubr.bf16.gmra.mrb[40].mxu1 %v4631_v4  ;;  %v1306_v15 = vshrl.u32 %v4759_v28, 16 }
  0x8f   : > { %2173 = vmatprep.mubr.bf16.mxu1 %v4537_v49 }
  0x90   : > { %2037 = vmatmul.mubr.bf16.gmra.mrb[40].mxu0 %v4592_v53 }
  0x91   : > { %2044 = vmatprep.mubr.bf16.mxu0 %v4660_v8 }
  0x96   : > { %2174 = vmatmul.mubr.bf16.gmra.mrb[44].mxu1 %v4657_v6 }
  0x97   : > { %2181 = vmatprep.mubr.bf16.mxu1 %v4562_v10 }
  0x98   : > { %2045 = vmatmul.mubr.bf16.gmra.mrb[44].mxu0 %v4636_v30 }
  0x99   : > { %2278 = vmatprep.mubr.bf16.mxu0 %v4451_v62  ;;  %v4689_v62 = vsel %vm1231_vm2, %v1259_v29, %v1260_v35  ;;  %v1278_v29 = vrot.slane %v4042_v39, 1 }
  0x9b   : > { %v4767_v35 = vsel %vm1231_vm2, %v1277_v32, %v1278_v29 }
  0x9e   : > { %2182 = vmatmul.mubr.bf16.gmra.mrb[48].mxu1 %v4676_v41 }
  0x9f   : > { %2189 = vmatprep.mubr.bf16.mxu1 %v4592_v53 }
  0xa0   : > { %2279 = vmatmul.mubr.bf16.vlgmr.msra.gmra.mrb[48].mxu0 %v4269_v19  ;;  %v1263_v19 = vrot.slane %v4600_v3, 1  ;;  %v4710_v3 = vld [vmem:[#allocation2 + $0x90] sm:$0xff]  }
  0xa1   : > { %3855 = vmatpush3.bf16.msra.mxu0 %v4585_v54  ;;  %2286 = vmatprep.mubr.bf16.mxu0 %v4483_v31  ;;  %v4025_v54 = vld [vmem:[%s5219_s1 + $0x218] sm:$0xff]   ;;  %v1268_v60 = vrot.slane %v4710_v3, 1 }
  0xa2   : > { %3856 = vmatprep.subr.bf16.mxu0 %v4019_v25  ;;  %v4704_v46 = vsel %vm1231_vm2, %v1262_v13, %v1263_v19 }
  0xa3   : > { %v4737_v56 = vsel %vm1231_vm2, %v1268_v60, %v1269_v44  ;;  %v1308_v60 = vshll.u32 %v4759_v28, 16  ;;  %v1318_v44 = vrot.slane %v4759_v28, 1 }
  0xa5   : > { %3857 = vmatpush3.bf16.msra.mxu0 %v4019_v25  ;;  %v4043_v25 = vld [vmem:[#allocation2 + $0x18] sm:$0xff]   ;;  %v1310_v17 = vrot.slane %v1308_v60, 1 }
  0xa6   : > { %2190 = vmatmul.mubr.bf16.gmra.mrb[52].mxu1 %v4689_v62  ;;  %3858 = vmatprep.subr.bf16.mxu0 %v4022_v51 }
  0xa7   : > { %2197 = vmatprep.mubr.bf16.mxu1 %v4636_v30 }
  0xa8   : > { %2287 = vmatmul.mubr.bf16.gmra.mrb[52].mxu0 %v4328_v21 }
  0xa9   : > { %2294 = vmatprep.mubr.bf16.mxu0 %v4520_v18  ;;  %3859 = vmatpush3.bf16.msra.mxu0 %v4022_v51  ;;  %v4044_v51 = vld [vmem:[#allocation2 + $0x24] sm:$0xff]  }
  0xaa   : > { %3860 = vmatprep.subr.bf16.mxu0 %v4025_v54 }
  0xad   : > { %3861 = vmatpush3.bf16.msra.mxu0 %v4025_v54 }
  0xae   : > { %2198 = vmatmul.mubr.bf16.gmra.mrb[56].mxu1 %v4704_v46  ;;  %3862 = vmatprep.subr.bf16.mxu0 %v4028_v2 }
  0xaf   : > { %2205 = vmatprep.mubr.bf16.mxu1 %v4710_v3 }
  0xb0   : > { %2295 = vmatmul.mubr.bf16.gmra.mrb[56].mxu0 %v4367_v11 }
  0xb1   : > { %2302 = vmatprep.mubr.bf16.mxu0 %v4560_v9  ;;  %3863 = vmatpush3.bf16.msra.mxu0 %v4028_v2 }
  0xb2   : > { %3864 = vmatprep.subr.bf16.mxu0 %v4029_v57 }
  0xb5   : > { %3865 = vmatpush3.bf16.msra.mxu0 %v4029_v57 }
  0xb6   : > { %2206 = vmatmul.mubr.bf16.gmra.mrb[60].mxu1 %v4721_v58  ;;  %3866 = vmatprep.subr.bf16.mxu0 %v4030_v59 }
  0xb7   : > { %2213 = vmatprep.mubr.bf16.mxu1 %v4727_v36 }
  0xb8   : > { %2303 = vmatmul.mubr.bf16.gmra.mrb[60].mxu0 %v4430_v37 }
  0xb9   : > { %2310 = vmatprep.mubr.bf16.mxu0 %v4598_v1  ;;  %3867 = vmatpush3.bf16.msra.mxu0 %v4030_v59 }
  0xba   : > { %3868 = vmatprep.subr.bf16.mxu0 %v4031_v34 }
  0xbd   : > { %3869 = vmatpush3.bf16.msra.mxu0 %v4031_v34  ;;  %v1319_v34 = vrot.slane %v4032_v50, 1 }
  0xbe   : > { %2214 = vmatmul.mubr.bf16.gmra.mrb[64].mxu1 %v4737_v56 }
  0xbf   : > { %2221 = vmatprep.mubr.bf16.mxu1 %v4740_v7  ;;  %v4815_v32 = vsel %vm1231_vm2, %v1318_v44, %v1319_v34 }
  0xc0   : > { %2311 = vmatmul.mubr.bf16.gmra.mrb[64].mxu0 %v4475_v22 }
  0xc1   : > { %2318 = vmatprep.mubr.bf16.mxu0 %v4631_v4 }
  0xc6   : > { %2222 = vmatmul.mubr.bf16.gmra.mrb[68].mxu1 %v4747_v12 }
  0xc7   : > { %2229 = vmatprep.mubr.bf16.mxu1 %v4750_v20 }
  0xc8   : > { %2319 = vmatmul.mubr.bf16.gmra.mrb[68].mxu0 %v4488_v42 }
  0xc9   : > { %2326 = vmatprep.mubr.bf16.mxu0 %v4657_v6 }
  0xce   : > { %2230 = vmatmul.mubr.bf16.gmra.mrb[72].mxu1 %v4757_v27 }
  0xcf   : > { %2237 = vmatprep.mubr.bf16.mxu1 %v4759_v28 }
  0xd0   : > { %2327 = vmatmul.mubr.bf16.gmra.mrb[72].mxu0 %v4530_v33 }
  0xd1   : > { %2334 = vmatprep.mubr.bf16.mxu0 %v4676_v41 }
  0xd6   : > { %2238 = vmatmul.mubr.bf16.gmra.mrb[76].mxu1 %v4767_v35 }
  0xd7   : > { %2439 = vmatprep.mubr.bf16.mxu1 %v4328_v21 }
  0xd8   : > { %2335 = vmatmul.mubr.bf16.gmra.mrb[76].mxu0 %v4569_v16 }
  0xd9   : > { %2342 = vmatprep.mubr.bf16.mxu0 %v4689_v62 }
  0xde   : > { %2440 = vmatmul.mubr.bf16.vlgmr.msra.gmra.mrb[80].mxu1 %v4043_v25  ;;  %v1315_v25 = vrot.slane %v1313_v47, 1 }
  0xdf   : > { %2447 = vmatprep.mubr.bf16.mxu1 %v4367_v11 }
  0xe0   : > { %2343 = vmatmul.mubr.bf16.gmra.mrb[80].mxu0 %v4595_v61 }
  0xe1   : > { %2350 = vmatprep.mubr.bf16.mxu0 %v4704_v46 }
  0xe6   : > { %2448 = vmatmul.mubr.bf16.gmra.mrb[84].mxu1 %v4044_v51 }
  0xe7   : > { %2455 = vmatprep.mubr.bf16.mxu1 %v4430_v37 }
  0xe8   : > { %2351 = vmatmul.mubr.bf16.gmra.mrb[84].mxu0 %v4627_v24 }
  0xe9   : > { %2358 = vmatprep.mubr.bf16.mxu0 %v4721_v58 }
  0xee   : > { %2456 = vmatmul.mubr.bf16.gmra.mrb[88].mxu1 %v4392_v63 }
  0xef   : > { %2463 = vmatprep.mubr.bf16.mxu1 %v4475_v22 }
  0xf0   : > { %2359 = vmatmul.mubr.bf16.gmra.mrb[88].mxu0 %v4660_v8 }
  0xf1   : > { %2366 = vmatprep.mubr.bf16.mxu0 %v4737_v56 }
  0xf6   : > { %2464 = vmatmul.mubr.bf16.gmra.mrb[92].mxu1 %v4437_v52 }
  0xf7   : > { %2471 = vmatprep.mubr.bf16.mxu1 %v4488_v42 }
  0xf8   : > { %2367 = vmatmul.mubr.bf16.gmra.mrb[92].mxu0 %v4238_v43 }
  0xf9   : > { %2374 = vmatprep.mubr.bf16.mxu0 %v4747_v12 }
  0xfb   : > { %v3398_v21 = vpop.f32.mrb[0].mxu0 }
  0xfc   : > { %v3399_v11 = vpop.f32.mrb[1].mxu0 }
  0xfd   : > { %v4784_v13 = vadd.f32 %v3399_v11, %v3398_v21  ;;  %v3401_v19 = vpop.f32.mrb[2].mxu0 }
  0xfe   : > { %v3402_v37 = vpop.f32.mrb[3].mxu0  ;;  %2472 = vmatmul.mubr.bf16.gmra.mrb[96].mxu1 %v4453_v0 }
  0xff   : > { %v4787_v54 = vadd.f32 %v3402_v37, %v3401_v19  ;;  %2479 = vmatprep.mubr.bf16.mxu1 %v4530_v33 }
 0x100   : > { %2375 = vmatmul.mubr.bf16.gmra.mrb[96].mxu0 %v4291_v40 }
 0x101   : > { %2382 = vmatprep.mubr.bf16.mxu0 %v4757_v27 }
 0x106   : > { %2480 = vmatmul.mubr.bf16.gmra.mrb[100].mxu1 %v4492_v55 }
 0x107   : > { %2487 = vmatprep.mubr.bf16.mxu1 %v4569_v16 }
 0x108   : > { %v3470_v63 = vpop.f32.mrb[0].mxu1  ;;  %2383 = vmatmul.mubr.bf16.gmra.mrb[100].mxu0 %v4350_v48 }
 0x109   : > { %v3471_v22 = vpop.f32.mrb[1].mxu1  ;;  %2390 = vmatprep.mubr.bf16.mxu0 %v4767_v35 }
 0x10a   : > { %v4793_v2 = vadd.f32 %v3471_v22, %v3470_v63  ;;  %v3473_v52 = vpop.f32.mrb[2].mxu1 }
 0x10b   : > { %v3474_v26 = vpop.f32.mrb[3].mxu1 }
 0x10c   : > { %v4797_v42 = vadd.f32 %v3474_v26, %v3473_v52 }
 0x10d   : > { %v3404_v0 = vpop.f32.mrb[4].mxu0 }
 0x10e   : > { %v3405_v57 = vpop.f32.mrb[5].mxu0  ;;  %2488 = vmatmul.mubr.bf16.gmra.mrb[104].mxu1 %v4537_v49  ;;  %v1311_v49 = vor.u32 %v1310_v17, %v1306_v15 }
 0x10f   : > { %v4802_v33 = vadd.f32 %v3405_v57, %v3404_v0  ;;  %v3407_v59 = vpop.f32.mrb[6].mxu0  ;;  %2495 = vmatprep.mubr.bf16.mxu1 %v4595_v61 }
 0x110   : > { %v3408_v5 = vpop.f32.mrb[7].mxu0  ;;  %v3476_v55 = vpop.f32.mrb[4].mxu1  ;;  %2391 = vmatmul.mubr.bf16.gmra.mrb[104].mxu0 %v4386_v38  ;;  %v4823_v21 = vsel %vm1022_vm3, %v1311_v49, %v1315_v25 }
 0x111   : > { %v4807_v14 = vadd.f32 %v3408_v5, %v3407_v59  ;;  %v3477_v16 = vpop.f32.mrb[5].mxu1  ;;  %2398 = vmatprep.mubr.bf16.mxu0 %v4815_v32 }
 0x112   : > { %v4812_v23 = vadd.f32 %v3477_v16, %v3476_v55  ;;  %v3479_v45 = vpop.f32.mrb[6].mxu1 }
 0x113   : > { %v3480_v39 = vpop.f32.mrb[7].mxu1 }
 0x114   : > { %v4817_v29 = vadd.f32 %v3480_v39, %v3479_v45 }
 0x116   : > { %v3410_v61 = vpop.f32.mrb[8].mxu0  ;;  %2496 = vmatmul.mubr.bf16.gmra.mrb[108].mxu1 %v4562_v10 }
 0x117   : > { %v3411_v51 = vpop.f32.mrb[9].mxu0  ;;  %2503 = vmatprep.mubr.bf16.mxu1 %v4627_v24 }
 0x118   : > { %v4826_v11 = vadd.f32 %v3411_v51, %v3410_v61  ;;  %v3413_v19 = vpop.f32.mrb[10].mxu0  ;;  %2399 = vmatmul.mubr.bf16.gmra.mrb[108].mxu0 %v4823_v21  ;;  %v4870_v51 = vld [vmem:[#allocation2 + $0xcc] sm:$0xff]  }
 0x119   : > { %v3414_v37 = vpop.f32.mrb[11].mxu0  ;;  %3870 = vmatprep.mubr.bf16.mxu0 %v4483_v31 }
 0x11a   : > { %v4828_v63 = vadd.f32 %v3414_v37, %v3413_v19 }
 0x11c   : > { %v3482_v22 = vpop.f32.mrb[8].mxu1 }
 0x11d   : > { %v3483_v52 = vpop.f32.mrb[9].mxu1 }
 0x11e   : > { %2504 = vmatmul.mubr.bf16.gmra.mrb[112].mxu1 %v4592_v53  ;;  %v4833_v10 = vadd.f32 %v3483_v52, %v3482_v22  ;;  %v3485_v26 = vpop.f32.mrb[10].mxu1  ;;  %v4882_v52 = vld [vmem:[#allocation2 + $0xd4] ss:$0 sps:$4 sm:$0x11]  }
 0x11f   : > { %v3486_v50 = vpop.f32.mrb[11].mxu1  ;;  %2511 = vmatprep.mubr.bf16.mxu1 %v4660_v8 }
 0x120   : > { %v4836_v24 = vadd.f32 %v3486_v50, %v3485_v26  ;;  %3871 = vmatmul.mubr.bf16.vlgmr.msra.gmra.mrb[112].mxu0 %v4520_v18  ;;  %v1334_v26 = vshll.u32 %v4870_v51, 16 }
 0x121   : > { %3874 = vmatprep.mubr.bf16.mxu0 %v4560_v9 }
 0x123   : > { %v3416_v0 = vpop.f32.mrb[12].mxu0 }
 0x124   : > { %v3417_v57 = vpop.f32.mrb[13].mxu0 }
 0x125   : > { %v4840_v59 = vadd.f32 %v3417_v57, %v3416_v0  ;;  %v3419_v31 = vpop.f32.mrb[14].mxu0 }
 0x126   : > { %2512 = vmatmul.mubr.bf16.gmra.mrb[116].mxu1 %v4636_v30  ;;  %v3420_v53 = vpop.f32.mrb[15].mxu0 }
 0x127   : > { %v4843_v60 = vadd.f32 %v3420_v53, %v3419_v31  ;;  %2519 = vmatprep.mubr.bf16.mxu1 %v4238_v43  ;;  %v1336_v53 = vrot.slane %v1334_v26, 1 }
 0x128   : > { %3875 = vmatmul.mubr.bf16.gmra.mrb[116].mxu0 %v4598_v1 }
 0x129   : > { %v3488_v5 = vpop.f32.mrb[12].mxu1  ;;  %3878 = vmatprep.mubr.bf16.mxu0 %v4631_v4 }
 0x12a   : > { %v3489_v8 = vpop.f32.mrb[13].mxu1 }
 0x12b   : > { %v4847_v44 = vadd.f32 %v3489_v8, %v3488_v5  ;;  %v3491_v18 = vpop.f32.mrb[14].mxu1 }
 0x12c   : > { %v3492_v9 = vpop.f32.mrb[15].mxu1 }
 0x12d   : > { %v4850_v34 = vadd.f32 %v3492_v9, %v3491_v18 }
 0x12e   : > { %2520 = vmatmul.mubr.bf16.gmra.mrb[120].mxu1 %v4710_v3 }
 0x12f   : > { %2527 = vmatprep.mubr.bf16.mxu1 %v4291_v40 }
 0x130   : > { %3879 = vmatmul.mubr.bf16.gmra.mrb[120].mxu0 %v4657_v6  ;;  %v3422_v1 = vpop.f32.mrb[16].mxu0 }
 0x131   : > { %v3510_v30 = vpop.f32.mrb[16].mxu1  ;;  %3882 = vmatprep.mubr.bf16.mxu0 %v4676_v41  ;;  %v3423_v17 = vpop.f32.mrb[17].mxu0 }
 0x132   : > { %v3511_v43 = vpop.f32.mrb[17].mxu1  ;;  %v4859_v45 = vadd.f32 %v3423_v17, %v3422_v1  ;;  %v3425_v3 = vpop.f32.mrb[18].mxu0 }
 0x133   : > { %v3512_v55 = vadd.f32 %v3511_v43, %v3510_v30  ;;  %v3513_v16 = vpop.f32.mrb[18].mxu1  ;;  %v3426_v40 = vpop.f32.mrb[19].mxu0 }
 0x134   : > { %v3514_v15 = vpop.f32.mrb[19].mxu1  ;;  %v4866_v39 = vadd.f32 %v3426_v40, %v3425_v3 }
 0x135   : > { %v4857_v4 = vadd.f32 %v3512_v55, %v4784_v13  ;;  %v3515_v47 = vadd.f32 %v3514_v15, %v3513_v16 }
 0x136   : > { %2528 = vmatmul.mubr.bf16.gmra.mrb[124].mxu1 %v4727_v36 }
 0x137   : > { %v4863_v6 = vadd.f32 %v3515_v47, %v4787_v54  ;;  %2535 = vmatprep.mubr.bf16.mxu1 %v4350_v48 }
 0x138   : > { %3883 = vmatmul.mubr.bf16.gmra.mrb[124].mxu0 %v4689_v62 }
 0x139   : > { %v3516_v41 = vpop.f32.mrb[20].mxu1  ;;  %3886 = vmatprep.mubr.bf16.mxu0 %v4704_v46 }
 0x13a   : > { %v3517_v49 = vpop.f32.mrb[21].mxu1 }
 0x13b   : > { %v3518_v13 = vadd.f32 %v3517_v49, %v3516_v41  ;;  %v3519_v25 = vpop.f32.mrb[22].mxu1  ;;  %v3428_v36 = vpop.f32.mrb[20].mxu0 }
 0x13c   : > { %v3520_v61 = vpop.f32.mrb[23].mxu1  ;;  %v3429_v37 = vpop.f32.mrb[21].mxu0 }
 0x13d   : > { %v4873_v19 = vadd.f32 %v3518_v13, %v4802_v33  ;;  %v3521_v54 = vadd.f32 %v3520_v61, %v3519_v25  ;;  %v4876_v48 = vadd.f32 %v3429_v37, %v3428_v36  ;;  %v3431_v22 = vpop.f32.mrb[22].mxu0 }
 0x13e   : > { %2536 = vmatmul.mubr.bf16.gmra.mrb[128].mxu1 %v4740_v7  ;;  %v3432_v46 = vpop.f32.mrb[23].mxu0 }
 0x13f   : > { %v4879_v62 = vadd.f32 %v3521_v54, %v4807_v14  ;;  %2543 = vmatprep.mubr.bf16.mxu1 %v4386_v38  ;;  %v4885_v50 = vadd.f32 %v3432_v46, %v3431_v22  ;;  %v1332_v14 = vshrl.u32 %v4870_v51, 16  ;;  %v1339_v38 = vshll.u32 %v4882_v52, 16 }
 0x140   : > { %3887 = vmatmul.mubr.bf16.gmra.mrb[128].mxu0 %v4721_v58 }
 0x141   : > { %v3522_v33 = vpop.f32.mrb[24].mxu1  ;;  %3890 = vmatprep.mubr.bf16.mxu0 %v4737_v56  ;;  %v1337_v55 = vor.u32 %v1336_v53, %v1332_v14  ;;  %v1341_v16 = vrot.slane %v1339_v38, 1 }
 0x142   : > { %v3523_v0 = vpop.f32.mrb[25].mxu1 }
 0x143   : > { %v3524_v7 = vadd.f32 %v3523_v0, %v3522_v33  ;;  %v3525_v57 = vpop.f32.mrb[26].mxu1  ;;  %v3434_v5 = vpop.f32.mrb[24].mxu0  ;;  %v1342_v3 = vsel %vm1022_vm3, %v1337_v55, %v1341_v16 }
 0x144   : > { %v3526_v31 = vpop.f32.mrb[27].mxu1  ;;  %v3435_v9 = vpop.f32.mrb[25].mxu0 }
 0x145   : > { %v4892_v8 = vadd.f32 %v3524_v7, %v4826_v11  ;;  %v3527_v18 = vadd.f32 %v3526_v31, %v3525_v57  ;;  %v4895_v58 = vadd.f32 %v3435_v9, %v3434_v5  ;;  %v3437_v30 = vpop.f32.mrb[26].mxu0 }
 0x146   : > { %2544 = vmatmul.mubr.bf16.gmra.mrb[132].mxu1 %v4750_v20  ;;  %v3438_v56 = vpop.f32.mrb[27].mxu0 }
 0x147   : > { %v4898_v43 = vadd.f32 %v3527_v18, %v4828_v63  ;;  %2551 = vmatprep.mubr.bf16.mxu1 %v4823_v21  ;;  %v4901_v1 = vadd.f32 %v3438_v56, %v3437_v30 }
 0x148   : > { %3891 = vmatmul.mubr.bf16.gmra.mrb[132].mxu0 %v4747_v12 }
 0x149   : > { %v3528_v15 = vpop.f32.mrb[28].mxu1  ;;  %3894 = vmatprep.mubr.bf16.mxu0 %v4757_v27 }
 0x14a   : > { %v3529_v11 = vpop.f32.mrb[29].mxu1 }
 0x14b   : > { %v3530_v17 = vadd.f32 %v3529_v11, %v3528_v15  ;;  %v3531_v47 = vpop.f32.mrb[30].mxu1  ;;  %v3440_v63 = vpop.f32.mrb[28].mxu0 }
 0x14c   : > { %v3532_v20 = vpop.f32.mrb[31].mxu1  ;;  %v3441_v41 = vpop.f32.mrb[29].mxu0 }
 0x14d   : > { %v4907_v40 = vadd.f32 %v3530_v17, %v4840_v59  ;;  %v3533_v21 = vadd.f32 %v3532_v20, %v3531_v47  ;;  %v3442_v49 = vadd.f32 %v3441_v41, %v3440_v63  ;;  %v3443_v13 = vpop.f32.mrb[30].mxu0  ;;  %v1344_v59 = vrot.slane %v4870_v51, 1 }
 0x14e   : > { %2552 = vmatmul.mubr.bf16.gmra.mrb[136].mxu1 %v4759_v28  ;;  %v3444_v25 = vpop.f32.mrb[31].mxu0  ;;  %v1345_v28 = vrot.slane %v4882_v52, 1 }
 0x14f   : > { %v4911_v12 = vadd.f32 %v3533_v21, %v4843_v60  ;;  %2559 = vmatprep.mubr.bf16.mxu1 %v1342_v3  ;;  %v3445_v61 = vadd.f32 %v3444_v25, %v3443_v13 }
 0x150   : > { %3895 = vmatmul.mubr.bf16.gmra.mrb[136].mxu0 %v4767_v35 }
 0x151   : > { %v3534_v27 = vpop.f32.mrb[32].mxu1  ;;  %3898 = vmatprep.mubr.bf16.mxu0 %v4815_v32  ;;  %v1346_v32 = vsel %vm1231_vm2, %v1344_v59, %v1345_v28 }
 0x152   : > { %v3535_v36 = vpop.f32.mrb[33].mxu1 }
 0x153   : > { %v3536_v54 = vadd.f32 %v3535_v36, %v3534_v27  ;;  %v3537_v37 = vpop.f32.mrb[34].mxu1  ;;  %v3446_v46 = vpop.f32.mrb[32].mxu0 }
 0x154   : > { %v3538_v22 = vpop.f32.mrb[35].mxu1  ;;  %v3447_v33 = vpop.f32.mrb[33].mxu0 }
 0x155   : > { %v4918_v60 = vadd.f32 %v3536_v54, %v4859_v45  ;;  %v3539_v26 = vadd.f32 %v3538_v22, %v3537_v37  ;;  %v3448_v0 = vadd.f32 %v3447_v33, %v3446_v46  ;;  %v3449_v35 = vpop.f32.mrb[34].mxu0 }
 0x156   : > { %2560 = vmatmul.mubr.bf16.gmra.mrb[140].mxu1 %v4870_v51  ;;  %v3450_v57 = vpop.f32.mrb[35].mxu0 }
 0x157   : > { %v4922_v7 = vadd.f32 %v3539_v26, %v4866_v39  ;;  %v3451_v31 = vadd.f32 %v3450_v57, %v3449_v35 }
 0x158   : > { %3899 = vmatmul.mubr.bf16.gmra.mrb[140].mxu0 %v1346_v32 }
 0x159   : > { %v3540_v14 = vpop.f32.mrb[36].mxu1 }
 0x15a   : > { %v3541_v52 = vpop.f32.mrb[37].mxu1 }
 0x15b   : > { %v3542_v53 = vadd.f32 %v3541_v52, %v3540_v14  ;;  %v3543_v38 = vpop.f32.mrb[38].mxu1  ;;  %v3452_v5 = vpop.f32.mrb[36].mxu0 }
 0x15c   : > { %v3544_v45 = vpop.f32.mrb[39].mxu1  ;;  %v3453_v9 = vpop.f32.mrb[37].mxu0 }
 0x15d   : > { %v4926_v18 = vadd.f32 %v3542_v53, %v4876_v48  ;;  %v3545_v51 = vadd.f32 %v3544_v45, %v3543_v38  ;;  %v3454_v30 = vadd.f32 %v3453_v9, %v3452_v5  ;;  %v3455_v56 = vpop.f32.mrb[38].mxu0 }
 0x15e   : > { %v3456_v55 = vpop.f32.mrb[39].mxu0 }
 0x15f   : > { %v4929_v39 = vadd.f32 %v3545_v51, %v4885_v50  ;;  %v3457_v16 = vadd.f32 %v3456_v55, %v3455_v56 }
 0x161   : > { %v3546_v15 = vpop.f32.mrb[40].mxu1 }
 0x162   : > { %v3547_v11 = vpop.f32.mrb[41].mxu1 }
 0x163   : > { %v3548_v17 = vadd.f32 %v3547_v11, %v3546_v15  ;;  %v3549_v47 = vpop.f32.mrb[42].mxu1  ;;  %v3458_v3 = vpop.f32.mrb[40].mxu0 }
 0x164   : > { %v3550_v20 = vpop.f32.mrb[43].mxu1  ;;  %v3459_v21 = vpop.f32.mrb[41].mxu0 }
 0x165   : > { %v4932_v63 = vadd.f32 %v3548_v17, %v4895_v58  ;;  %v3551_v48 = vadd.f32 %v3550_v20, %v3549_v47  ;;  %v3460_v41 = vadd.f32 %v3459_v21, %v3458_v3  ;;  %v3461_v13 = vpop.f32.mrb[42].mxu0 }
 0x166   : > { %v3462_v50 = vpop.f32.mrb[43].mxu0 }
 0x167   : > { %v4935_v25 = vadd.f32 %v3551_v48, %v4901_v1  ;;  %v3463_v27 = vadd.f32 %v3462_v50, %v3461_v13 }
 0x169   : > { %v3552_v36 = vpop.f32.mrb[44].mxu1 }
 0x16a   : > { %v3553_v54 = vpop.f32.mrb[45].mxu1 }
 0x16b   : > { %v3554_v37 = vadd.f32 %v3553_v54, %v3552_v36  ;;  %v3555_v59 = vpop.f32.mrb[46].mxu1  ;;  %v3464_v22 = vpop.f32.mrb[44].mxu0 }
 0x16c   : > { %v3556_v28 = vpop.f32.mrb[47].mxu1  ;;  %v3465_v58 = vpop.f32.mrb[45].mxu0 }
 0x16d   : > { %v4937_v46 = vadd.f32 %v3554_v37, %v3442_v49  ;;  %v3557_v26 = vadd.f32 %v3556_v28, %v3555_v59  ;;  %v3466_v33 = vadd.f32 %v3465_v58, %v3464_v22  ;;  %v3467_v35 = vpop.f32.mrb[46].mxu0 }
 0x16e   : > { %v3468_v57 = vpop.f32.mrb[47].mxu0 }
 0x16f   : > { %v4939_v32 = vadd.f32 %v3557_v26, %v3445_v61  ;;  %v3469_v14 = vadd.f32 %v3468_v57, %v3467_v35 }
 0x171   : > { %v3558_v1 = vpop.f32.mrb[48].mxu1 }
 0x172   : > { %v3559_v52 = vpop.f32.mrb[49].mxu1 }
 0x173   : > { %v3560_v53 = vadd.f32 %v3559_v52, %v3558_v1  ;;  %v3561_v38 = vpop.f32.mrb[50].mxu1  ;;  %v3622_v5 = vpop.f32.mrb[48].mxu0 }
 0x174   : > { %v3562_v45 = vpop.f32.mrb[51].mxu1  ;;  %v3623_v56 = vpop.f32.mrb[49].mxu0 }
 0x175   : > { %v4941_v51 = vadd.f32 %v3560_v53, %v3448_v0  ;;  %v3563_v9 = vadd.f32 %v3562_v45, %v3561_v38  ;;  %v3624_v49 = vadd.f32 %v3623_v56, %v3622_v5  ;;  %v3625_v55 = vpop.f32.mrb[50].mxu0 }
 0x176   : > { %v3626_v11 = vpop.f32.mrb[51].mxu0 }
 0x177   : > { %v4943_v15 = vadd.f32 %v3563_v9, %v3451_v31  ;;  %v4946_v61 = vadd.f32 %v3624_v49, %v4857_v4  ;;  %v3627_v17 = vadd.f32 %v3626_v11, %v3625_v55 }
 0x179   : > { %v3564_v47 = vpop.f32.mrb[52].mxu1  ;;  %v4949_v3 = vadd.f32 %v3627_v17, %v4863_v6 }
 0x17a   : > { %v3565_v20 = vpop.f32.mrb[53].mxu1 }
 0x17b   : > { %v3566_v48 = vadd.f32 %v3565_v20, %v3564_v47  ;;  %v3567_v21 = vpop.f32.mrb[54].mxu1  ;;  %v3628_v13 = vpop.f32.mrb[52].mxu0 }
 0x17c   : > { %v3568_v0 = vpop.f32.mrb[55].mxu1  ;;  %v3629_v54 = vpop.f32.mrb[53].mxu0 }
 0x17d   : > { %v4951_v50 = vadd.f32 %v3566_v48, %v3454_v30  ;;  %v3569_v36 = vadd.f32 %v3568_v0, %v3567_v21  ;;  %v3630_v31 = vadd.f32 %v3629_v54, %v3628_v13  ;;  %v3631_v37 = vpop.f32.mrb[54].mxu0 }
 0x17e   : > { %v3632_v4 = vpop.f32.mrb[55].mxu0 }
 0x17f   : > { %v4953_v59 = vadd.f32 %v3569_v36, %v3457_v16  ;;  %v4956_v28 = vadd.f32 %v3630_v31, %v4873_v19  ;;  %v3633_v22 = vadd.f32 %v3632_v4, %v3631_v37 }
 0x181   : > { %v3570_v26 = vpop.f32.mrb[56].mxu1  ;;  %v4959_v58 = vadd.f32 %v3633_v22, %v4879_v62 }
 0x182   : > { %v3571_v6 = vpop.f32.mrb[57].mxu1 }
 0x183   : > { %v3572_v35 = vadd.f32 %v3571_v6, %v3570_v26  ;;  %v3573_v57 = vpop.f32.mrb[58].mxu1  ;;  %v3634_v1 = vpop.f32.mrb[56].mxu0 }
 0x184   : > { %v3574_v30 = vpop.f32.mrb[59].mxu1  ;;  %v3635_v38 = vpop.f32.mrb[57].mxu0 }
 0x185   : > { %v4961_v52 = vadd.f32 %v3572_v35, %v3460_v41  ;;  %v3575_v53 = vadd.f32 %v3574_v30, %v3573_v57  ;;  %v3636_v16 = vadd.f32 %v3635_v38, %v3634_v1  ;;  %v3637_v45 = vpop.f32.mrb[58].mxu0 }
 0x186   : > { %v3638_v19 = vpop.f32.mrb[59].mxu0 }
 0x187   : > { %v4963_v5 = vadd.f32 %v3575_v53, %v3463_v27  ;;  %v4966_v9 = vadd.f32 %v3636_v16, %v4892_v8  ;;  %v3639_v56 = vadd.f32 %v3638_v19, %v3637_v45 }
 0x189   : > { %v3576_v49 = vpop.f32.mrb[60].mxu1  ;;  %v4969_v55 = vadd.f32 %v3639_v56, %v4898_v43 }
 0x18a   : > { %v3577_v62 = vpop.f32.mrb[61].mxu1 }
 0x18b   : > { %v3578_v11 = vadd.f32 %v3577_v62, %v3576_v49  ;;  %v3579_v17 = vpop.f32.mrb[62].mxu1  ;;  %v3640_v47 = vpop.f32.mrb[60].mxu0 }
 0x18c   : > { %v3580_v41 = vpop.f32.mrb[63].mxu1  ;;  %v3641_v21 = vpop.f32.mrb[61].mxu0 }
 0x18d   : > { %v4971_v20 = vadd.f32 %v3578_v11, %v3466_v33  ;;  %v3581_v48 = vadd.f32 %v3580_v41, %v3579_v17  ;;  %v3642_v27 = vadd.f32 %v3641_v21, %v3640_v47  ;;  %v3643_v0 = vpop.f32.mrb[62].mxu0 }
 0x18e   : > { %v3644_v8 = vpop.f32.mrb[63].mxu0 }
 0x18f   : > { %v4973_v13 = vadd.f32 %v3581_v48, %v3469_v14  ;;  %v4976_v36 = vadd.f32 %v3642_v27, %v4907_v40  ;;  %v3645_v54 = vadd.f32 %v3644_v8, %v3643_v0 }
 0x191   : > { %v3582_v31 = vpop.f32.mrb[64].mxu1  ;;  %v4979_v37 = vadd.f32 %v3645_v54, %v4911_v12 }
 0x192   : > { %v3583_v43 = vpop.f32.mrb[65].mxu1 }
 0x193   : > { %v3584_v4 = vadd.f32 %v3583_v43, %v3582_v31  ;;  %v3585_v22 = vpop.f32.mrb[66].mxu1  ;;  %v3646_v26 = vpop.f32.mrb[64].mxu0 }
 0x194   : > { %v3586_v33 = vpop.f32.mrb[67].mxu1  ;;  %v3647_v14 = vpop.f32.mrb[65].mxu0 }
 0x195   : > { %v4982_v6 = vadd.f32 %v3584_v4, %v4793_v2  ;;  %v3587_v35 = vadd.f32 %v3586_v33, %v3585_v22  ;;  %v3648_v57 = vadd.f32 %v3647_v14, %v3646_v26  ;;  %v3649_v30 = vpop.f32.mrb[66].mxu0 }
 0x196   : > { %v3650_v1 = vpop.f32.mrb[67].mxu0 }
 0x197   : > { %v4985_v40 = vadd.f32 %v3587_v35, %v4797_v42  ;;  %v4988_v53 = vadd.f32 %v3648_v57, %v4918_v60  ;;  %v3651_v12 = vadd.f32 %v3650_v1, %v3649_v30 }
 0x199   : > { %v3588_v38 = vpop.f32.mrb[68].mxu1  ;;  %v4991_v45 = vadd.f32 %v3651_v12, %v4922_v7 }
 0x19a   : > { %v3589_v16 = vpop.f32.mrb[69].mxu1 }
 0x19b   : > { %v3590_v19 = vadd.f32 %v3589_v16, %v3588_v38  ;;  %v3591_v2 = vpop.f32.mrb[70].mxu1  ;;  %v3652_v49 = vpop.f32.mrb[68].mxu0 }
 0x19c   : > { %v3592_v56 = vpop.f32.mrb[71].mxu1  ;;  %v3653_v42 = vpop.f32.mrb[69].mxu0 }
 0x19d   : > { %v4994_v62 = vadd.f32 %v3590_v19, %v4812_v23  ;;  %v3593_v11 = vadd.f32 %v3592_v56, %v3591_v2  ;;  %v3654_v17 = vadd.f32 %v3653_v42, %v3652_v49  ;;  %v3655_v41 = vpop.f32.mrb[70].mxu0 }
 0x19e   : > { %v3656_v47 = vpop.f32.mrb[71].mxu0 }
 0x19f   : > { %v4997_v60 = vadd.f32 %v3593_v11, %v4817_v29  ;;  %v5000_v48 = vadd.f32 %v3654_v17, %v4926_v18  ;;  %v3657_v7 = vadd.f32 %v3656_v47, %v3655_v41 }
 0x1a1   : > { %v3594_v21 = vpop.f32.mrb[72].mxu1  ;;  %v5003_v0 = vadd.f32 %v3657_v7, %v4929_v39 }
 0x1a2   : > { %v3595_v27 = vpop.f32.mrb[73].mxu1 }
 0x1a3   : > { %v3596_v8 = vadd.f32 %v3595_v27, %v3594_v21  ;;  %v3597_v23 = vpop.f32.mrb[74].mxu1  ;;  %v3658_v31 = vpop.f32.mrb[72].mxu0 }
 0x1a4   : > { %v3598_v54 = vpop.f32.mrb[75].mxu1  ;;  %v3659_v29 = vpop.f32.mrb[73].mxu0 }
 0x1a5   : > { %v5006_v43 = vadd.f32 %v3596_v8, %v4833_v10  ;;  %v3599_v4 = vadd.f32 %v3598_v54, %v3597_v23  ;;  %v3660_v22 = vadd.f32 %v3659_v29, %v3658_v31  ;;  %v3661_v33 = vpop.f32.mrb[74].mxu0 }
 0x1a6   : > { %v3662_v26 = vpop.f32.mrb[75].mxu0 }
 0x1a7   : > { %v5009_v18 = vadd.f32 %v3599_v4, %v4836_v24  ;;  %v5012_v35 = vadd.f32 %v3660_v22, %v4932_v63  ;;  %v3663_v39 = vadd.f32 %v3662_v26, %v3661_v33 }
 0x1a9   : > { %v3600_v14 = vpop.f32.mrb[76].mxu1  ;;  %v5015_v30 = vadd.f32 %v3663_v39, %v4935_v25 }
 0x1aa   : > { %v3601_v57 = vpop.f32.mrb[77].mxu1 }
 0x1ab   : > { %v3602_v1 = vadd.f32 %v3601_v57, %v3600_v14  ;;  %v3603_v10 = vpop.f32.mrb[78].mxu1  ;;  %v3664_v38 = vpop.f32.mrb[76].mxu0 }
 0x1ac   : > { %v3604_v12 = vpop.f32.mrb[79].mxu1  ;;  %v3665_v24 = vpop.f32.mrb[77].mxu0 }
 0x1ad   : > { %v5018_v16 = vadd.f32 %v3602_v1, %v4847_v44  ;;  %v3605_v19 = vadd.f32 %v3604_v12, %v3603_v10  ;;  %v3666_v2 = vadd.f32 %v3665_v24, %v3664_v38  ;;  %v3667_v56 = vpop.f32.mrb[78].mxu0 }
 0x1ae   : > { %v3668_v49 = vpop.f32.mrb[79].mxu0 }
 0x1af   : > { %v5021_v63 = vadd.f32 %v3605_v19, %v4850_v34  ;;  %v5024_v11 = vadd.f32 %v3666_v2, %v4937_v46  ;;  %v3669_v25 = vadd.f32 %v3668_v49, %v3667_v56 }
 0x1b1   : > { %v3734_v42 = vpop.f32.mrb[80].mxu1  ;;  %v5027_v41 = vadd.f32 %v3669_v25, %v4939_v32 }
 0x1b2   : > { %v3735_v17 = vpop.f32.mrb[81].mxu1 }
 0x1b3   : > { %v3736_v47 = vadd.f32 %v3735_v17, %v3734_v42  ;;  %v3737_v44 = vpop.f32.mrb[82].mxu1  ;;  %v3670_v21 = vpop.f32.mrb[80].mxu0 }
 0x1b4   : > { %v3738_v7 = vpop.f32.mrb[83].mxu1  ;;  %v3671_v34 = vpop.f32.mrb[81].mxu0 }
 0x1b5   : > { %v3739_v27 = vadd.f32 %v3738_v7, %v3737_v44  ;;  %v5030_v8 = vadd.f32 %v3736_v47, %v4946_v61  ;;  %v3672_v23 = vadd.f32 %v3671_v34, %v3670_v21  ;;  %v3673_v54 = vpop.f32.mrb[82].mxu0 }
 0x1b6   : > { %v3674_v31 = vpop.f32.mrb[83].mxu0 }
 0x1b7   : > { %v5033_v46 = vadd.f32 %v3739_v27, %v4949_v3  ;;  %v5036_v4 = vadd.f32 %v3672_v23, %v4941_v51  ;;  %v3675_v32 = vadd.f32 %v3674_v31, %v3673_v54 }
 0x1b9   : > { %v3740_v29 = vpop.f32.mrb[84].mxu1  ;;  %v5039_v33 = vadd.f32 %v3675_v32, %v4943_v15 }
 0x1ba   : > { %v3741_v22 = vpop.f32.mrb[85].mxu1 }
 0x1bb   : > { %v3742_v26 = vadd.f32 %v3741_v22, %v3740_v29  ;;  %v3743_v39 = vpop.f32.mrb[86].mxu1  ;;  %v3676_v14 = vpop.f32.mrb[84].mxu0 }
 0x1bc   : > { %v3744_v61 = vpop.f32.mrb[87].mxu1  ;;  %v3677_v3 = vpop.f32.mrb[85].mxu0 }
 0x1bd   : > { %v3745_v57 = vadd.f32 %v3744_v61, %v3743_v39  ;;  %v5042_v1 = vadd.f32 %v3742_v26, %v4956_v28  ;;  %v3678_v10 = vadd.f32 %v3677_v3, %v3676_v14  ;;  %v3679_v12 = vpop.f32.mrb[86].mxu0 }
 0x1be   : > { %v3680_v38 = vpop.f32.mrb[87].mxu0 }
 0x1bf   : > { %v5045_v51 = vadd.f32 %v3745_v57, %v4959_v58  ;;  %v5048_v19 = vadd.f32 %v3678_v10, %v4951_v50  ;;  %v3681_v15 = vadd.f32 %v3680_v38, %v3679_v12 }
 0x1c1   : > { %v3746_v24 = vpop.f32.mrb[88].mxu1  ;;  %v5051_v56 = vadd.f32 %v3681_v15, %v4953_v59 }
 0x1c2   : > { %v3747_v2 = vpop.f32.mrb[89].mxu1 }
 0x1c3   : > { %v3748_v49 = vadd.f32 %v3747_v2, %v3746_v24  ;;  %v3749_v25 = vpop.f32.mrb[90].mxu1  ;;  %v3682_v42 = vpop.f32.mrb[88].mxu0 }
 0x1c4   : > { %v3750_v28 = vpop.f32.mrb[91].mxu1  ;;  %v3683_v58 = vpop.f32.mrb[89].mxu0 }
 0x1c5   : > { %v3751_v17 = vadd.f32 %v3750_v28, %v3749_v25  ;;  %v5054_v47 = vadd.f32 %v3748_v49, %v4966_v9  ;;  %v3684_v44 = vadd.f32 %v3683_v58, %v3682_v42  ;;  %v3685_v7 = vpop.f32.mrb[90].mxu0 }
 0x1c6   : > { %v3686_v21 = vpop.f32.mrb[91].mxu0 }
 0x1c7   : > { %v5057_v50 = vadd.f32 %v3751_v17, %v4969_v55  ;;  %v5060_v27 = vadd.f32 %v3684_v44, %v4961_v52  ;;  %v3687_v59 = vadd.f32 %v3686_v21, %v3685_v7 }
 0x1c9   : > { %v3752_v34 = vpop.f32.mrb[92].mxu1  ;;  %v5063_v54 = vadd.f32 %v3687_v59, %v4963_v5 }
 0x1ca   : > { %v3753_v23 = vpop.f32.mrb[93].mxu1 }
 0x1cb   : > { %v3754_v31 = vadd.f32 %v3753_v23, %v3752_v34  ;;  %v3755_v32 = vpop.f32.mrb[94].mxu1  ;;  %v3688_v29 = vpop.f32.mrb[92].mxu0 }
 0x1cc   : > { %v3756_v9 = vpop.f32.mrb[95].mxu1  ;;  %v3689_v55 = vpop.f32.mrb[93].mxu0 }
 0x1cd   : > { %v3757_v22 = vadd.f32 %v3756_v9, %v3755_v32  ;;  %v5066_v26 = vadd.f32 %v3754_v31, %v4976_v36  ;;  %v3690_v39 = vadd.f32 %v3689_v55, %v3688_v29  ;;  %v3691_v61 = vpop.f32.mrb[94].mxu0 }
 0x1ce   : > { %v3692_v14 = vpop.f32.mrb[95].mxu0 }
 0x1cf   : > { %v5069_v52 = vadd.f32 %v3757_v22, %v4979_v37  ;;  %v5072_v57 = vadd.f32 %v3690_v39, %v4971_v20  ;;  %v3693_v5 = vadd.f32 %v3692_v14, %v3691_v61 }
 0x1d1   : > { %v3758_v3 = vpop.f32.mrb[96].mxu1  ;;  %v5075_v12 = vadd.f32 %v3693_v5, %v4973_v13 }
 0x1d2   : > { %v3759_v10 = vpop.f32.mrb[97].mxu1 }
 0x1d3   : > { %v3760_v38 = vadd.f32 %v3759_v10, %v3758_v3  ;;  %v3761_v15 = vpop.f32.mrb[98].mxu1  ;;  %v3694_v24 = vpop.f32.mrb[96].mxu0 }
 0x1d4   : > { %v3762_v36 = vpop.f32.mrb[99].mxu1  ;;  %v3695_v37 = vpop.f32.mrb[97].mxu0 }
 0x1d5   : > { %v3763_v2 = vadd.f32 %v3762_v36, %v3761_v15  ;;  %v5078_v49 = vadd.f32 %v3760_v38, %v4988_v53  ;;  %v3696_v25 = vadd.f32 %v3695_v37, %v3694_v24  ;;  %v3697_v28 = vpop.f32.mrb[98].mxu0 }
 0x1d6   : > { %v3698_v42 = vpop.f32.mrb[99].mxu0 }
 0x1d7   : > { %v5081_v20 = vadd.f32 %v3763_v2, %v4991_v45  ;;  %v5084_v17 = vadd.f32 %v3696_v25, %v4982_v6  ;;  %v3699_v13 = vadd.f32 %v3698_v42, %v3697_v28 }
 0x1d9   : > { %v3764_v58 = vpop.f32.mrb[100].mxu1  ;;  %v5087_v7 = vadd.f32 %v3699_v13, %v4985_v40 }
 0x1da   : > { %v3765_v44 = vpop.f32.mrb[101].mxu1 }
 0x1db   : > { %v3766_v21 = vadd.f32 %v3765_v44, %v3764_v58  ;;  %v3767_v59 = vpop.f32.mrb[102].mxu1  ;;  %v3700_v34 = vpop.f32.mrb[100].mxu0 }
 0x1dc   : > { %v3768_v53 = vpop.f32.mrb[103].mxu1  ;;  %v3701_v45 = vpop.f32.mrb[101].mxu0 }
 0x1dd   : > { %v3769_v23 = vadd.f32 %v3768_v53, %v3767_v59  ;;  %v5090_v31 = vadd.f32 %v3766_v21, %v5000_v48  ;;  %v3702_v32 = vadd.f32 %v3701_v45, %v3700_v34  ;;  %v3703_v9 = vpop.f32.mrb[102].mxu0 }
 0x1de   : > { %v3704_v29 = vpop.f32.mrb[103].mxu0 }
 0x1df   : > { %v5093_v6 = vadd.f32 %v3769_v23, %v5003_v0  ;;  %v5096_v22 = vadd.f32 %v3702_v32, %v4994_v62  ;;  %v3705_v40 = vadd.f32 %v3704_v29, %v3703_v9 }
 0x1e1   : > { %v3770_v55 = vpop.f32.mrb[104].mxu1  ;;  %v5099_v61 = vadd.f32 %v3705_v40, %v4997_v60 }
 0x1e2   : > { %v3771_v39 = vpop.f32.mrb[105].mxu1 }
 0x1e3   : > { %v3772_v14 = vadd.f32 %v3771_v39, %v3770_v55  ;;  %v3773_v5 = vpop.f32.mrb[106].mxu1  ;;  %v3706_v3 = vpop.f32.mrb[104].mxu0 }
 0x1e4   : > { %v3774_v48 = vpop.f32.mrb[107].mxu1  ;;  %v3707_v0 = vpop.f32.mrb[105].mxu0 }
 0x1e5   : > { %v3775_v10 = vadd.f32 %v3774_v48, %v3773_v5  ;;  %v5102_v38 = vadd.f32 %v3772_v14, %v5012_v35  ;;  %v3708_v15 = vadd.f32 %v3707_v0, %v3706_v3  ;;  %v3709_v36 = vpop.f32.mrb[106].mxu0 }
 0x1e6   : > { %v3710_v24 = vpop.f32.mrb[107].mxu0 }
 0x1e7   : > { %v5105_v62 = vadd.f32 %v3775_v10, %v5015_v30  ;;  %v5108_v2 = vadd.f32 %v3708_v15, %v5006_v43  ;;  %v3711_v60 = vadd.f32 %v3710_v24, %v3709_v36 }
 0x1e9   : > { %v3776_v37 = vpop.f32.mrb[108].mxu1  ;;  %v5111_v28 = vadd.f32 %v3711_v60, %v5009_v18 }
 0x1ea   : > { %v3777_v25 = vpop.f32.mrb[109].mxu1 }
 0x1eb   : > { %v3778_v42 = vadd.f32 %v3777_v25, %v3776_v37  ;;  %v3779_v13 = vpop.f32.mrb[110].mxu1  ;;  %v3712_v58 = vpop.f32.mrb[108].mxu0 }
 0x1ec   : > { %v3780_v35 = vpop.f32.mrb[111].mxu1  ;;  %v3713_v30 = vpop.f32.mrb[109].mxu0 }
 0x1ed   : > { %v3781_v44 = vadd.f32 %v3780_v35, %v3779_v13  ;;  %v5114_v21 = vadd.f32 %v3778_v42, %v5024_v11  ;;  %v3714_v59 = vadd.f32 %v3713_v30, %v3712_v58  ;;  %v3715_v53 = vpop.f32.mrb[110].mxu0 }
 0x1ee   : > { %v3716_v34 = vpop.f32.mrb[111].mxu0 }
 0x1ef   : > { %v5117_v43 = vadd.f32 %v3781_v44, %v5027_v41  ;;  %v5120_v23 = vadd.f32 %v3714_v59, %v5018_v16  ;;  %v3717_v18 = vadd.f32 %v3716_v34, %v3715_v53 }
 0x1f1   : > { %v3782_v45 = vpop.f32.mrb[112].mxu1  ;;  %v5123_v9 = vadd.f32 %v3717_v18, %v5021_v63 }
 0x1f2   : > { %v3783_v32 = vpop.f32.mrb[113].mxu1 }
 0x1f3   : > { %v3784_v29 = vadd.f32 %v3783_v32, %v3782_v45  ;;  %v3785_v11 = vpop.f32.mrb[114].mxu1  ;;  %v3872_v55 = vpop.f32.mrb[112].mxu0 }
 0x1f4   : > { %v3786_v40 = vpop.f32.mrb[115].mxu1  ;;  %v2611_v41 = vadd.f32 %v3872_v55, %v5042_v1  ;;  %v2602_v5 = vpop.f32.mrb[113].mxu0 }
 0x1f5   : > { %v3787_v39 = vadd.f32 %v3786_v40, %v3785_v11  ;;  %v5126_v14 = vadd.f32 %v3784_v29, %v5036_v4  ;;  %v2603_v16 = vadd.f32 %v2602_v5, %v5030_v8  ;;  %v3873_v48 = vpop.f32.mrb[114].mxu0 }
 0x1f6   : > { %v2614_v63 = vadd.f32 %v3873_v48, %v5045_v51  ;;  %v2605_v10 = vpop.f32.mrb[115].mxu0  ;;  %v2769_v37 = vmul.f32 %v2611_v41, %v2611_v41 }
 0x1f7   : > { %v5131_v3 = vadd.f32 %v3787_v39, %v5039_v33  ;;  %v2606_v4 = vadd.f32 %v2605_v10, %v5033_v46  ;;  %v2767_v0 = vmul.f32 %v2603_v16, %v2603_v16 }
 0x1f8   : > { %v3295_v8 = vpack.c.bf16 %v2614_v63, %v2611_v41  ;;  %v2770_v46 = vmul.f32 %v2614_v63, %v2614_v63 }
 0x1f9   : > { %v3788_v1 = vpop.f32.mrb[116].mxu1  ;;  %v2729_v36 = vadd.f32 %v2606_v4, %v2603_v16  ;;  %v2768_v33 = vmul.f32 %v2606_v4, %v2606_v4  ;;  %v3290_v24 = vpack.c.bf16 %v2606_v4, %v2603_v16 }
 0x1fa   : > { %v3789_v15 = vpop.f32.mrb[117].mxu1  ;;  %3367 = vst [vmem:[%s5139_s15 + $0x8] sm:$0xff] %v3295_v8  }
 0x1fb   : > { %v3790_v60 = vadd.f32 %v3789_v15, %v3788_v1  ;;  %v3791_v51 = vpop.f32.mrb[118].mxu1  ;;  %v2730_v42 = vadd.f32 %v2729_v36, %v2611_v41  ;;  %v2799_v13 = vadd.f32 %v2768_v33, %v2767_v0  ;;  %3291 = vst [vmem:[%s5139_s15] sm:$0xff] %v3290_v24   ;;  %v3876_v35 = vpop.f32.mrb[116].mxu0 }
 0x1fc   : > { %v3792_v25 = vpop.f32.mrb[119].mxu1  ;;  %v2627_v30 = vadd.f32 %v3876_v35, %v5066_v26  ;;  %v2618_v59 = vpop.f32.mrb[117].mxu0 }
 0x1fd   : > { %v3793_v58 = vadd.f32 %v3792_v25, %v3791_v51  ;;  %v5145_v44 = vadd.f32 %v3790_v60, %v5048_v19  ;;  %v2800_v53 = vadd.f32 %v2799_v13, %v2769_v37  ;;  %v2619_v34 = vadd.f32 %v2618_v59, %v5054_v47  ;;  %v3877_v45 = vpop.f32.mrb[118].mxu0 }
 0x1fe   : > { %v2731_v18 = vadd.f32 %v2730_v42, %v2614_v63  ;;  %v2630_v29 = vadd.f32 %v3877_v45, %v5069_v52  ;;  %v2621_v11 = vpop.f32.mrb[119].mxu0  ;;  %v2773_v1 = vmul.f32 %v2627_v30, %v2627_v30 }
 0x1ff   : > { %v5150_v32 = vadd.f32 %v3793_v58, %v5051_v56  ;;  %v2771_v55 = vmul.f32 %v2619_v34, %v2619_v34  ;;  %v2801_v19 = vadd.f32 %v2800_v53, %v2770_v46  ;;  %v2622_v39 = vadd.f32 %v2621_v11, %v5057_v50 }
 0x200   : > { %v2732_v40 = vadd.f32 %v2731_v18, %v2619_v34  ;;  %v3305_v41 = vpack.c.bf16 %v2630_v29, %v2627_v30  ;;  %v2774_v36 = vmul.f32 %v2630_v29, %v2630_v29 }
 0x201   : > { %v3794_v26 = vpop.f32.mrb[120].mxu1  ;;  %v2802_v16 = vadd.f32 %v2801_v19, %v2771_v55  ;;  %v2772_v48 = vmul.f32 %v2622_v39, %v2622_v39  ;;  %v3300_v63 = vpack.c.bf16 %v2622_v39, %v2619_v34 }
 0x202   : > { %v3795_v5 = vpop.f32.mrb[121].mxu1  ;;  %v2733_v47 = vadd.f32 %v2732_v40, %v2622_v39  ;;  %3369 = vst [vmem:[%s5139_s15 + $0x18] sm:$0xff] %v3305_v41  }
 0x203   : > { %v3797_v10 = vpop.f32.mrb[122].mxu1  ;;  %v3796_v56 = vadd.f32 %v3795_v5, %v3794_v26  ;;  %v2803_v0 = vadd.f32 %v2802_v16, %v2772_v48  ;;  %3368 = vst [vmem:[%s5139_s15 + $0x10] sm:$0xff] %v3300_v63   ;;  %v3880_v8 = vpop.f32.mrb[120].mxu0 }
 0x204   : > { %v3798_v4 = vpop.f32.mrb[123].mxu1  ;;  %v2734_v52 = vadd.f32 %v2733_v47, %v2627_v30  ;;  %v2643_v50 = vadd.f32 %v3880_v8, %v5090_v31  ;;  %v2634_v33 = vpop.f32.mrb[121].mxu0 }
 0x205   : > { %v3799_v15 = vadd.f32 %v3798_v4, %v3797_v10  ;;  %v5158_v24 = vadd.f32 %v3796_v56, %v5060_v27  ;;  %v2804_v60 = vadd.f32 %v2803_v0, %v2773_v1  ;;  %v2635_v51 = vadd.f32 %v2634_v33, %v5078_v49  ;;  %v3881_v25 = vpop.f32.mrb[122].mxu0 }
 0x206   : > { %v2735_v37 = vadd.f32 %v2734_v52, %v2630_v29  ;;  %v2646_v13 = vadd.f32 %v3881_v25, %v5093_v6  ;;  %v2637_v35 = vpop.f32.mrb[123].mxu0  ;;  %v2777_v40 = vmul.f32 %v2643_v50, %v2643_v50 }
 0x207   : > { %v5162_v42 = vadd.f32 %v3799_v15, %v5063_v54  ;;  %v2775_v46 = vmul.f32 %v2635_v51, %v2635_v51  ;;  %v2805_v30 = vadd.f32 %v2804_v60, %v2774_v36  ;;  %v2638_v31 = vadd.f32 %v2637_v35, %v5081_v20 }
 0x208   : > { %v2736_v58 = vadd.f32 %v2735_v37, %v2635_v51  ;;  %v3315_v59 = vpack.c.bf16 %v2646_v13, %v2643_v50  ;;  %v2778_v26 = vmul.f32 %v2646_v13, %v2646_v13 }
 0x209   : > { %v3800_v27 = vpop.f32.mrb[124].mxu1  ;;  %v2806_v34 = vadd.f32 %v2805_v30, %v2775_v46  ;;  %v2776_v18 = vmul.f32 %v2638_v31, %v2638_v31  ;;  %v3310_v45 = vpack.c.bf16 %v2638_v31, %v2635_v51 }
 0x20a   : > { %v3801_v53 = vpop.f32.mrb[125].mxu1  ;;  %v2737_v49 = vadd.f32 %v2736_v58, %v2638_v31  ;;  %3371 = vst [vmem:[%s5139_s15 + $0x28] sm:$0xff] %v3315_v59  }
 0x20b   : > { %v3803_v29 = vpop.f32.mrb[126].mxu1  ;;  %v3802_v54 = vadd.f32 %v3801_v53, %v3800_v27  ;;  %v2807_v55 = vadd.f32 %v2806_v34, %v2776_v18  ;;  %3370 = vst [vmem:[%s5139_s15 + $0x20] sm:$0xff] %v3310_v45   ;;  %v3884_v19 = vpop.f32.mrb[124].mxu0 }
 0x20c   : > { %v3804_v11 = vpop.f32.mrb[127].mxu1  ;;  %v2738_v6 = vadd.f32 %v2737_v49, %v2643_v50  ;;  %v2659_v20 = vadd.f32 %v3884_v19, %v5114_v21  ;;  %v2650_v41 = vpop.f32.mrb[125].mxu0 }
 0x20d   : > { %v3805_v39 = vadd.f32 %v3804_v11, %v3803_v29  ;;  %v2530_v5 = vadd.f32 %v3802_v54, %v5072_v57  ;;  %v2808_v16 = vadd.f32 %v2807_v55, %v2777_v40  ;;  %v2651_v47 = vadd.f32 %v2650_v41, %v5102_v38  ;;  %v3885_v63 = vpop.f32.mrb[126].mxu0 }
 0x20e   : > { %v2739_v48 = vadd.f32 %v2738_v6, %v2646_v13  ;;  %v2662_v56 = vadd.f32 %v3885_v63, %v5117_v43  ;;  %v2653_v4 = vpop.f32.mrb[127].mxu0  ;;  %v2781_v37 = vmul.f32 %v2659_v20, %v2659_v20 }
 0x20f   : > { %v5172_v10 = vadd.f32 %v3805_v39, %v5075_v12  ;;  %v2779_v52 = vmul.f32 %v2651_v47, %v2651_v47  ;;  %v2809_v0 = vadd.f32 %v2808_v16, %v2778_v26  ;;  %v2654_v21 = vadd.f32 %v2653_v4, %v5105_v62 }
 0x210   : > { %v2740_v1 = vadd.f32 %v2739_v48, %v2651_v47  ;;  %v3325_v57 = vpack.c.bf16 %v2662_v56, %v2659_v20  ;;  %v2782_v58 = vmul.f32 %v2662_v56, %v2662_v56 }
 0x211   : > { %v3806_v8 = vpop.f32.mrb[128].mxu1  ;;  %v2810_v36 = vadd.f32 %v2809_v0, %v2779_v52  ;;  %v2780_v50 = vmul.f32 %v2654_v21, %v2654_v21  ;;  %v3320_v33 = vpack.c.bf16 %v2654_v21, %v2651_v47 }
 0x212   : > { %v3807_v15 = vpop.f32.mrb[129].mxu1  ;;  %v2741_v38 = vadd.f32 %v2740_v1, %v2654_v21  ;;  %3373 = vst [vmem:[%s5139_s15 + $0x38] sm:$0xff] %v3325_v57  }
 0x213   : > { %v3809_v60 = vpop.f32.mrb[130].mxu1  ;;  %v3808_v12 = vadd.f32 %v3807_v15, %v3806_v8  ;;  %v2811_v25 = vadd.f32 %v2810_v36, %v2780_v50  ;;  %3372 = vst [vmem:[%s5139_s15 + $0x30] sm:$0xff] %v3320_v33   ;;  %v3888_v13 = vpop.f32.mrb[128].mxu0 }
 0x214   : > { %v3810_v51 = vpop.f32.mrb[131].mxu1  ;;  %v2742_v43 = vadd.f32 %v2741_v38, %v2659_v20  ;;  %v2675_v62 = vadd.f32 %v3888_v13, %v5145_v44  ;;  %v2666_v46 = vpop.f32.mrb[129].mxu0 }
 0x215   : > { %v3811_v35 = vadd.f32 %v3810_v51, %v3809_v60  ;;  %v5180_v30 = vadd.f32 %v3808_v12, %v5084_v17  ;;  %v2812_v31 = vadd.f32 %v2811_v25, %v2781_v37  ;;  %v2667_v27 = vadd.f32 %v2666_v46, %v5126_v14  ;;  %v3889_v53 = vpop.f32.mrb[130].mxu0 }
 0x216   : > { %v2743_v59 = vadd.f32 %v2742_v43, %v2662_v56  ;;  %v2678_v49 = vadd.f32 %v3889_v53, %v5150_v32  ;;  %v2669_v18 = vpop.f32.mrb[131].mxu0  ;;  %v2785_v20 = vmul.f32 %v2675_v62, %v2675_v62 }
 0x217   : > { %v5184_v34 = vadd.f32 %v3811_v35, %v5087_v7  ;;  %v2783_v29 = vmul.f32 %v2667_v27, %v2667_v27  ;;  %v2813_v54 = vadd.f32 %v2812_v31, %v2782_v58  ;;  %v2670_v44 = vadd.f32 %v2669_v18, %v5131_v3 }
 0x218   : > { %v2744_v45 = vadd.f32 %v2743_v59, %v2667_v27  ;;  %v3335_v11 = vpack.c.bf16 %v2678_v49, %v2675_v62  ;;  %v2786_v48 = vmul.f32 %v2678_v49, %v2678_v49 }
 0x219   : > { %v3812_v17 = vpop.f32.mrb[132].mxu1  ;;  %v2814_v6 = vadd.f32 %v2813_v54, %v2783_v29  ;;  %v2784_v55 = vmul.f32 %v2670_v44, %v2670_v44  ;;  %v3330_v19 = vpack.c.bf16 %v2670_v44, %v2667_v27 }
 0x21a   : > { %v3813_v40 = vpop.f32.mrb[133].mxu1  ;;  %v2745_v14 = vadd.f32 %v2744_v45, %v2670_v44  ;;  %3375 = vst [vmem:[%s5139_s15 + $0x48] sm:$0xff] %v3335_v11  }
 0x21b   : > { %v3815_v39 = vpop.f32.mrb[134].mxu1  ;;  %v3814_v7 = vadd.f32 %v3813_v40, %v3812_v17  ;;  %v2815_v41 = vadd.f32 %v2814_v6, %v2784_v55  ;;  %3374 = vst [vmem:[%s5139_s15 + $0x40] sm:$0xff] %v3330_v19   ;;  %v3892_v16 = vpop.f32.mrb[132].mxu0 }
 0x21c   : > { %v3816_v26 = vpop.f32.mrb[135].mxu1  ;;  %v2746_v32 = vadd.f32 %v2745_v14, %v2675_v62  ;;  %v2691_v63 = vadd.f32 %v3892_v16, %v2530_v5  ;;  %v2682_v3 = vpop.f32.mrb[133].mxu0 }
 0x21d   : > { %v3817_v47 = vadd.f32 %v3816_v26, %v3815_v39  ;;  %v2546_v56 = vadd.f32 %v3814_v7, %v5096_v22  ;;  %v2816_v4 = vadd.f32 %v2815_v41, %v2785_v20  ;;  %v2683_v1 = vadd.f32 %v2682_v3, %v5158_v24  ;;  %v3893_v0 = vpop.f32.mrb[134].mxu0 }
 0x21e   : > { %v2747_v52 = vadd.f32 %v2746_v32, %v2678_v49  ;;  %v2694_v8 = vadd.f32 %v3893_v0, %v5172_v10  ;;  %v2685_v57 = vpop.f32.mrb[135].mxu0  ;;  %v2789_v25 = vmul.f32 %v2691_v63, %v2691_v63 }
 0x21f   : > { %v2549_v21 = vadd.f32 %v3817_v47, %v5099_v61  ;;  %v2787_v36 = vmul.f32 %v2683_v1, %v2683_v1  ;;  %v2817_v38 = vadd.f32 %v2816_v4, %v2786_v48  ;;  %v2686_v5 = vadd.f32 %v2685_v57, %v5162_v42 }
 0x220   : > { %v2748_v15 = vadd.f32 %v2747_v52, %v2683_v1  ;;  %v3345_v33 = vpack.c.bf16 %v2694_v8, %v2691_v63  ;;  %v2790_v62 = vmul.f32 %v2694_v8, %v2694_v8 }
 0x221   : > { %v3818_v50 = vpop.f32.mrb[136].mxu1  ;;  %v2818_v60 = vadd.f32 %v2817_v38, %v2787_v36  ;;  %v2788_v24 = vmul.f32 %v2686_v5, %v2686_v5  ;;  %v3340_v51 = vpack.c.bf16 %v2686_v5, %v2683_v1 }
 0x222   : > { %v3819_v22 = vpop.f32.mrb[137].mxu1  ;;  %v2749_v12 = vadd.f32 %v2748_v15, %v2686_v5  ;;  %3377 = vst [vmem:[%s5139_s15 + $0x58] sm:$0xff] %v3345_v33  }
 0x223   : > { %v3821_v37 = vpop.f32.mrb[138].mxu1  ;;  %v3820_v43 = vadd.f32 %v3819_v22, %v3818_v50  ;;  %v2819_v13 = vadd.f32 %v2818_v60, %v2788_v24  ;;  %3376 = vst [vmem:[%s5139_s15 + $0x50] sm:$0xff] %v3340_v51   ;;  %v3896_v35 = vpop.f32.mrb[136].mxu0 }
 0x224   : > { %v3822_v61 = vpop.f32.mrb[139].mxu1  ;;  %v2750_v10 = vadd.f32 %v2749_v12, %v2691_v63  ;;  %v2707_v46 = vadd.f32 %v3896_v35, %v2546_v56  ;;  %v2698_v42 = vpop.f32.mrb[137].mxu0 }
 0x225   : > { %v3823_v58 = vadd.f32 %v3822_v61, %v3821_v37  ;;  %v2554_v31 = vadd.f32 %v3820_v43, %v5108_v2  ;;  %v2820_v27 = vadd.f32 %v2819_v13, %v2789_v25  ;;  %v2699_v59 = vadd.f32 %v2698_v42, %v5180_v30  ;;  %v3897_v49 = vpop.f32.mrb[138].mxu0 }
 0x226   : > { %v2751_v53 = vadd.f32 %v2750_v10, %v2694_v8  ;;  %v2710_v45 = vadd.f32 %v3897_v49, %v2549_v21  ;;  %v2701_v29 = vpop.f32.mrb[139].mxu0 }
 0x227   : > { %v2557_v18 = vadd.f32 %v3823_v58, %v5111_v28  ;;  %v2791_v44 = vmul.f32 %v2699_v59, %v2699_v59  ;;  %v2821_v17 = vadd.f32 %v2820_v27, %v2790_v62  ;;  %v2702_v11 = vadd.f32 %v2701_v29, %v5184_v34 }
 0x228   : > { %v2752_v54 = vadd.f32 %v2751_v53, %v2699_v59  ;;  %v3355_v6 = vpack.c.bf16 %v2710_v45, %v2707_v46  ;;  %v2793_v28 = vmul.f32 %v2707_v46, %v2707_v46  ;;  %v2794_v47 = vmul.f32 %v2710_v45, %v2710_v45 }
 0x229   : > { %v3824_v40 = vpop.f32.mrb[140].mxu1  ;;  %v2822_v2 = vadd.f32 %v2821_v17, %v2791_v44  ;;  %v2792_v19 = vmul.f32 %v2702_v11, %v2702_v11  ;;  %v3350_v30 = vpack.c.bf16 %v2702_v11, %v2699_v59 }
 0x22a   : > { %v3825_v14 = vpop.f32.mrb[141].mxu1  ;;  %v2753_v55 = vadd.f32 %v2752_v54, %v2702_v11  ;;  %3379 = vst [vmem:[%s5139_s15 + $0x68] sm:$0xff] %v3355_v6  }
 0x22b   : > { %v3827_v39 = vpop.f32.mrb[142].mxu1  ;;  %v3826_v7 = vadd.f32 %v3825_v14, %v3824_v40  ;;  %v2823_v32 = vadd.f32 %v2822_v2, %v2792_v19  ;;  %3378 = vst [vmem:[%s5139_s15 + $0x60] sm:$0xff] %v3350_v30   ;;  %v3900_v41 = vpop.f32.mrb[140].mxu0 }
 0x22c   : > { %v3828_v26 = vpop.f32.mrb[143].mxu1  ;;  %v2754_v20 = vadd.f32 %v2753_v55, %v2707_v46  ;;  %v2714_v48 = vpop.f32.mrb[141].mxu0 }
 0x22d   : > { %v3829_v16 = vadd.f32 %v3828_v26, %v3827_v39  ;;  %v2562_v34 = vadd.f32 %v3826_v7, %v5120_v23  ;;  %v2824_v63 = vadd.f32 %v2823_v32, %v2793_v28  ;;  %v2715_v3 = vadd.f32 %v2714_v48, %v2554_v31  ;;  %v3901_v4 = vpop.f32.mrb[142].mxu0 }
 0x22e   : > { %v2755_v56 = vadd.f32 %v2754_v20, %v2710_v45  ;;  %v2717_v0 = vpop.f32.mrb[143].mxu0 }
 0x22f   : > { %v2565_v1 = vadd.f32 %v3829_v16, %v5123_v9  ;;  %v2723_v52 = vadd.f32 %v3900_v41, %v2562_v34  ;;  %v2795_v8 = vmul.f32 %v2715_v3, %v2715_v3  ;;  %v2825_v57 = vadd.f32 %v2824_v63, %v2794_v47 }
 0x230   : > { %v2756_v21 = vadd.f32 %v2755_v56, %v2715_v3  ;;  %v2718_v36 = vadd.f32 %v2717_v0, %v2557_v18 }
 0x231   : > { %v2726_v15 = vadd.f32 %v3901_v4, %v2565_v1  ;;  %v2826_v38 = vadd.f32 %v2825_v57, %v2795_v8  ;;  %v2797_v50 = vmul.f32 %v2723_v52, %v2723_v52 }
 0x232   : > { %v2757_v23 = vadd.f32 %v2756_v21, %v2718_v36  ;;  %v2796_v33 = vmul.f32 %v2718_v36, %v2718_v36  ;;  %v3360_v22 = vpack.c.bf16 %v2718_v36, %v2715_v3 }
 0x233   : > { %v3365_v5 = vpack.c.bf16 %v2726_v15, %v2723_v52  ;;  %v2798_v60 = vmul.f32 %v2726_v15, %v2726_v15 }
 0x234   : > { %v2758_v12 = vadd.f32 %v2757_v23, %v2723_v52  ;;  %v2827_v24 = vadd.f32 %v2826_v38, %v2796_v33  ;;  %3380 = vst [vmem:[%s5139_s15 + $0x70] sm:$0xff] %v3360_v22  }
 0x235   : > { %3381 = vst [vmem:[%s5139_s15 + $0x78] sm:$0xff] %v3365_v5  }
 0x236   : > { %v2759_v9 = vadd.f32 %v2758_v12, %v2726_v15  ;;  %v2828_v51 = vadd.f32 %v2827_v24, %v2797_v50 }
 0x238   : > { %v2760_v37 = vrot.slane %v2759_v9, 4  ;;  %v2829_v43 = vadd.f32 %v2828_v51, %v2798_v60 }
 0x23a   : > { %v2761_v61 = vadd.f32 %v2760_v37, %v2759_v9  ;;  %v2830_v25 = vrot.slane %v2829_v43, 4 }
 0x23c   : > { %v2762_v10 = vrot.slane %v2761_v61, 2  ;;  %v2831_v13 = vadd.f32 %v2830_v25, %v2829_v43 }
 0x23e   : > { %v2763_v35 = vadd.f32 %v2762_v10, %v2761_v61  ;;  %v2832_v58 = vrot.slane %v2831_v13, 2 }
 0x240   : > { %v2764_v62 = vrot.slane %v2763_v35, 1  ;;  %v2833_v46 = vadd.f32 %v2832_v58, %v2831_v13 }
 0x242   : > { %v2765_v42 = vadd.f32 %v2764_v62, %v2763_v35  ;;  %v2834_v31 = vrot.slane %v2833_v46, 1 }
 0x244   : > { %2766 = vst [vmem:[%s292_s17] sm:$0x1] %v2765_v42  ;;  %v2835_v27 = vadd.f32 %v2834_v31, %v2833_v46 }
 0x246   : > { %2836 = vst [vmem:[%s295_s21] sm:$0x1] %v2835_v27 }
 0x247 PF: > { %s18_s24 = sadd.s32 1, %s4051_s24  }
 0x248   : > { %p15_p4 = scmp.ge.s32.totalorder %s18_s24, 4  }
 0x24a   :  { %17 = sbr.rel (!%p15_p4) target bundleno = 1 (0x1), region = 95 }

// kernel: _lambda_.4
= control target key start
LH: loop header
LB: loop body
LE: loop exit
PB: predicated region body
PF: predicated region fallthrough
CT: control target
= control target key end

     0   :  { %s4480_s24 = smov 0   ;;  %s5735_s0 = inlined_call_operand.vmem [shape: bf16[2,16,16,128], index: 0, kind: input, shape index: {}]   ;;  %s5736_s1 = inlined_call_operand.vmem [shape: bf16[1152,128], index: 1, kind: input, shape index: {}]   ;;  %s5737_s2 = inlined_call_operand.vmem [shape: f32[1,128], index: 2, kind: input, shape index: {}]   ;;  %s5738_s3 = inlined_call_operand.vmem [shape: f32[1,128], index: 3, kind: input, shape index: {}]   ;;  %s5739_s4 = inlined_call_operand.vmem [shape: f32[1,128], index: 4, kind: input, shape index: {}]   ;;  %s5740_s5 = inlined_call_operand.vmem [shape: bf16[2,16,16,128], index: 5, kind: output, shape index: {0}]   ;;  %s5741_s6 = inlined_call_operand.vmem [shape: f32[2,1,128], index: 6, kind: output, shape index: {1}]   ;;  %s5742_s7 = inlined_call_operand.vmem [shape: f32[2,1,128], index: 7, kind: output, shape index: {2}]  }
   0x1 LB: > { %s3340_s2 = sadd.s32 4294967295, %s4437_s24   ;;  %p3344_p0 = scmp.ge.s32.totalorder %s4437_s24, 1  ;;  %s4437_s24 = sphi %s4480_s24, %s18_s24  }
   0x2   : > { %p242_p1 = scmp.lt.s32.totalorder %s4437_s24, 3 }
   0x4   : > { %p243_p2 = pnand %p3344_p0, %p242_p1 }
   0x5   : > { %v4310_v0 = vld [vmem:[%s5736_s1 + $0x40] sm:$0xff] (!%p243_p2)   ;;  %v4439_v2 = vmov (!%p243_p2), 0   ;;  %v4312_v3 = vld [vmem:[%s5736_s1 + $0x48] sm:$0xff] (!%p243_p2)   ;;  %v4314_v5 = vld [vmem:[%s5736_s1 + $0x50] sm:$0xff] (!%p243_p2)   ;;  %p280_p3 = scmp.lt.s32.totalorder (!%p243_p2), %s3340_s2, 1  ;;  %vm1469_vm0 = vcmask (!%p243_p2), 1046528  }
   0x6   : > { %246 = sbr.rel (%p243_p2) target bundleno = 592 (0x250), region = 40  ;;  %v4311_v1 = vld [vmem:[%s5736_s1] sm:$0xff] (!%p243_p2)   ;;  %487 = vst [vmem:[#allocation2] sm:$0xf] (!%p243_p2), %v4439_v2  ;;  %488 = vst [vmem:[#allocation2 + $0x4] sm:$0xf] (!%p243_p2), %v4439_v2  ;;  %3765 = vmatprep.subr.bf16.mxu0 (!%p243_p2), %v4310_v0  ;;  %4285 = vmatprep.subr.bf16.mxu1 (!%p243_p2), %v4310_v0 }
   0x7   : > { %489 = vst [vmem:[#allocation2 + $0x8] sm:$0x1] (!%p243_p2), %v4439_v2  ;;  %490 = vst [vmem:[#allocation2 + $0xc] sm:$0xf] (!%p243_p2), %v4439_v2  ;;  %3766 = vmatpush3.bf16.msra.mxu0 (!%p243_p2), %v4311_v1  ;;  %v4313_v4 = vld [vmem:[%s5736_s1 + $0x8] sm:$0xff] (!%p243_p2)   ;;  %4293 = vmatpush3.bf16.msra.mxu1 (!%p243_p2), %v4311_v1  ;;  %v4315_v6 = vld [vmem:[%s5736_s1 + $0x10] sm:$0xff] (!%p243_p2)  }
   0x8   : > { %491 = vst [vmem:[#allocation2 + $0x10] sm:$0xf] (!%p243_p2), %v4439_v2  ;;  %492 = vst [vmem:[#allocation2 + $0x14] sm:$0x1] (!%p243_p2), %v4439_v2  ;;  %3767 = vmatprep.subr.bf16.mxu0 (!%p243_p2), %v4312_v3  ;;  %4286 = vmatprep.subr.bf16.mxu1 (!%p243_p2), %v4312_v3  ;;  %v4316_v7 = vld [vmem:[%s5736_s1 + $0x58] sm:$0xff] (!%p243_p2)   ;;  %v4318_v9 = vld [vmem:[%s5736_s1 + $0x60] sm:$0xff] (!%p243_p2)  }
   0x9   : > { %493 = vst [vmem:[#allocation2 + $0x18] sm:$0xf] (!%p243_p2), %v4439_v2  ;;  %494 = vst [vmem:[#allocation2 + $0x1c] sm:$0xf] (!%p243_p2), %v4439_v2  ;;  %v4317_v8 = vld [vmem:[%s5736_s1 + $0x18] sm:$0xff] (!%p243_p2)   ;;  %v4319_v10 = vld [vmem:[%s5736_s1 + $0x20] sm:$0xff] (!%p243_p2)  }
   0xa   : > { %495 = vst [vmem:[#allocation2 + $0x20] sm:$0x1] (!%p243_p2), %v4439_v2  ;;  %496 = vst [vmem:[#allocation2 + $0x24] sm:$0xf] (!%p243_p2), %v4439_v2  ;;  %v4320_v11 = vld [vmem:[%s5736_s1 + $0x68] sm:$0xff] (!%p243_p2)   ;;  %v4322_v20 = vld [vmem:[%s5736_s1 + $0x70] sm:$0xff] (!%p243_p2)  }
   0xb   : > { %497 = vst [vmem:[#allocation2 + $0x28] sm:$0xf] (!%p243_p2), %v4439_v2  ;;  %498 = vst [vmem:[#allocation2 + $0x2c] sm:$0x1] (!%p243_p2), %v4439_v2  ;;  %3768 = vmatpush3.bf16.msra.mxu0 (!%p243_p2), %v4313_v4  ;;  %4294 = vmatpush3.bf16.msra.mxu1 (!%p243_p2), %v4313_v4  ;;  %v4321_v15 = vld [vmem:[%s5736_s1 + $0x28] sm:$0xff] (!%p243_p2)   ;;  %v4323_v30 = vld [vmem:[%s5736_s1 + $0x30] sm:$0xff] (!%p243_p2)  }
   0xc   : > { %499 = vst [vmem:[#allocation2 + $0x30] sm:$0xf] (!%p243_p2), %v4439_v2  ;;  %500 = vst [vmem:[#allocation2 + $0x34] sm:$0xf] (!%p243_p2), %v4439_v2  ;;  %3769 = vmatprep.subr.bf16.mxu0 (!%p243_p2), %v4314_v5  ;;  %4287 = vmatprep.subr.bf16.mxu1 (!%p243_p2), %v4314_v5  ;;  %v4546_v19 = vld [vmem:[%s5738_s3] ss:$0 sm:$0xff] (!%p243_p2) }
   0xd   : > { %501 = vst [vmem:[#allocation2 + $0x38] sm:$0x1] %v4439_v2  ;;  %502 = vst [vmem:[#allocation2 + $0x3c] sm:$0xf] %v4439_v2  ;;  %s5750_s2 = smov (!%p280_p3, %s3340_s2), 1  ;;  %v4535_v12 = vld [vmem:[#allocation2] sm:$0xff]  }
   0xe   : > { %503 = vst [vmem:[#allocation2 + $0x40] sm:$0xf] %v4439_v2  ;;  %504 = vst [vmem:[#allocation2 + $0x44] sm:$0x1] %v4439_v2  ;;  %s3525_s20 = sshll.u32 %s5750_s2, 7  ;;  %v1262_v16 = vshrl.u32 %v4535_v12, 16  ;;  %s292_s19 = scalar_lea.vmem %s5741_s6, %s5750_s2 }
   0xf   : > { %505 = vst [vmem:[#allocation2 + $0x48] sm:$0xf] %v4439_v2  ;;  %506 = vst [vmem:[#allocation2 + $0x4c] sm:$0xf] %v4439_v2  ;;  %3770 = vmatpush3.bf16.msra.mxu0 %v4315_v6  ;;  %4295 = vmatpush3.bf16.msra.mxu1 %v4315_v6  ;;  %s4533_s28 = scalar_lea.vmem %s5735_s0, %s3525_s20  ;;  %v1264_v17 = vshll.u32 %v4535_v12, 16  ;;  %v1470_v29 = vrot.slane %v4535_v12, 1  ;;  %s5662_s17 = scalar_lea.vmem %s5740_s5, %s3525_s20 }
  0x10   : > { %507 = vst [vmem:[#allocation2 + $0x50] sm:$0x1] %v4439_v2  ;;  %508 = vst [vmem:[#allocation2 + $0x54] sm:$0xf] %v4439_v2  ;;  %3771 = vmatprep.subr.bf16.mxu0 %v4316_v7  ;;  %4288 = vmatprep.subr.bf16.mxu1 %v4316_v7  ;;  %v3745_v14 = vld [vmem:[%s4533_s28 + $0x58] sm:$0xff]   ;;  %v3592_v35 = vld [vmem:[%s4533_s28] sm:$0xff]  }
  0x11   : > { %509 = vst [vmem:[#allocation2 + $0x58] sm:$0xf] %v4439_v2  ;;  %510 = vst [vmem:[#allocation2 + $0x5c] sm:$0x1] %v4439_v2  ;;  %v3637_v22 = vunpack.c.l.bf16 %v3745_v14  ;;  %v3638_v23 = vunpack.c.h.bf16 %v3745_v14  ;;  %v1266_v24 = vrot.slane %v1264_v17, 1  ;;  %v4324_v32 = vld [vmem:[%s5736_s1 + $0x78] sm:$0xff]   ;;  %v3593_v38 = vunpack.c.l.bf16 %v3592_v35 }
  0x12   : > { %511 = vst [vmem:[#allocation2 + $0x60] sm:$0xf] %v4439_v2  ;;  %512 = vst [vmem:[#allocation2 + $0x64] sm:$0xf] %v4439_v2  ;;  %v4554_v26 = vld [vmem:[%s5739_s4] ss:$0 sm:$0xff]  ;;  %v3594_v39 = vunpack.c.h.bf16 %v3592_v35 }
  0x13   : > { %513 = vst [vmem:[#allocation2 + $0x68] sm:$0x1] %v4439_v2  ;;  %514 = vst [vmem:[#allocation2 + $0x6c] sm:$0xf] %v4439_v2  ;;  %3772 = vmatpush3.bf16.msra.mxu0 %v4317_v8  ;;  %4296 = vmatpush3.bf16.msra.mxu1 %v4317_v8  ;;  %vm1260_vm1 = vsmask.f32 7424  ;;  %v390_v27 = vmul.f32 %v3637_v22, %v4546_v19  ;;  %v391_v28 = vmul.f32 %v3638_v23, %v4546_v19 }
  0x14   : > { %515 = vst [vmem:[#allocation2 + $0x70] sm:$0xf] %v4439_v2  ;;  %516 = vst [vmem:[#allocation2 + $0x74] sm:$0x1] %v4439_v2  ;;  %3773 = vmatprep.subr.bf16.mxu0 %v4318_v9  ;;  %4289 = vmatprep.subr.bf16.mxu1 %v4318_v9  ;;  %v1267_v31 = vor.u32 %v1266_v24, %v1262_v16  ;;  %vm621_vm2 = vsmask.f32 256  ;;  %v368_v44 = vmul.f32 %v3593_v38, %v4546_v19 }
  0x15   : > { %517 = vst [vmem:[#allocation2 + $0x78] sm:$0xf] %v4439_v2  ;;  %518 = vst [vmem:[#allocation2 + $0x7c] sm:$0xf] %v4439_v2  ;;  %v429_v33 = vadd.f32 %v4554_v26, %v390_v27  ;;  %v430_v34 = vadd.f32 %v4554_v26, %v391_v28  ;;  %vm622_vm3 = vsmask.f32 4368  ;;  %v369_v45 = vmul.f32 %v3594_v39, %v4546_v19 }
  0x16   : > { %519 = vst [vmem:[#allocation2 + $0x80] sm:$0x1] %v4439_v2  ;;  %520 = vst [vmem:[#allocation2 + $0x84] sm:$0xf] %v4439_v2  ;;  %v4325_v40 = vld [vmem:[%s5736_s1 + $0x38] sm:$0xff]   ;;  %v4330_v43 = vld [vmem:[%s5736_s1 + $0xc0] sm:$0xff]   ;;  %v407_v49 = vadd.f32 %v4554_v26, %v368_v44 }
  0x17   : > { %521 = vst [vmem:[#allocation2 + $0x88] sm:$0xf] %v4439_v2  ;;  %522 = vst [vmem:[#allocation2 + $0x8c] sm:$0x1] %v4439_v2  ;;  %3774 = vmatpush3.bf16.msra.mxu0 %v4319_v10  ;;  %4297 = vmatpush3.bf16.msra.mxu1 %v4319_v10  ;;  %v461_v41 = vmax.f32 %v429_v33, 0.0  ;;  %v462_v42 = vmax.f32 %v430_v34, 0.0  ;;  %v408_v50 = vadd.f32 %v4554_v26, %v369_v45 }
  0x18   : > { %523 = vst [vmem:[#allocation2 + $0x90] sm:$0xf] %v4439_v2  ;;  %524 = vst [vmem:[#allocation2 + $0x94] sm:$0xf] %v4439_v2  ;;  %3775 = vmatprep.subr.bf16.mxu0 %v4320_v11  ;;  %4290 = vmatprep.subr.bf16.mxu1 %v4320_v11  ;;  %vm945_vm4 = vcmask 1043456   ;;  %v4331_v48 = vld [vmem:[%s5736_s1 + $0x140] sm:$0xff]  }
  0x19   : > { %525 = vst [vmem:[#allocation2 + $0x98] sm:$0x1] %v4439_v2  ;;  %526 = vst [vmem:[#allocation2 + $0x9c] sm:$0xf] %v4439_v2  ;;  %v3549_v46 = vpack.c.bf16 %v461_v41, %v461_v41  ;;  %v3550_v47 = vpack.c.bf16 %v462_v42, %v462_v42  ;;  %vm946_vm5 = vsmask.f32 7938 }
  0x1a   : > { %527 = vst [vmem:[#allocation2 + $0xa0] sm:$0xf] %v4439_v2  ;;  %528 = vst [vmem:[#allocation2 + $0xa4] sm:$0x1] %v4439_v2  ;;  %vm952_vm6 = vcmask 1040384   ;;  %v3746_v51 = vld [vmem:[%s4533_s28 + $0x60] sm:$0xff]  }
  0x1b   : > { %529 = vst [vmem:[#allocation2 + $0xa8] sm:$0xf] %v4439_v2  ;;  %530 = vst [vmem:[#allocation2 + $0xac] sm:$0xf] %v4439_v2  ;;  %3776 = vmatpush3.bf16.msra.mxu0 %v4321_v15  ;;  %4298 = vmatpush3.bf16.msra.mxu1 %v4321_v15  ;;  %v812_v52 = vshrl.u32 %v3549_v46, 16  ;;  %v815_v53 = vshll.u32 %v3549_v46, 16  ;;  %v3641_v60 = vunpack.c.l.bf16 %v3746_v51  ;;  %v3642_v61 = vunpack.c.h.bf16 %v3746_v51 }
  0x1c   : > { %531 = vst [vmem:[#allocation2 + $0xb0] sm:$0x1] %v4439_v2  ;;  %532 = vst [vmem:[#allocation2 + $0xb4] sm:$0xf] %v4439_v2  ;;  %3777 = vmatprep.subr.bf16.mxu0 %v4322_v20  ;;  %4291 = vmatprep.subr.bf16.mxu1 %v4322_v20  ;;  %v820_v54 = vshrl.u32 %v3550_v47, 16  ;;  %v823_v55 = vshll.u32 %v3550_v47, 16 }
  0x1d   : > { %533 = vst [vmem:[#allocation2 + $0xb8] sm:$0xf] %v4439_v2  ;;  %534 = vst [vmem:[#allocation2 + $0xbc] sm:$0x1] %v4439_v2  ;;  %v4335_v56 = vld [vmem:[%s5736_s1 + $0x100] sm:$0xff]   ;;  %v439_v58 = vmax.f32 %v407_v49, 0.0  ;;  %v392_v6 = vmul.f32 %v3641_v60, %v4546_v19  ;;  %v393_v7 = vmul.f32 %v3642_v61, %v4546_v19 }
  0x1e   : > { %535 = vst [vmem:[#allocation2 + $0xc0] sm:$0xf] %v4439_v2  ;;  %536 = vst [vmem:[#allocation2 + $0xc4] sm:$0xf] %v4439_v2  ;;  %v440_v59 = vmax.f32 %v408_v50, 0.0  ;;  %v814_v62 = vrot.slane %v812_v52, 7 }
  0x1f   : > { %537 = vst [vmem:[#allocation2 + $0xc8] sm:$0x1] %v4439_v2  ;;  %538 = vst [vmem:[#allocation2 + $0xcc] sm:$0xf] %v4439_v2  ;;  %3778 = vmatpush3.bf16.msra.mxu0 %v4323_v30  ;;  %4299 = vmatpush3.bf16.msra.mxu1 %v4323_v30  ;;  %v822_v63 = vrot.slane %v820_v54, 7  ;;  %v3527_v4 = vpack.c.bf16 %v439_v58, %v439_v58  ;;  %v431_v23 = vadd.f32 %v4554_v26, %v392_v6  ;;  %v4345_v24 = vld [vmem:[%s5736_s1 + $0x148] sm:$0xff]  }
  0x20   : > { %539 = vst [vmem:[#allocation2 + $0xd0] sm:$0xf] %v4439_v2  ;;  %540 = vst [vmem:[#allocation2 + $0xd4] sm:$0x1] %v4439_v2  ;;  %3779 = vmatprep.subr.bf16.mxu0 %v4324_v32  ;;  %4292 = vmatprep.subr.bf16.mxu1 %v4324_v32  ;;  %v1027_v1 = vld [vmem:[#allocation2 + $0x90] sm:$0xf]  ;;  %v3528_v5 = vpack.c.bf16 %v440_v59, %v440_v59  ;;  %v817_v8 = vor.u32 %v815_v53, %v814_v62 }
  0x21   : > { %v4327_v13 = vld [vmem:[#allocation2 + $0x8] ss:$0 sps:$4 sm:$0x11]   ;;  %vm4591_vm7 = vmor %vm621_vm2, %vm622_vm3  ;;  %v1031_v2 = vld [vmem:[#allocation2 + $0x98] sm:$0x1]  ;;  %v818_v9 = vrot.slane %v814_v62, 4  ;;  %v825_v10 = vor.u32 %v823_v55, %v822_v63  ;;  %v432_v28 = vadd.f32 %v4554_v26, %v393_v7 }
  0x22   : > { %v1269_v18 = vshll.u32 %v4327_v13, 16  ;;  %v1471_v21 = vrot.slane %v4327_v13, 1  ;;  %vm4597_vm8 = vmand %vm945_vm4, %vm946_vm5  ;;  %v827_v11 = vrot.slane %v822_v63, 4  ;;  %v3735_v13 = vld [vmem:[%s4533_s28 + $0x8] sm:$0xff]   ;;  %v625_v14 = vshrl.u32 %v3527_v4, 16  ;;  %v3736_v47 = vld [vmem:[%s4533_s28 + $0x10] sm:$0xff]  }
  0x23   : > { %3780 = vmatpush3.bf16.msra.mxu0 %v4325_v40  ;;  %4300 = vmatpush3.bf16.msra.mxu1 %v4325_v40  ;;  %vm4603_vm9 = vmand %vm952_vm6, %vm621_vm2  ;;  %v628_v15 = vshll.u32 %v3527_v4, 16  ;;  %v633_v16 = vshrl.u32 %v3528_v5, 16  ;;  %v636_v17 = vshll.u32 %v3528_v5, 16  ;;  %v1028_v20 = vsel %vm4597_vm8, %v817_v8, %v1027_v1  ;;  %v954_v22 = vld [vmem:[#allocation2 + $0x14] sm:$0x1]  ;;  %v3747_v38 = vld [vmem:[%s4533_s28 + $0x68] sm:$0xff]  }
  0x24   : > { %v1271_v25 = vrot.slane %v1269_v18, 1  ;;  %v4569_v36 = vsel %vm1469_vm0, %v1470_v29, %v1471_v21  ;;  %3877 = vmatprep.subr.bf16.mxu1 %v4330_v43  ;;  %3989 = vmatprep.subr.bf16.mxu0 %v4331_v48  ;;  %v826_v18 = vsel %vm4591_vm7, %v818_v9, %v825_v10  ;;  %v1032_v21 = vsel %vm4603_vm9, %v827_v11, %v1031_v2  ;;  %v4402_v57 = vld [vmem:[%s5736_s1 + $0x208] sm:$0xff]  }
  0x25   : > { %1029 = vst [vmem:[#allocation2 + $0x90] sm:$0xf] %v1028_v20  ;;  %1030 = vst [vmem:[#allocation2 + $0x94] sm:$0xf] %v826_v18  ;;  %v635_v27 = vrot.slane %v633_v16, 7  ;;  %v3597_v29 = vunpack.c.l.bf16 %v3735_v13  ;;  %v463_v30 = vmax.f32 %v431_v23, 0.0  ;;  %v3645_v46 = vunpack.c.l.bf16 %v3747_v38 }
  0x26   : > { %v1272_v37 = vsel %vm1260_vm1, %v1267_v31, %v1271_v25  ;;  %1033 = vst [vmem:[#allocation2 + $0x98] sm:$0x1] %v1032_v21  ;;  %v627_v25 = vrot.slane %v625_v14, 7  ;;  %v3598_v31 = vunpack.c.h.bf16 %v3735_v13  ;;  %v464_v39 = vmax.f32 %v432_v28, 0.0  ;;  %v1038_v14 = vld [vmem:[#allocation2 + $0xa4] sm:$0x1] }
  0x27   : > { %2194 = vmatprep.mubr.bf16.mxu0 %v1272_v37  ;;  %v638_v34 = vor.u32 %v636_v17, %v635_v27  ;;  %v640_v35 = vrot.slane %v635_v27, 4  ;;  %v4347_v37 = vld [vmem:[%s5736_s1 + $0x108] sm:$0xff]   ;;  %v3551_v40 = vpack.c.bf16 %v463_v30, %v463_v30  ;;  %v370_v41 = vmul.f32 %v3597_v29, %v4546_v19  ;;  %v4642_v17 = vld [vmem:[%s4533_s28 + $0x70] sm:$0xff]   ;;  %v4334_v30 = vld [vmem:[%s5736_s1 + $0x80] sm:$0xff]  }
  0x28   : > { %2195 = vmatmul.mubr.bf16.vlgmr.msra.gmra.mrb[0].mxu0 %v4535_v12  ;;  %v948_v12 = vld [vmem:[#allocation2 + $0xc] sm:$0xf]  ;;  %v630_v32 = vor.u32 %v628_v15, %v627_v25  ;;  %v631_v33 = vrot.slane %v627_v25, 4  ;;  %v371_v42 = vmul.f32 %v3598_v31, %v4546_v19  ;;  %v3552_v48 = vpack.c.bf16 %v464_v39, %v464_v39 }
  0x29   : > { %3990 = vmatpush3.bf16.msra.mxu0 %v4335_v56  ;;  %v955_v45 = vsel %vm4603_vm9, %v640_v35, %v954_v22  ;;  %v829_v49 = vshrl.u32 %v3551_v40, 16  ;;  %v832_v50 = vshll.u32 %v3551_v40, 16  ;;  %v409_v51 = vadd.f32 %v4554_v26, %v370_v41  ;;  %v1034_v56 = vld [vmem:[#allocation2 + $0x9c] sm:$0xf]  ;;  %v4336_v39 = vld [vmem:[%s5736_s1 + $0xc8] sm:$0xff]  }
  0x2a   : > { %3991 = vmatprep.subr.bf16.mxu0 %v4345_v24  ;;  %v639_v43 = vsel %vm4591_vm7, %v631_v33, %v638_v34  ;;  %v949_v44 = vsel %vm4597_vm8, %v630_v32, %v948_v12  ;;  %956 = vst [vmem:[#allocation2 + $0x14] sm:$0x1] %v955_v45  ;;  %v410_v52 = vadd.f32 %v4554_v26, %v371_v42  ;;  %v3646_v53 = vunpack.c.h.bf16 %v3747_v38  ;;  %v4359_v34 = vld [vmem:[%s5736_s1 + $0x150] sm:$0xff]   ;;  %v957_v41 = vld [vmem:[#allocation2 + $0x18] sm:$0xf] }
  0x2b   : > { %950 = vst [vmem:[#allocation2 + $0xc] sm:$0xf] %v949_v44  ;;  %951 = vst [vmem:[#allocation2 + $0x10] sm:$0xf] %v639_v43  ;;  %v394_v54 = vmul.f32 %v3645_v46, %v4546_v19  ;;  %v3601_v55 = vunpack.c.l.bf16 %v3736_v47  ;;  %v3602_v58 = vunpack.c.h.bf16 %v3736_v47  ;;  %v831_v61 = vrot.slane %v829_v49, 7 }
  0x2c   : > { %v4328_v59 = vld [vmem:[#allocation2 + $0x90] sm:$0xff]   ;;  %v837_v62 = vshrl.u32 %v3552_v48, 16  ;;  %v395_v63 = vmul.f32 %v3646_v53, %v4546_v19  ;;  %v840_v2 = vshll.u32 %v3552_v48, 16  ;;  %v441_v4 = vmax.f32 %v409_v51, 0.0 }
  0x2d   : > { %3992 = vmatpush3.bf16.msra.mxu0 %v4347_v37  ;;  %v4329_v60 = vld [vmem:[#allocation2 + $0x98] ss:$0 sps:$4 sm:$0x11]   ;;  %v433_v1 = vadd.f32 %v4554_v26, %v394_v54  ;;  %v442_v5 = vmax.f32 %v410_v52, 0.0  ;;  %v372_v6 = vmul.f32 %v3601_v55, %v4546_v19  ;;  %v1406_v7 = vshrl.u32 %v4328_v59, 16  ;;  %v4337_v55 = vld [vmem:[%s5736_s1 + $0x88] sm:$0xff]  }
  0x2e   : > { %v1408_v8 = vshll.u32 %v4328_v59, 16  ;;  %v1413_v9 = vshll.u32 %v4329_v60, 16  ;;  %v834_v10 = vor.u32 %v832_v50, %v831_v61  ;;  %v835_v11 = vrot.slane %v831_v61, 4  ;;  %3993 = vmatprep.subr.bf16.mxu0 %v4359_v34 }
  0x2f   : > { %v839_v13 = vrot.slane %v837_v62, 7  ;;  %v3529_v15 = vpack.c.bf16 %v441_v4, %v441_v4  ;;  %v3530_v16 = vpack.c.bf16 %v442_v5, %v442_v5  ;;  %v434_v12 = vadd.f32 %v4554_v26, %v395_v63  ;;  %v4340_v62 = vld [vmem:[%s5736_s1 + $0xd0] sm:$0xff]  }
  0x30   : > { %v1410_v18 = vrot.slane %v1408_v8, 1  ;;  %v1415_v20 = vrot.slane %v1413_v9, 1  ;;  %v1035_v21 = vsel %vm4597_vm8, %v834_v10, %v1034_v56  ;;  %v373_v25 = vmul.f32 %v3602_v58, %v4546_v19  ;;  %v961_v56 = vld [vmem:[#allocation2 + $0x20] sm:$0x1]  ;;  %v4696_v10 = vld [vmem:[%s4533_s28 + $0x18] sm:$0xff]  }
  0x31   : > { %v4649_v23 = vld [vmem:[#allocation2 + $0x14] ss:$0 sps:$4 sm:$0x11]   ;;  %v842_v24 = vor.u32 %v840_v2, %v839_v13  ;;  %1036 = vst [vmem:[#allocation2 + $0x9c] sm:$0xf] %v1035_v21  ;;  %v4653_v27 = vadd.f32 %v4554_v26, %v372_v6  ;;  %v3649_v28 = vunpack.c.l.bf16 %v4642_v17  ;;  %v844_v31 = vrot.slane %v839_v13, 4 }
  0x32   : > { %v4647_v22 = vld [vmem:[#allocation2 + $0xc] sm:$0xff]   ;;  %v1411_v29 = vor.u32 %v1410_v18, %v1406_v7  ;;  %v642_v32 = vshrl.u32 %v3529_v15, 16  ;;  %v645_v33 = vshll.u32 %v3529_v15, 16  ;;  %v1281_v38 = vshll.u32 %v4649_v23, 16  ;;  %v1041_v18 = vld [vmem:[#allocation2 + $0xa8] sm:$0xf] }
  0x33   : > { %v1274_v35 = vshrl.u32 %v4647_v22, 16  ;;  %v1276_v37 = vshll.u32 %v4647_v22, 16  ;;  %v843_v40 = vsel %vm4591_vm7, %v835_v11, %v842_v24  ;;  %v1039_v43 = vsel %vm4603_vm9, %v844_v31, %v1038_v14  ;;  %v4343_v6 = vld [vmem:[%s5736_s1 + $0x90] sm:$0xff]   ;;  %v4344_v14 = vld [vmem:[%s5736_s1 + $0xd8] sm:$0xff]  }
  0x34   : > { %v4671_v42 = vsel %vm1260_vm1, %v1411_v29, %v1415_v20  ;;  %1037 = vst [vmem:[#allocation2 + $0xa0] sm:$0xf] %v843_v40  ;;  %v644_v44 = vrot.slane %v642_v32, 7  ;;  %v650_v45 = vshrl.u32 %v3530_v16, 16  ;;  %v1283_v47 = vrot.slane %v1281_v38, 1  ;;  %v4346_v40 = vld [vmem:[%s5736_s1 + $0x98] sm:$0xff]  }
  0x35   : > { %2290 = vmatprep.mubr.bf16.mxu1 %v4671_v42  ;;  %v1278_v46 = vrot.slane %v1276_v37, 1  ;;  %1040 = vst [vmem:[#allocation2 + $0xa4] sm:$0x1] %v1039_v43  ;;  %v653_v48 = vshll.u32 %v3530_v16, 16  ;;  %v465_v49 = vmax.f32 %v433_v1, 0.0  ;;  %v466_v53 = vmax.f32 %v434_v12, 0.0 }
  0x36   : > { %2291 = vmatmul.mubr.bf16.vlgmr.msra.gmra.mrb[0].mxu1 %v4328_v59  ;;  %v647_v50 = vor.u32 %v645_v33, %v644_v44  ;;  %v648_v51 = vrot.slane %v644_v44, 4  ;;  %v652_v52 = vrot.slane %v650_v45, 7  ;;  %v412_v60 = vadd.f32 %v4554_v26, %v373_v25  ;;  %v4363_v59 = vld [vmem:[%s5736_s1 + $0x110] sm:$0xff]   ;;  %v4350_v45 = vld [vmem:[%s5736_s1 + $0xe0] sm:$0xff]  }
  0x37   : > { %v1279_v54 = vor.u32 %v1278_v46, %v1274_v35  ;;  %3878 = vmatpush3.bf16.msra.mxu1 %v4334_v30  ;;  %v3553_v58 = vpack.c.bf16 %v465_v49, %v465_v49  ;;  %v443_v61 = vmax.f32 %v4653_v27, 0.0  ;;  %v3554_v4 = vpack.c.bf16 %v466_v53, %v466_v53  ;;  %3994 = vmatpush3.bf16.msra.mxu0 %v4363_v59  ;;  %v1045_v12 = vld [vmem:[#allocation2 + $0xb0] sm:$0x1]  ;;  %v968_v53 = vld [vmem:[#allocation2 + $0x2c] sm:$0x1] }
  0x38   : > { %3879 = vmatprep.subr.bf16.mxu1 %v4336_v39  ;;  %v655_v63 = vor.u32 %v653_v48, %v652_v52  ;;  %v657_v1 = vrot.slane %v652_v52, 4  ;;  %v958_v2 = vsel %vm4597_vm8, %v647_v50, %v957_v41  ;;  %v444_v9 = vmax.f32 %v412_v60, 0.0  ;;  %v964_v48 = vld [vmem:[#allocation2 + $0x24] sm:$0xf] }
  0x39   : > { %v4690_v5 = vsel %vm1260_vm1, %v1279_v54, %v1283_v47  ;;  %959 = vst [vmem:[#allocation2 + $0x18] sm:$0xf] %v958_v2  ;;  %v846_v7 = vshrl.u32 %v3553_v58, 16  ;;  %v849_v8 = vshll.u32 %v3553_v58, 16  ;;  %v854_v15 = vshrl.u32 %v3554_v4, 16  ;;  %v4353_v58 = vld [vmem:[%s5736_s1 + $0xa0] sm:$0xff]  }
  0x3a   : > { %2202 = vmatprep.mubr.bf16.mxu0 %v4690_v5  ;;  %v656_v11 = vsel %vm4591_vm7, %v648_v51, %v655_v63  ;;  %v962_v13 = vsel %vm4603_vm9, %v657_v1, %v961_v56  ;;  %v857_v16 = vshll.u32 %v3554_v4, 16  ;;  %v3531_v24 = vpack.c.bf16 %v443_v61, %v443_v61 }
  0x3b   : > { %2203 = vmatmul.mubr.bf16.gmra.mrb[4].mxu0 %v4647_v22  ;;  %3880 = vmatpush3.bf16.msra.mxu1 %v4337_v55  ;;  %v4707_v20 = vld [vmem:[#allocation2 + $0x9c] sm:$0xff]   ;;  %960 = vst [vmem:[#allocation2 + $0x1c] sm:$0xf] %v656_v11  ;;  %963 = vst [vmem:[#allocation2 + $0x20] sm:$0x1] %v962_v13  ;;  %v848_v21 = vrot.slane %v846_v7, 7  ;;  %v3532_v25 = vpack.c.bf16 %v444_v9, %v444_v9  ;;  %v3650_v27 = vunpack.c.h.bf16 %v4642_v17  ;;  %v3605_v32 = vunpack.c.l.bf16 %v4696_v10 }
  0x3c   : > { %v4339_v29 = vld [vmem:[#allocation2 + $0xa4] ss:$0 sps:$4 sm:$0x11]   ;;  %3881 = vmatprep.subr.bf16.mxu1 %v4340_v62  ;;  %v856_v30 = vrot.slane %v854_v15, 7  ;;  %v396_v31 = vmul.f32 %v3649_v28, %v4546_v19  ;;  %v3606_v33 = vunpack.c.h.bf16 %v4696_v10  ;;  %v1418_v34 = vshrl.u32 %v4707_v20, 16 }
  0x3d   : > { %v1420_v35 = vshll.u32 %v4707_v20, 16  ;;  %v851_v37 = vor.u32 %v849_v8, %v848_v21  ;;  %v852_v38 = vrot.slane %v848_v21, 4  ;;  %v1425_v39 = vshll.u32 %v4339_v29, 16  ;;  %v4354_v8 = vld [vmem:[%s5736_s1 + $0xe8] sm:$0xff]   ;;  %v4747_v11 = vld [vmem:[%s4533_s28 + $0x20] sm:$0xff]  }
  0x3e   : > { %v859_v41 = vor.u32 %v857_v16, %v856_v30  ;;  %v861_v43 = vrot.slane %v856_v30, 4  ;;  %v659_v44 = vshrl.u32 %v3531_v24, 16  ;;  %v662_v46 = vshll.u32 %v3531_v24, 16 }
  0x3f   : > { %v1422_v17 = vrot.slane %v1420_v35, 1  ;;  %3882 = vmatpush3.bf16.msra.mxu1 %v4343_v6  ;;  %v1042_v28 = vsel %vm4597_vm8, %v851_v37, %v1041_v18  ;;  %v667_v47 = vshrl.u32 %v3532_v25, 16  ;;  %v1427_v49 = vrot.slane %v1425_v39, 1  ;;  %v4370_v18 = vld [vmem:[%s5736_s1 + $0x158] sm:$0xff]  }
  0x40   : > { %3883 = vmatprep.subr.bf16.mxu1 %v4344_v14  ;;  %v860_v50 = vsel %vm4591_vm7, %v852_v38, %v859_v41  ;;  %1043 = vst [vmem:[#allocation2 + $0xa8] sm:$0xf] %v1042_v28  ;;  %v1046_v51 = vsel %vm4603_vm9, %v861_v43, %v1045_v12  ;;  %v661_v52 = vrot.slane %v659_v44, 7  ;;  %v670_v56 = vshll.u32 %v3532_v25, 16  ;;  %v4355_v25 = vld [vmem:[%s5736_s1 + $0xa8] sm:$0xff]   ;;  %3995 = vmatprep.subr.bf16.mxu0 %v4370_v18 }
  0x41   : > { %v1423_v54 = vor.u32 %v1422_v17, %v1418_v34  ;;  %1044 = vst [vmem:[#allocation2 + $0xac] sm:$0xf] %v860_v50  ;;  %1047 = vst [vmem:[#allocation2 + $0xb0] sm:$0x1] %v1046_v51  ;;  %v669_v55 = vrot.slane %v667_v47, 7  ;;  %v397_v60 = vmul.f32 %v3650_v27, %v4546_v19  ;;  %v435_v63 = vadd.f32 %v4554_v26, %v396_v31  ;;  %v4371_v34 = vld [vmem:[%s5736_s1 + $0x118] sm:$0xff]  }
  0x42   : > { %v4733_v61 = vld [vmem:[#allocation2 + $0x18] sm:$0xff]   ;;  %v664_v59 = vor.u32 %v662_v46, %v661_v52  ;;  %v665_v62 = vrot.slane %v661_v52, 4  ;;  %v374_v1 = vmul.f32 %v3605_v32, %v4546_v19  ;;  %v4740_v4 = vld [vmem:[#allocation2 + $0x20] ss:$0 sps:$4 sm:$0x11]   ;;  %v375_v31 = vmul.f32 %v3606_v33, %v4546_v19  ;;  %3996 = vmatpush3.bf16.msra.mxu0 %v4371_v34 }
  0x43   : > { %v4738_v2 = vsel %vm1260_vm1, %v1423_v54, %v1427_v49  ;;  %3884 = vmatpush3.bf16.msra.mxu1 %v4346_v40  ;;  %v672_v6 = vor.u32 %v670_v56, %v669_v55  ;;  %v674_v7 = vrot.slane %v669_v55, 4  ;;  %v436_v9 = vadd.f32 %v4554_v26, %v397_v60  ;;  %v4779_v40 = vld [vmem:[%s4533_s28 + $0x28] sm:$0xff]   ;;  %v1048_v52 = vld [vmem:[#allocation2 + $0xb4] sm:$0xf]  ;;  %v1052_v56 = vld [vmem:[#allocation2 + $0xbc] sm:$0x1] }
  0x44   : > { %2298 = vmatprep.mubr.bf16.mxu1 %v4738_v2  ;;  %v1286_v13 = vshrl.u32 %v4733_v61, 16  ;;  %v1288_v14 = vshll.u32 %v4733_v61, 16  ;;  %3885 = vmatprep.subr.bf16.mxu1 %v4350_v45  ;;  %v965_v15 = vsel %vm4597_vm8, %v664_v59, %v964_v48  ;;  %v467_v16 = vmax.f32 %v435_v63, 0.0  ;;  %v4362_v59 = vld [vmem:[%s5736_s1 + $0xb0] sm:$0xff]  }
  0x45   : > { %v1293_v21 = vshll.u32 %v4740_v4, 16  ;;  %2299 = vmatmul.mubr.bf16.gmra.mrb[4].mxu1 %v4707_v20  ;;  %v673_v12 = vsel %vm4591_vm7, %v665_v62, %v672_v6  ;;  %966 = vst [vmem:[#allocation2 + $0x24] sm:$0xf] %v965_v15  ;;  %v969_v24 = vsel %vm4603_vm9, %v674_v7, %v968_v53  ;;  %v468_v27 = vmax.f32 %v436_v9, 0.0  ;;  %v4358_v20 = vld [vmem:[%s5736_s1 + $0xf0] sm:$0xff]   ;;  %v4374_v53 = vld [vmem:[%s5736_s1 + $0x160] sm:$0xff]  }
  0x46   : > { %v1290_v29 = vrot.slane %v1288_v14, 1  ;;  %967 = vst [vmem:[#allocation2 + $0x28] sm:$0xf] %v673_v12  ;;  %970 = vst [vmem:[#allocation2 + $0x2c] sm:$0x1] %v969_v24  ;;  %v3555_v30 = vpack.c.bf16 %v467_v16, %v467_v16  ;;  %v413_v32 = vadd.f32 %v4554_v26, %v374_v1  ;;  %v3609_v38 = vunpack.c.l.bf16 %v4747_v11  ;;  %v4364_v62 = vld [vmem:[%s5736_s1 + $0xf8] sm:$0xff]   ;;  %3997 = vmatprep.subr.bf16.mxu0 %v4374_v53 }
  0x47   : > { %v1295_v35 = vrot.slane %v1293_v21, 1  ;;  %3886 = vmatpush3.bf16.msra.mxu1 %v4353_v58  ;;  %v3556_v37 = vpack.c.bf16 %v468_v27, %v468_v27  ;;  %v3610_v39 = vunpack.c.h.bf16 %v4747_v11  ;;  %v414_v33 = vadd.f32 %v4554_v26, %v375_v31 }
  0x48   : > { %v1291_v41 = vor.u32 %v1290_v29, %v1286_v13  ;;  %v4781_v43 = vld [vmem:[#allocation2 + $0xa8] sm:$0xff]   ;;  %3887 = vmatprep.subr.bf16.mxu1 %v4354_v8  ;;  %v863_v10 = vshrl.u32 %v3555_v30, 16  ;;  %v3613_v44 = vunpack.c.l.bf16 %v4779_v40  ;;  %v4349_v17 = vld [vmem:[#allocation2 + $0xb0] ss:$0 sps:$4 sm:$0x11]   ;;  %v866_v28 = vshll.u32 %v3555_v30, 16 }
  0x49   : > { %v871_v45 = vshrl.u32 %v3556_v37, 16  ;;  %v874_v46 = vshll.u32 %v3556_v37, 16  ;;  %v376_v47 = vmul.f32 %v3609_v38, %v4546_v19  ;;  %v1430_v49 = vshrl.u32 %v4781_v43, 16  ;;  %v4365_v30 = vld [vmem:[%s5736_s1 + $0xb8] sm:$0xff]   ;;  %v4378_v37 = vld [vmem:[%s5736_s1 + $0x120] sm:$0xff]  }
  0x4a   : > { %v4787_v48 = vsel %vm1260_vm1, %v1291_v41, %v1295_v35  ;;  %v1432_v50 = vshll.u32 %v4781_v43, 16  ;;  %v865_v51 = vrot.slane %v863_v10, 7  ;;  %v1437_v54 = vshll.u32 %v4349_v17, 16  ;;  %v4366_v35 = vld [vmem:[%s5736_s1 + $0x1c0] sm:$0xff]   ;;  %v971_v17 = vld [vmem:[#allocation2 + $0x30] sm:$0xf]  ;;  %3998 = vmatpush3.bf16.msra.mxu0 %v4378_v37 }
  0x4b   : > { %2210 = vmatprep.mubr.bf16.mxu0 %v4787_v48  ;;  %3888 = vmatpush3.bf16.msra.mxu1 %v4355_v25  ;;  %v873_v55 = vrot.slane %v871_v45, 7  ;;  %v445_v58 = vmax.f32 %v413_v32, 0.0  ;;  %v446_v60 = vmax.f32 %v414_v33, 0.0  ;;  %v377_v7 = vmul.f32 %v3610_v39, %v4546_v19 }
  0x4c   : > { %2211 = vmatmul.mubr.bf16.gmra.mrb[8].mxu0 %v4733_v61  ;;  %v1434_v63 = vrot.slane %v1432_v50, 1  ;;  %v868_v1 = vor.u32 %v866_v28, %v865_v51  ;;  %v869_v6 = vrot.slane %v865_v51, 4  ;;  %3889 = vmatprep.subr.bf16.mxu1 %v4358_v20  ;;  %v1439_v8 = vrot.slane %v1437_v54, 1 }
  0x4d   : > { %v4803_v9 = vld [vmem:[#allocation2 + $0x24] sm:$0xff]   ;;  %v876_v11 = vor.u32 %v874_v46, %v873_v55  ;;  %v3533_v13 = vpack.c.bf16 %v445_v58, %v445_v58  ;;  %v3534_v14 = vpack.c.bf16 %v446_v60, %v446_v60  ;;  %v4805_v16 = vld [vmem:[#allocation2 + $0x2c] ss:$0 sps:$4 sm:$0x11]   ;;  %v878_v18 = vrot.slane %v873_v55, 4 }
  0x4e   : > { %v1435_v15 = vor.u32 %v1434_v63, %v1430_v49  ;;  %v1049_v21 = vsel %vm4597_vm8, %v868_v1, %v1048_v52  ;;  %v415_v12 = vadd.f32 %v4554_v26, %v376_v47  ;;  %v1298_v24 = vshrl.u32 %v4803_v9, 16  ;;  %v975_v52 = vld [vmem:[#allocation2 + $0x38] sm:$0x1]  ;;  %v4382_v1 = vld [vmem:[%s5736_s1 + $0x168] sm:$0xff]  }
  0x4f   : > { %v1300_v25 = vshll.u32 %v4803_v9, 16  ;;  %v877_v27 = vsel %vm4591_vm7, %v869_v6, %v876_v11  ;;  %1050 = vst [vmem:[#allocation2 + $0xb4] sm:$0xf] %v1049_v21  ;;  %v676_v29 = vshrl.u32 %v3533_v13, 16  ;;  %3890 = vmatpush3.bf16.msra.mxu1 %v4362_v59  ;;  %v1305_v31 = vshll.u32 %v4805_v16, 16  ;;  %v4844_v63 = vld [vmem:[%s4533_s28 + $0x38] sm:$0xff]   ;;  %3999 = vmatprep.subr.bf16.mxu0 %v4382_v1 }
  0x50   : > { %v4818_v20 = vsel %vm1260_vm1, %v1435_v15, %v1439_v8  ;;  %1051 = vst [vmem:[#allocation2 + $0xb8] sm:$0xf] %v877_v27  ;;  %v1053_v32 = vsel %vm4603_vm9, %v878_v18, %v1052_v56  ;;  %v679_v34 = vshll.u32 %v3533_v13, 16  ;;  %3891 = vmatprep.subr.bf16.mxu1 %v4364_v62  ;;  %v684_v41 = vshrl.u32 %v3534_v14, 16  ;;  %v3740_v62 = vld [vmem:[%s4533_s28 + $0x30] sm:$0xff]  }
  0x51   : > { %2306 = vmatprep.mubr.bf16.mxu1 %v4818_v20  ;;  %v1302_v38 = vrot.slane %v1300_v25, 1  ;;  %1054 = vst [vmem:[#allocation2 + $0xbc] sm:$0x1] %v1053_v32  ;;  %v678_v39 = vrot.slane %v676_v29, 7  ;;  %v687_v10 = vshll.u32 %v3534_v14, 16  ;;  %v1307_v33 = vrot.slane %v1305_v31, 1 }
  0x52   : > { %2307 = vmatmul.mubr.bf16.gmra.mrb[8].mxu1 %v4781_v43  ;;  %v416_v28 = vadd.f32 %v4554_v26, %v377_v7  ;;  %v447_v45 = vmax.f32 %v415_v12, 0.0  ;;  %v3614_v46 = vunpack.c.h.bf16 %v4779_v40  ;;  %v686_v51 = vrot.slane %v684_v41, 7  ;;  %v978_v13 = vld [vmem:[#allocation2 + $0x3c] sm:$0xf]  ;;  %v985_v1 = vld [vmem:[#allocation2 + $0x48] sm:$0xf] }
  0x53   : > { %v1303_v47 = vor.u32 %v1302_v38, %v1298_v24  ;;  %v681_v49 = vor.u32 %v679_v34, %v678_v39  ;;  %v682_v50 = vrot.slane %v678_v39, 4  ;;  %3892 = vmatpush3.bf16.msra.mxu1 %v4365_v30  ;;  %v378_v43 = vmul.f32 %v3613_v44, %v4546_v19 }
  0x54   : > { %4101 = vmatprep.subr.bf16.mxu1 %v4366_v35  ;;  %v448_v53 = vmax.f32 %v416_v28, 0.0  ;;  %v3535_v54 = vpack.c.bf16 %v447_v45, %v447_v45  ;;  %v379_v55 = vmul.f32 %v3614_v46, %v4546_v19  ;;  %v689_v58 = vor.u32 %v687_v10, %v686_v51  ;;  %v4867_v45 = vld [vmem:[%s5738_s3] ss:$0 sm:$0xff] }
  0x55   : > { %v4838_v56 = vsel %vm1260_vm1, %v1303_v47, %v1307_v33  ;;  %v691_v60 = vrot.slane %v686_v51, 4  ;;  %v972_v59 = vsel %vm4597_vm8, %v681_v49, %v971_v17  ;;  %v417_v6 = vadd.f32 %v4554_v26, %v378_v43  ;;  %v982_v17 = vld [vmem:[#allocation2 + $0x44] sm:$0x1] }
  0x56   : > { %2218 = vmatprep.mubr.bf16.mxu0 %v4838_v56  ;;  %973 = vst [vmem:[#allocation2 + $0x30] sm:$0xf] %v972_v59  ;;  %v3536_v40 = vpack.c.bf16 %v448_v53, %v448_v53  ;;  %v693_v19 = vshrl.u32 %v3535_v54, 16  ;;  %v696_v44 = vshll.u32 %v3535_v54, 16  ;;  %v690_v8 = vsel %vm4591_vm7, %v682_v50, %v689_v58 }
  0x57   : > { %2219 = vmatmul.mubr.bf16.gmra.mrb[12].mxu0 %v4803_v9  ;;  %v4356_v7 = vld [vmem:[#allocation2 + $0xb4] sm:$0xff]   ;;  %v976_v11 = vsel %vm4603_vm9, %v691_v60, %v975_v52  ;;  %v418_v14 = vadd.f32 %v4554_v26, %v379_v55  ;;  %v1473_v15 = vrot.slane %v4647_v22, 1  ;;  %974 = vst [vmem:[#allocation2 + $0x34] sm:$0xf] %v690_v8  ;;  %v3617_v12 = vunpack.c.l.bf16 %v3740_v62  ;;  %v4383_v26 = vld [vmem:[%s5736_s1 + $0x128] sm:$0xff]  }
  0x58   : > { %v4357_v18 = vld [vmem:[#allocation2 + $0xbc] ss:$0 sps:$4 sm:$0x11]   ;;  %977 = vst [vmem:[#allocation2 + $0x38] sm:$0x1] %v976_v11  ;;  %v695_v21 = vrot.slane %v693_v19, 7  ;;  %v3618_v24 = vunpack.c.h.bf16 %v3740_v62  ;;  %v3621_v35 = vunpack.c.l.bf16 %v4844_v63  ;;  %4000 = vmatpush3.bf16.msra.mxu0 %v4383_v26 }
  0x59   : > { %v1442_v25 = vshrl.u32 %v4356_v7, 16  ;;  %v1444_v27 = vshll.u32 %v4356_v7, 16  ;;  %v701_v29 = vshrl.u32 %v3536_v40, 16  ;;  %v704_v30 = vshll.u32 %v3536_v40, 16  ;;  %v4887_v8 = vld [vmem:[%s5739_s4] ss:$0 sm:$0xff] }
  0x5a   : > { %v1449_v31 = vshll.u32 %v4357_v18, 16  ;;  %v698_v32 = vor.u32 %v696_v44, %v695_v21  ;;  %v449_v34 = vmax.f32 %v417_v6, 0.0  ;;  %v699_v38 = vrot.slane %v695_v21, 4  ;;  %v989_v6 = vld [vmem:[#allocation2 + $0x50] sm:$0x1] }
  0x5b   : > { %v1446_v37 = vrot.slane %v1444_v27, 1  ;;  %v703_v39 = vrot.slane %v701_v29, 7  ;;  %v450_v41 = vmax.f32 %v418_v14, 0.0  ;;  %v380_v46 = vmul.f32 %v4867_v45, %v3617_v12  ;;  %v4388_v14 = vld [vmem:[%s5736_s1 + $0x170] sm:$0xff]  }
  0x5c   : > { %v1451_v10 = vrot.slane %v1449_v31, 1  ;;  %v979_v33 = vsel %vm4597_vm8, %v698_v32, %v978_v13  ;;  %v3537_v28 = vpack.c.bf16 %v449_v34, %v449_v34  ;;  %v1474_v54 = vrot.slane %v4649_v23, 1  ;;  %4001 = vmatprep.subr.bf16.mxu0 %v4388_v14 }
  0x5d   : > { %v1447_v47 = vor.u32 %v1446_v37, %v1442_v25  ;;  %v706_v49 = vor.u32 %v704_v30, %v703_v39  ;;  %v708_v50 = vrot.slane %v703_v39, 4  ;;  %980 = vst [vmem:[#allocation2 + $0x3c] sm:$0xf] %v979_v33  ;;  %v3538_v51 = vpack.c.bf16 %v450_v41, %v450_v41 }
  0x5e   : > { %v710_v52 = vshrl.u32 %v3537_v28, 16  ;;  %v713_v53 = vshll.u32 %v3537_v28, 16  ;;  %v381_v43 = vmul.f32 %v4867_v45, %v3618_v24  ;;  %v4875_v58 = vld [vmem:[#allocation2 + $0x30] sm:$0xff]   ;;  %v419_v11 = vadd.f32 %v4887_v8, %v380_v46  ;;  %v4375_v46 = vld [vmem:[%s5736_s1 + $0x1c8] sm:$0xff]  }
  0x5f   : > { %v4873_v55 = vsel %vm1260_vm1, %v1447_v47, %v1451_v10  ;;  %v707_v60 = vsel %vm4591_vm7, %v699_v38, %v706_v49  ;;  %v983_v59 = vsel %vm4603_vm9, %v708_v50, %v982_v17  ;;  %v718_v62 = vshrl.u32 %v3538_v51, 16  ;;  %v4882_v40 = vld [vmem:[#allocation2 + $0x38] ss:$0 sps:$4 sm:$0x11]   ;;  %v4369_v38 = vld [vmem:[%s5736_s1 + $0x180] sm:$0xff]  }
  0x60   : > { %2314 = vmatprep.mubr.bf16.mxu1 %v4873_v55  ;;  %981 = vst [vmem:[#allocation2 + $0x40] sm:$0xf] %v707_v60  ;;  %984 = vst [vmem:[#allocation2 + $0x44] sm:$0x1] %v983_v59  ;;  %v712_v19 = vrot.slane %v710_v52, 7  ;;  %v721_v44 = vshll.u32 %v3538_v51, 16  ;;  %v420_v13 = vadd.f32 %v4887_v8, %v381_v43  ;;  %v3622_v52 = vunpack.c.h.bf16 %v4844_v63 }
  0x61   : > { %v1310_v18 = vshrl.u32 %v4875_v58, 16  ;;  %v1312_v21 = vshll.u32 %v4875_v58, 16  ;;  %2315 = vmatmul.mubr.bf16.gmra.mrb[12].mxu1 %v4356_v7  ;;  %v720_v12 = vrot.slane %v718_v62, 7  ;;  %v1476_v24 = vrot.slane %v4733_v61, 1  ;;  %v4391_v7 = vld [vmem:[%s5736_s1 + $0x130] sm:$0xff]   ;;  %v4916_v49 = vld [vmem:[%s4533_s28 + $0x40] sm:$0xff]  }
  0x62   : > { %v1317_v25 = vshll.u32 %v4882_v40, 16  ;;  %2355 = vmatprep.mubr.bf16.mxu1 %v4647_v22  ;;  %v715_v27 = vor.u32 %v713_v53, %v712_v19  ;;  %v716_v29 = vrot.slane %v712_v19, 4  ;;  %v451_v30 = vmax.f32 %v419_v11, 0.0  ;;  %4002 = vmatpush3.bf16.msra.mxu0 %v4391_v7 }
  0x63   : > { %v1314_v31 = vrot.slane %v1312_v21, 1  ;;  %v723_v32 = vor.u32 %v721_v44, %v720_v12  ;;  %v725_v34 = vrot.slane %v720_v12, 4  ;;  %v452_v26 = vmax.f32 %v420_v13, 0.0 }
  0x64   : > { %v1319_v37 = vrot.slane %v1317_v25, 1  ;;  %v986_v39 = vsel %vm4597_vm8, %v715_v27, %v985_v1  ;;  %v3539_v41 = vpack.c.bf16 %v451_v30, %v451_v30  ;;  %v1477_v10 = vrot.slane %v4740_v4, 1  ;;  %v996_v25 = vld [vmem:[#allocation2 + $0x5c] sm:$0x1]  ;;  %v4379_v27 = vld [vmem:[%s5736_s1 + $0x188] sm:$0xff]  }
  0x65   : > { %v1315_v33 = vor.u32 %v1314_v31, %v1310_v18  ;;  %v724_v17 = vsel %vm4591_vm7, %v716_v29, %v723_v32  ;;  %987 = vst [vmem:[#allocation2 + $0x48] sm:$0xf] %v986_v39  ;;  %v990_v28 = vsel %vm4603_vm9, %v725_v34, %v989_v6  ;;  %v3540_v47 = vpack.c.bf16 %v452_v26, %v452_v26  ;;  %v4396_v26 = vld [vmem:[%s5736_s1 + $0x178] sm:$0xff]  }
  0x66   : > { %988 = vst [vmem:[#allocation2 + $0x4c] sm:$0xf] %v724_v17  ;;  %991 = vst [vmem:[#allocation2 + $0x50] sm:$0x1] %v990_v28  ;;  %v727_v50 = vshrl.u32 %v3539_v41, 16  ;;  %v730_v51 = vshll.u32 %v3539_v41, 16  ;;  %v382_v59 = vmul.f32 %v4867_v45, %v3621_v35  ;;  %v383_v44 = vmul.f32 %v4867_v45, %v3622_v52  ;;  %4003 = vmatprep.subr.bf16.mxu0 %v4396_v26 }
  0x67   : > { %v4920_v53 = vsel %vm1260_vm1, %v1315_v33, %v1319_v37  ;;  %v4922_v43 = vld [vmem:[#allocation2 + $0x3c] sm:$0xff]   ;;  %v735_v60 = vshrl.u32 %v3540_v47, 16  ;;  %v4928_v62 = vld [vmem:[#allocation2 + $0x44] ss:$0 sps:$4 sm:$0x11]   ;;  %v738_v19 = vshll.u32 %v3540_v47, 16  ;;  %v3625_v6 = vunpack.c.l.bf16 %v4916_v49 }
  0x68   : > { %2226 = vmatprep.mubr.bf16.mxu0 %v4920_v53  ;;  %v729_v1 = vrot.slane %v727_v50, 7  ;;  %v1322_v11 = vshrl.u32 %v4922_v43, 16  ;;  %v1324_v13 = vshll.u32 %v4922_v43, 16  ;;  %v992_v35 = vld [vmem:[#allocation2 + $0x54] sm:$0xf]  ;;  %v421_v14 = vadd.f32 %v4887_v8, %v382_v59  ;;  %v4397_v33 = vld [vmem:[%s5736_s1 + $0x138] sm:$0xff]  }
  0x69   : > { %2227 = vmatmul.mubr.bf16.gmra.mrb[16].mxu0 %v4875_v58  ;;  %2356 = vmatmul.mubr.bf16.vlgmr.msra.gmra.mrb[16].mxu1 %v4569_v36  ;;  %v737_v63 = vrot.slane %v735_v60, 7  ;;  %v1329_v18 = vshll.u32 %v4928_v62, 16  ;;  %v422_v29 = vadd.f32 %v4887_v8, %v383_v44  ;;  %v4384_v36 = vld [vmem:[%s5736_s1 + $0x1d0] sm:$0xff]   ;;  %v1479_v39 = vrot.slane %v4803_v9, 1 }
  0x6a   : > { %4102 = vmatpush3.bf16.msra.mxu1 %v4369_v38  ;;  %2363 = vmatprep.mubr.bf16.mxu1 %v4733_v61  ;;  %v732_v21 = vor.u32 %v730_v51, %v729_v1  ;;  %v733_v12 = vrot.slane %v729_v1, 4  ;;  %v1326_v30 = vrot.slane %v1324_v13, 1  ;;  %v453_v34 = vmax.f32 %v421_v14, 0.0  ;;  %v4387_v41 = vld [vmem:[%s5736_s1 + $0x190] sm:$0xff]  }
  0x6b   : > { %4103 = vmatprep.subr.bf16.mxu1 %v4375_v46  ;;  %v740_v31 = vor.u32 %v738_v19, %v737_v63  ;;  %v742_v32 = vrot.slane %v737_v63, 4  ;;  %v1331_v7 = vrot.slane %v1329_v18, 1  ;;  %v454_v38 = vmax.f32 %v422_v29, 0.0  ;;  %v4392_v19 = vld [vmem:[%s5736_s1 + $0x1d8] sm:$0xff]   ;;  %4004 = vmatpush3.bf16.msra.mxu0 %v4397_v33  ;;  %v999_v63 = vld [vmem:[#allocation2 + $0x60] sm:$0xf] }
  0x6c   : > { %v993_v37 = vsel %vm4597_vm8, %v732_v21, %v992_v35  ;;  %v1327_v17 = vor.u32 %v1326_v30, %v1322_v11  ;;  %v3541_v50 = vpack.c.bf16 %v453_v34, %v453_v34  ;;  %v4971_v52 = vsel %vm1469_vm0, %v1473_v15, %v1474_v54  ;;  %v3743_v35 = vld [vmem:[%s4533_s28 + $0x48] sm:$0xff]   ;;  %v4395_v30 = vld [vmem:[%s5736_s1 + $0x198] sm:$0xff]   ;;  %v4400_v33 = vld [vmem:[%s5736_s1 + $0x1a0] sm:$0xff]  }
  0x6d   : > { %v4958_v28 = vld [vmem:[#allocation2 + $0x48] sm:$0xff]   ;;  %v741_v46 = vsel %vm4591_vm7, %v733_v12, %v740_v31  ;;  %994 = vst [vmem:[#allocation2 + $0x54] sm:$0xf] %v993_v37  ;;  %v997_v47 = vsel %vm4603_vm9, %v742_v32, %v996_v25  ;;  %v4964_v51 = vld [vmem:[#allocation2 + $0x50] ss:$0 sps:$4 sm:$0x11]   ;;  %v3542_v60 = vpack.c.bf16 %v454_v38, %v454_v38  ;;  %v3626_v59 = vunpack.c.h.bf16 %v4916_v49 }
  0x6e   : > { %995 = vst [vmem:[#allocation2 + $0x58] sm:$0xf] %v741_v46  ;;  %998 = vst [vmem:[#allocation2 + $0x5c] sm:$0x1] %v997_v47  ;;  %4104 = vmatpush3.bf16.msra.mxu1 %v4379_v27  ;;  %v384_v1 = vmul.f32 %v4867_v45, %v3625_v6  ;;  %v4979_v23 = vsel %vm1260_vm1, %v1327_v17, %v1331_v7  ;;  %v1334_v22 = vshrl.u32 %v4958_v28, 16  ;;  %v1336_v15 = vshll.u32 %v4958_v28, 16 }
  0x6f   : > { %v744_v54 = vshrl.u32 %v3541_v50, 16  ;;  %4105 = vmatprep.subr.bf16.mxu1 %v4384_v36  ;;  %v4986_v49 = vld [vmem:[%s5736_s1 + $0x200] sm:$0xff]   ;;  %2234 = vmatprep.mubr.bf16.mxu0 %v4979_v23  ;;  %v1341_v44 = vshll.u32 %v4964_v51, 16  ;;  %v747_v6 = vshll.u32 %v3541_v50, 16  ;;  %v752_v11 = vshrl.u32 %v3542_v60, 16 }
  0x70   : > { %v755_v13 = vshll.u32 %v3542_v60, 16  ;;  %v1338_v14 = vrot.slane %v1336_v15, 1  ;;  %v1003_v21 = vld [vmem:[#allocation2 + $0x68] sm:$0x1]  ;;  %v385_v12 = vmul.f32 %v4867_v45, %v3626_v59  ;;  %v423_v25 = vadd.f32 %v4887_v8, %v384_v1  ;;  %v4398_v7 = vld [vmem:[%s5736_s1 + $0x1e0] sm:$0xff]   ;;  %4237 = vmatprep.subr.bf16.mxu0 %v4986_v49 }
  0x71   : > { %2235 = vmatmul.mubr.bf16.gmra.mrb[20].mxu0 %v4922_v43  ;;  %2364 = vmatmul.mubr.bf16.gmra.mrb[20].mxu1 %v4971_v52  ;;  %v746_v18 = vrot.slane %v744_v54, 7  ;;  %v1343_v27 = vrot.slane %v1341_v44, 1  ;;  %v754_v29 = vrot.slane %v752_v11, 7  ;;  %v1480_v36 = vrot.slane %v4805_v16, 1  ;;  %v4401_v1 = vld [vmem:[%s5736_s1 + $0x1e8] sm:$0xff]  }
  0x72   : > { %2371 = vmatprep.mubr.bf16.mxu1 %v4803_v9  ;;  %4106 = vmatpush3.bf16.msra.mxu1 %v4387_v41  ;;  %v1339_v31 = vor.u32 %v1338_v14, %v1334_v22  ;;  %v424_v26 = vadd.f32 %v4887_v8, %v385_v12  ;;  %v5010_v16 = vsel %vm1469_vm0, %v1476_v24, %v1477_v10  ;;  %v455_v41 = vmax.f32 %v423_v25, 0.0  ;;  %v3744_v12 = vld [vmem:[%s4533_s28 + $0x50] sm:$0xff]  }
  0x73   : > { %v749_v32 = vor.u32 %v747_v6, %v746_v18  ;;  %v750_v34 = vrot.slane %v746_v18, 4  ;;  %4107 = vmatprep.subr.bf16.mxu1 %v4392_v19  ;;  %v757_v37 = vor.u32 %v755_v13, %v754_v29  ;;  %v759_v38 = vrot.slane %v754_v29, 4  ;;  %v1006_v18 = vld [vmem:[#allocation2 + $0x6c] sm:$0xf]  ;;  %v4404_v9 = vld [vmem:[%s5736_s1 + $0x1f0] sm:$0xff]  }
  0x74   : > { %v5016_v17 = vsel %vm1260_vm1, %v1339_v31, %v1343_v27  ;;  %v456_v47 = vmax.f32 %v424_v26, 0.0  ;;  %v3629_v61 = vunpack.c.l.bf16 %v3743_v35  ;;  %v3543_v60 = vpack.c.bf16 %v455_v41, %v455_v41 }
  0x75   : > { %v5018_v46 = vld [vmem:[#allocation2 + $0x54] sm:$0xff]   ;;  %v1000_v4 = vsel %vm4597_vm8, %v749_v32, %v999_v63  ;;  %2242 = vmatprep.mubr.bf16.mxu0 %v5016_v17  ;;  %v5023_v24 = vld [vmem:[#allocation2 + $0x5c] ss:$0 sps:$4 sm:$0x11]   ;;  %v758_v10 = vsel %vm4591_vm7, %v750_v34, %v757_v37  ;;  %v1004_v50 = vsel %vm4603_vm9, %v759_v38, %v1003_v21  ;;  %v3630_v59 = vunpack.c.h.bf16 %v3743_v35  ;;  %v4403_v32 = vld [vmem:[%s5736_s1 + $0x1a8] sm:$0xff]  }
  0x76   : > { %1001 = vst [vmem:[#allocation2 + $0x60] sm:$0xf] %v1000_v4  ;;  %4108 = vmatpush3.bf16.msra.mxu1 %v4395_v30  ;;  %v1346_v19 = vshrl.u32 %v5018_v46, 16  ;;  %v1348_v22 = vshll.u32 %v5018_v46, 16  ;;  %1002 = vst [vmem:[#allocation2 + $0x64] sm:$0xf] %v758_v10  ;;  %v3544_v15 = vpack.c.bf16 %v456_v47, %v456_v47  ;;  %v386_v54 = vmul.f32 %v4867_v45, %v3629_v61 }
  0x77   : > { %1005 = vst [vmem:[#allocation2 + $0x68] sm:$0x1] %v1004_v50  ;;  %4109 = vmatprep.subr.bf16.mxu1 %v4398_v7  ;;  %v1353_v44 = vshll.u32 %v5023_v24, 16  ;;  %v761_v6 = vshrl.u32 %v3543_v60, 16  ;;  %v764_v11 = vshll.u32 %v3543_v60, 16  ;;  %v387_v13 = vmul.f32 %v4867_v45, %v3630_v59 }
  0x78   : > { %v1350_v63 = vrot.slane %v1348_v22, 1  ;;  %v769_v35 = vshrl.u32 %v3544_v15, 16  ;;  %v772_v14 = vshll.u32 %v3544_v15, 16  ;;  %v425_v21 = vadd.f32 %v4887_v8, %v386_v54  ;;  %v1010_v30 = vld [vmem:[#allocation2 + $0x74] sm:$0x1] }
  0x79   : > { %2243 = vmatmul.mubr.bf16.gmra.mrb[24].mxu0 %v4958_v28  ;;  %2372 = vmatmul.mubr.bf16.gmra.mrb[24].mxu1 %v5010_v16  ;;  %v1355_v25 = vrot.slane %v1353_v44, 1  ;;  %v5045_v27 = vsel %vm1469_vm0, %v1479_v39, %v1480_v36  ;;  %v763_v29 = vrot.slane %v761_v6, 7  ;;  %v426_v31 = vadd.f32 %v4887_v8, %v387_v13  ;;  %v4407_v6 = vld [vmem:[%s5736_s1 + $0x1f8] sm:$0xff]  }
  0x7a   : > { %2379 = vmatprep.mubr.bf16.mxu1 %v4875_v58  ;;  %4110 = vmatpush3.bf16.msra.mxu1 %v4400_v33  ;;  %v1351_v34 = vor.u32 %v1350_v63, %v1346_v19  ;;  %v771_v26 = vrot.slane %v769_v35, 7  ;;  %v1482_v7 = vrot.slane %v4875_v58, 1  ;;  %v457_v37 = vmax.f32 %v425_v21, 0.0  ;;  %v4406_v58 = vld [vmem:[%s5736_s1 + $0x1b0] sm:$0xff]   ;;  %v1013_v35 = vld [vmem:[#allocation2 + $0x78] sm:$0xf] }
  0x7b   : > { %4111 = vmatprep.subr.bf16.mxu1 %v4401_v1  ;;  %v766_v39 = vor.u32 %v764_v11, %v763_v29  ;;  %v767_v36 = vrot.slane %v763_v29, 4  ;;  %v458_v38 = vmax.f32 %v426_v31, 0.0  ;;  %v3633_v41 = vunpack.c.l.bf16 %v3744_v12 }
  0x7c   : > { %v5056_v33 = vsel %vm1260_vm1, %v1351_v34, %v1355_v25  ;;  %v774_v4 = vor.u32 %v772_v14, %v771_v26  ;;  %v776_v47 = vrot.slane %v771_v26, 4  ;;  %v3545_v61 = vpack.c.bf16 %v457_v37, %v457_v37 }
  0x7d   : > { %2250 = vmatprep.mubr.bf16.mxu0 %v5056_v33  ;;  %v5062_v10 = vld [vmem:[#allocation2 + $0x60] sm:$0xff]   ;;  %v1007_v50 = vsel %vm4597_vm8, %v766_v39, %v1006_v18  ;;  %v1483_v60 = vrot.slane %v4882_v40, 1  ;;  %v3546_v59 = vpack.c.bf16 %v458_v38, %v458_v38  ;;  %v3634_v1 = vunpack.c.h.bf16 %v3744_v12 }
  0x7e   : > { %4112 = vmatpush3.bf16.msra.mxu1 %v4403_v32  ;;  %v5067_v19 = vld [vmem:[#allocation2 + $0x68] ss:$0 sps:$4 sm:$0x11]   ;;  %v775_v22 = vsel %vm4591_vm7, %v767_v36, %v774_v4  ;;  %1008 = vst [vmem:[#allocation2 + $0x6c] sm:$0xf] %v1007_v50  ;;  %v1011_v15 = vsel %vm4603_vm9, %v776_v47, %v1010_v30  ;;  %v778_v54 = vshrl.u32 %v3545_v61, 16  ;;  %v388_v21 = vmul.f32 %v4867_v45, %v3633_v41 }
  0x7f   : > { %v781_v44 = vshll.u32 %v3545_v61, 16  ;;  %4113 = vmatprep.subr.bf16.mxu1 %v4404_v9  ;;  %v1358_v40 = vshrl.u32 %v5062_v10, 16  ;;  %v1360_v11 = vshll.u32 %v5062_v10, 16  ;;  %1009 = vst [vmem:[#allocation2 + $0x70] sm:$0xf] %v775_v22  ;;  %v786_v13 = vshrl.u32 %v3546_v59, 16 }
  0x80   : > { %1012 = vst [vmem:[#allocation2 + $0x74] sm:$0x1] %v1011_v15  ;;  %v789_v63 = vshll.u32 %v3546_v59, 16  ;;  %v1365_v14 = vshll.u32 %v5067_v19, 16  ;;  %v780_v18 = vrot.slane %v778_v54, 7  ;;  %v389_v12 = vmul.f32 %v4867_v45, %v3634_v1 }
  0x81   : > { %2251 = vmatmul.mubr.bf16.gmra.mrb[28].mxu0 %v5018_v46  ;;  %2380 = vmatmul.mubr.bf16.gmra.mrb[28].mxu1 %v5045_v27  ;;  %v1362_v25 = vrot.slane %v1360_v11, 1  ;;  %v788_v29 = vrot.slane %v786_v13, 7  ;;  %v1017_v30 = vld [vmem:[#allocation2 + $0x80] sm:$0x1]  ;;  %v427_v26 = vadd.f32 %v4887_v8, %v388_v21  ;;  %v5087_v38 = vsel %vm1469_vm0, %v1482_v7, %v1483_v60  ;;  %v4409_v7 = vld [vmem:[%s5736_s1 + $0x1b8] sm:$0xff]  }
  0x82   : > { %2387 = vmatprep.mubr.bf16.mxu1 %v4922_v43  ;;  %4114 = vmatpush3.bf16.msra.mxu1 %v4406_v58  ;;  %v1367_v31 = vrot.slane %v1365_v14, 1  ;;  %v783_v32 = vor.u32 %v781_v44, %v780_v18  ;;  %v784_v34 = vrot.slane %v780_v18, 4  ;;  %v428_v36 = vadd.f32 %v4887_v8, %v389_v12  ;;  %v3749_v21 = vld [vmem:[%s4533_s28 + $0x78] sm:$0xff]   ;;  %s295_s28 = scalar_lea.vmem %s5742_s7, %s5750_s2 }
  0x83   : > { %4115 = vmatprep.subr.bf16.mxu1 %v4407_v6  ;;  %v1363_v37 = vor.u32 %v1362_v25, %v1358_v40  ;;  %v791_v9 = vor.u32 %v789_v63, %v788_v29  ;;  %v793_v39 = vrot.slane %v788_v29, 4  ;;  %v459_v4 = vmax.f32 %v427_v26, 0.0  ;;  %v1024_v29 = vld [vmem:[#allocation2 + $0x8c] sm:$0x1] }
  0x84   : > { %v1014_v41 = vsel %vm4597_vm8, %v783_v32, %v1013_v35  ;;  %v460_v50 = vmax.f32 %v428_v36, 0.0  ;;  %v1485_v22 = vrot.slane %v4922_v43, 1  ;;  %v1486_v15 = vrot.slane %v4928_v62, 1  ;;  %v1020_v62 = vld [vmem:[#allocation2 + $0x84] sm:$0xf] }
  0x85   : > { %v5092_v47 = vsel %vm1260_vm1, %v1363_v37, %v1367_v31  ;;  %v792_v61 = vsel %vm4591_vm7, %v784_v34, %v791_v9  ;;  %1015 = vst [vmem:[#allocation2 + $0x78] sm:$0xf] %v1014_v41  ;;  %v1018_v58 = vsel %vm4603_vm9, %v793_v39, %v1017_v30  ;;  %v3547_v59 = vpack.c.bf16 %v459_v4, %v459_v4 }
  0x86   : > { %2258 = vmatprep.mubr.bf16.mxu0 %v5092_v47  ;;  %v5102_v60 = vld [vmem:[#allocation2 + $0x6c] sm:$0xff]   ;;  %1016 = vst [vmem:[#allocation2 + $0x7c] sm:$0xf] %v792_v61  ;;  %1019 = vst [vmem:[#allocation2 + $0x80] sm:$0x1] %v1018_v58  ;;  %v3548_v54 = vpack.c.bf16 %v460_v50, %v460_v50  ;;  %4116 = vmatpush3.bf16.msra.mxu1 %v4409_v7  ;;  %v5116_v31 = vsel %vm1469_vm0, %v1485_v22, %v1486_v15  ;;  %v3653_v39 = vunpack.c.l.bf16 %v3749_v21 }
  0x87   : > { %v5104_v1 = vld [vmem:[#allocation2 + $0x74] ss:$0 sps:$4 sm:$0x11]   ;;  %v1370_v44 = vshrl.u32 %v5102_v60, 16  ;;  %v1372_v6 = vshll.u32 %v5102_v60, 16  ;;  %v795_v40 = vshrl.u32 %v3547_v59, 16  ;;  %v3654_v36 = vunpack.c.h.bf16 %v3749_v21 }
  0x88   : > { %v798_v11 = vshll.u32 %v3547_v59, 16  ;;  %v1377_v13 = vshll.u32 %v5104_v1, 16  ;;  %v803_v63 = vshrl.u32 %v3548_v54, 16  ;;  %v806_v35 = vshll.u32 %v3548_v54, 16 }
  0x89   : > { %2259 = vmatmul.mubr.bf16.gmra.mrb[32].mxu0 %v5062_v10  ;;  %2388 = vmatmul.mubr.bf16.gmra.mrb[32].mxu1 %v5087_v38  ;;  %v1374_v14 = vrot.slane %v1372_v6, 1  ;;  %v797_v18 = vrot.slane %v795_v40, 7  ;;  %v1488_v15 = vrot.slane %v4958_v28, 1  ;;  %v398_v6 = vmul.f32 %v4867_v45, %v3653_v39 }
  0x8a   : > { %2395 = vmatprep.mubr.bf16.mxu1 %v4958_v28  ;;  %v1379_v12 = vrot.slane %v1377_v13, 1  ;;  %v805_v25 = vrot.slane %v803_v63, 7  ;;  %v399_v40 = vmul.f32 %v4867_v45, %v3654_v36  ;;  %v1495_v0 = vrot.slane %v5067_v19, 1 }
  0x8b   : > { %v1375_v30 = vor.u32 %v1374_v14, %v1370_v44  ;;  %v800_v32 = vor.u32 %v798_v11, %v797_v18  ;;  %v801_v34 = vrot.slane %v797_v18, 4  ;;  %v1489_v44 = vrot.slane %v4964_v51, 1 }
  0x8c   : > { %v808_v37 = vor.u32 %v806_v35, %v805_v25  ;;  %v810_v9 = vrot.slane %v805_v25, 4  ;;  %v437_v63 = vadd.f32 %v4887_v8, %v398_v6  ;;  %v438_v35 = vadd.f32 %v4887_v8, %v399_v40  ;;  %v1059_v6 = vld [vmem:[#allocation2 + $0xc8] sm:$0x1] }
  0x8d   : > { %v5118_v26 = vld [vmem:[#allocation2 + $0x78] sm:$0xff]   ;;  %v5121_v41 = vsel %vm1260_vm1, %v1375_v30, %v1379_v12  ;;  %v5123_v4 = vld [vmem:[#allocation2 + $0x80] ss:$0 sps:$4 sm:$0x11]   ;;  %v1021_v61 = vsel %vm4597_vm8, %v800_v32, %v1020_v62  ;;  %v5148_v14 = vsel %vm1469_vm0, %v1488_v15, %v1489_v44  ;;  %v1491_v8 = vrot.slane %v5018_v46, 1 }
  0x8e   : > { %2266 = vmatprep.mubr.bf16.mxu0 %v5121_v41  ;;  %v1382_v58 = vshrl.u32 %v5118_v26, 16  ;;  %v1384_v50 = vshll.u32 %v5118_v26, 16  ;;  %v809_v7 = vsel %vm4591_vm7, %v801_v34, %v808_v37  ;;  %1022 = vst [vmem:[#allocation2 + $0x84] sm:$0xf] %v1021_v61  ;;  %v1025_v59 = vsel %vm4603_vm9, %v810_v9, %v1024_v29 }
  0x8f   : > { %v1389_v22 = vshll.u32 %v5123_v4, 16  ;;  %1023 = vst [vmem:[#allocation2 + $0x88] sm:$0xf] %v809_v7  ;;  %1026 = vst [vmem:[#allocation2 + $0x8c] sm:$0x1] %v1025_v59  ;;  %v469_v18 = vmax.f32 %v437_v63, 0.0 }
  0x90   : > { %v1386_v54 = vrot.slane %v1384_v50, 1  ;;  %v470_v21 = vmax.f32 %v438_v35, 0.0  ;;  %v1492_v32 = vrot.slane %v5023_v24, 1  ;;  %v1055_v59 = vld [vmem:[#allocation2 + $0xc0] sm:$0xf]  ;;  %v1497_v3 = vrot.slane %v5102_v60, 1 }
  0x91   : > { %2267 = vmatmul.mubr.bf16.gmra.mrb[36].mxu0 %v5102_v60  ;;  %2396 = vmatmul.mubr.bf16.gmra.mrb[36].mxu1 %v5116_v31  ;;  %v1391_v11 = vrot.slane %v1389_v22, 1  ;;  %v3557_v12 = vpack.c.bf16 %v469_v18, %v469_v18  ;;  %v1494_v18 = vrot.slane %v5062_v10, 1  ;;  %v1498_v19 = vrot.slane %v5104_v1, 1 }
  0x92   : > { %2403 = vmatprep.mubr.bf16.mxu1 %v5018_v46  ;;  %v1387_v13 = vor.u32 %v1386_v54, %v1382_v58  ;;  %v3558_v45 = vpack.c.bf16 %v470_v21, %v470_v21  ;;  %v5164_v15 = vsel %vm1469_vm0, %v1491_v8, %v1492_v32  ;;  %v1501_v1 = vrot.slane %v5123_v4, 1  ;;  %v5221_v4 = vld [vmem:[#allocation2 + $0x90] sm:$0xff]  }
  0x93   : > { %v880_v34 = vshrl.u32 %v3557_v12, 16  ;;  %v883_v9 = vshll.u32 %v3557_v12, 16  ;;  %v5183_v21 = vsel %vm1469_vm0, %v1494_v18, %v1495_v0  ;;  %v5199_v12 = vsel %vm1469_vm0, %v1497_v3, %v1498_v19  ;;  %v4427_v18 = vld [vmem:[#allocation2 + $0xbc] ss:$0 sps:$4 sm:$0x11]   ;;  %v4429_v19 = vld [vmem:[#allocation2 + $0x24] sm:$0xff]  }
  0x94   : > { %v5145_v62 = vsel %vm1260_vm1, %v1387_v13, %v1391_v11  ;;  %v888_v39 = vshrl.u32 %v3558_v45, 16  ;;  %v891_v58 = vshll.u32 %v3558_v45, 16  ;;  %v4411_v45 = vld [vmem:[%s5736_s1 + $0x220] sm:$0xff]   ;;  %v1516_v0 = vrot.slane %v4427_v18, 1  ;;  %v4428_v3 = vld [vmem:[#allocation2 + $0x18] sm:$0xff]  }
  0x95   : > { %2274 = vmatprep.mubr.bf16.mxu0 %v5145_v62  ;;  %v882_v61 = vrot.slane %v880_v34, 7  ;;  %v4413_v34 = vld [vmem:[%s5736_s1 + $0x230] sm:$0xff]  }
  0x96   : > { %v5151_v51 = vld [vmem:[#allocation2 + $0x84] sm:$0xff]   ;;  %v5154_v25 = vld [vmem:[#allocation2 + $0x8c] ss:$0 sps:$4 sm:$0x11]   ;;  %v890_v7 = vrot.slane %v888_v39, 7  ;;  %v1506_v39 = vrot.slane %v5221_v4, 1 }
  0x97   : > { %v1394_v29 = vshrl.u32 %v5151_v51, 16  ;;  %v1396_v30 = vshll.u32 %v5151_v51, 16  ;;  %v1401_v37 = vshll.u32 %v5154_v25, 16  ;;  %v885_v54 = vor.u32 %v883_v9, %v882_v61  ;;  %v4414_v9 = vld [vmem:[%s5736_s1 + $0x238] sm:$0xff]  }
  0x98   : > { %v886_v44 = vrot.slane %v882_v61, 4  ;;  %v893_v40 = vor.u32 %v891_v58, %v890_v7  ;;  %v895_v24 = vrot.slane %v890_v7, 4  ;;  %v1504_v32 = vrot.slane %v5154_v25, 1  ;;  %v5238_v25 = vld [vmem:[#allocation2 + $0x9c] sm:$0xff]  }
  0x99   : > { %2275 = vmatmul.mubr.bf16.gmra.mrb[40].mxu0 %v5118_v26  ;;  %2404 = vmatmul.mubr.bf16.gmra.mrb[40].mxu1 %v5148_v14  ;;  %v1398_v36 = vrot.slane %v1396_v30, 1  ;;  %v1403_v50 = vrot.slane %v1401_v37, 1  ;;  %v1056_v13 = vsel %vm4597_vm8, %v885_v54, %v1055_v59  ;;  %v1503_v30 = vrot.slane %v5151_v51, 1  ;;  %v4424_v59 = vld [vmem:[#allocation2 + $0xa4] ss:$0 sps:$4 sm:$0x11]  }
  0x9a   : > { %2411 = vmatprep.mubr.bf16.mxu1 %v5062_v10  ;;  %v894_v63 = vsel %vm4591_vm7, %v886_v44, %v893_v40  ;;  %1057 = vst [vmem:[#allocation2 + $0xc0] sm:$0xf] %v1056_v13  ;;  %v1060_v35 = vsel %vm4603_vm9, %v895_v24, %v1059_v6  ;;  %v1509_v7 = vrot.slane %v5238_v25, 1  ;;  %v5258_v44 = vld [vmem:[#allocation2 + $0xb4] sm:$0xff]  }
  0x9b   : > { %v1399_v22 = vor.u32 %v1398_v36, %v1394_v29  ;;  %1058 = vst [vmem:[#allocation2 + $0xc4] sm:$0xf] %v894_v63  ;;  %1061 = vst [vmem:[#allocation2 + $0xc8] sm:$0x1] %v1060_v35  ;;  %v4412_v29 = vld [vmem:[%s5736_s1 + $0x228] sm:$0xff]   ;;  %v5231_v37 = vsel %vm1469_vm0, %v1503_v30, %v1504_v32  ;;  %v1515_v35 = vrot.slane %v5258_v44, 1 }
  0x9c   : > { %v4422_v36 = vld [vmem:[#allocation2 + $0x98] ss:$0 sps:$4 sm:$0x11]   ;;  %v4426_v40 = vld [vmem:[#allocation2 + $0xb0] ss:$0 sps:$4 sm:$0x11]  }
  0x9d   : > { %v5167_v11 = vsel %vm1260_vm1, %v1399_v22, %v1403_v50  ;;  %v1507_v61 = vrot.slane %v4422_v36, 1  ;;  %v5248_v50 = vld [vmem:[#allocation2 + $0xa8] sm:$0xff]   ;;  %v1510_v22 = vrot.slane %v4424_v59, 1  ;;  %v1513_v24 = vrot.slane %v4426_v40, 1 }
  0x9e   : > { %2282 = vmatprep.mubr.bf16.mxu0 %v5167_v11  ;;  %v1512_v6 = vrot.slane %v5248_v50, 1 }
  0x9f   : > { %v5244_v58 = vsel %vm1469_vm0, %v1506_v39, %v1507_v61  ;;  %v5254_v54 = vsel %vm1469_vm0, %v1509_v7, %v1510_v22 }
  0xa0   : > { %v5264_v13 = vsel %vm1469_vm0, %v1512_v6, %v1513_v24 }
  0xa1   : > { %2412 = vmatmul.mubr.bf16.gmra.mrb[44].mxu1 %v5164_v15  ;;  %2283 = vmatmul.mubr.bf16.gmra.mrb[44].mxu0 %v5151_v51 }
  0xa2   : > { %2419 = vmatprep.mubr.bf16.mxu1 %v5102_v60  ;;  %2516 = vmatprep.mubr.bf16.mxu0 %v4971_v52  ;;  %v4405_v52 = vld [vmem:[%s5736_s1 + $0x210] sm:$0xff]   ;;  %v5266_v63 = vld [vmem:[#allocation2 + $0xc0] sm:$0xff]  }
  0xa3   : > { %v1546_v61 = vshll.u32 %v5266_v63, 16  ;;  %v1556_v7 = vrot.slane %v5266_v63, 1  ;;  %v1544_v22 = vshrl.u32 %v5266_v63, 16 }
  0xa5   : > { %v1548_v6 = vrot.slane %v1546_v61, 1 }
  0xa9   : > { %2420 = vmatmul.mubr.bf16.gmra.mrb[48].mxu1 %v5183_v21  ;;  %2517 = vmatmul.mubr.bf16.vlgmr.msra.gmra.mrb[48].mxu0 %v4690_v5  ;;  %v4408_v5 = vld [vmem:[%s5736_s1 + $0x218] sm:$0xff]  }
  0xaa   : > { %2427 = vmatprep.mubr.bf16.mxu1 %v5118_v26  ;;  %2524 = vmatprep.mubr.bf16.mxu0 %v5010_v16 }
  0xab   : > { %4238 = vmatpush3.bf16.msra.mxu0 %v4986_v49  ;;  %v1500_v49 = vrot.slane %v5118_v26, 1 }
  0xac   : > { %4239 = vmatprep.subr.bf16.mxu0 %v4402_v57 }
  0xad   : > { %v5214_v8 = vsel %vm1469_vm0, %v1500_v49, %v1501_v1 }
  0xaf   : > { %4240 = vmatpush3.bf16.msra.mxu0 %v4402_v57  ;;  %v5274_v57 = vsel %vm1469_vm0, %v1515_v35, %v1516_v0  ;;  %v1549_v0 = vor.u32 %v1548_v6, %v1544_v22 }
  0xb0   : > { %4241 = vmatprep.subr.bf16.mxu0 %v4405_v52 }
  0xb1   : > { %2428 = vmatmul.mubr.bf16.gmra.mrb[52].mxu1 %v5199_v12  ;;  %2525 = vmatmul.mubr.bf16.gmra.mrb[52].mxu0 %v4787_v48 }
  0xb2   : > { %2435 = vmatprep.mubr.bf16.mxu1 %v5151_v51  ;;  %2532 = vmatprep.mubr.bf16.mxu0 %v5045_v27 }
  0xb3   : > { %4242 = vmatpush3.bf16.msra.mxu0 %v4405_v52 }
  0xb4   : > { %4243 = vmatprep.subr.bf16.mxu0 %v4408_v5 }
  0xb7   : > { %4244 = vmatpush3.bf16.msra.mxu0 %v4408_v5 }
  0xb8   : > { %4245 = vmatprep.subr.bf16.mxu0 %v4411_v45 }
  0xb9   : > { %2436 = vmatmul.mubr.bf16.gmra.mrb[56].mxu1 %v5214_v8  ;;  %2533 = vmatmul.mubr.bf16.gmra.mrb[56].mxu0 %v4838_v56 }
  0xba   : > { %2443 = vmatprep.mubr.bf16.mxu1 %v5221_v4  ;;  %2540 = vmatprep.mubr.bf16.mxu0 %v5087_v38 }
  0xbb   : > { %4246 = vmatpush3.bf16.msra.mxu0 %v4411_v45 }
  0xbc   : > { %4247 = vmatprep.subr.bf16.mxu0 %v4412_v29 }
  0xbf   : > { %4248 = vmatpush3.bf16.msra.mxu0 %v4412_v29  ;;  %v4430_v29 = vld [vmem:[#allocation2 + $0x30] sm:$0xff]  }
  0xc0   : > { %4249 = vmatprep.subr.bf16.mxu0 %v4413_v34 }
  0xc1   : > { %2444 = vmatmul.mubr.bf16.gmra.mrb[60].mxu1 %v5231_v37  ;;  %2541 = vmatmul.mubr.bf16.gmra.mrb[60].mxu0 %v4920_v53 }
  0xc2   : > { %2451 = vmatprep.mubr.bf16.mxu1 %v5238_v25  ;;  %2548 = vmatprep.mubr.bf16.mxu0 %v5116_v31 }
  0xc3   : > { %4250 = vmatpush3.bf16.msra.mxu0 %v4413_v34 }
  0xc4   : > { %4251 = vmatprep.subr.bf16.mxu0 %v4414_v9 }
  0xc7   : > { %4252 = vmatpush3.bf16.msra.mxu0 %v4414_v9  ;;  %v4415_v9 = vld [vmem:[#allocation2 + $0xc8] ss:$0 sps:$4 sm:$0x11]  }
  0xc8   : > { %v1557_v59 = vrot.slane %v4415_v9, 1  ;;  %v1551_v40 = vshll.u32 %v4415_v9, 16 }
  0xc9   : > { %2452 = vmatmul.mubr.bf16.gmra.mrb[64].mxu1 %v5244_v58  ;;  %2549 = vmatmul.mubr.bf16.gmra.mrb[64].mxu0 %v4979_v23 }
  0xca   : > { %2459 = vmatprep.mubr.bf16.mxu1 %v5248_v50  ;;  %2556 = vmatprep.mubr.bf16.mxu0 %v5148_v14 }
  0xd1   : > { %2460 = vmatmul.mubr.bf16.gmra.mrb[68].mxu1 %v5254_v54  ;;  %2557 = vmatmul.mubr.bf16.gmra.mrb[68].mxu0 %v5016_v17 }
  0xd2   : > { %2467 = vmatprep.mubr.bf16.mxu1 %v5258_v44  ;;  %2564 = vmatprep.mubr.bf16.mxu0 %v5164_v15 }
  0xd9   : > { %2468 = vmatmul.mubr.bf16.gmra.mrb[72].mxu1 %v5264_v13  ;;  %2565 = vmatmul.mubr.bf16.gmra.mrb[72].mxu0 %v5056_v33 }
  0xda   : > { %2475 = vmatprep.mubr.bf16.mxu1 %v5266_v63  ;;  %2572 = vmatprep.mubr.bf16.mxu0 %v5183_v21 }
  0xe1   : > { %2476 = vmatmul.mubr.bf16.gmra.mrb[76].mxu1 %v5274_v57  ;;  %2573 = vmatmul.mubr.bf16.gmra.mrb[76].mxu0 %v5092_v47 }
  0xe2   : > { %2677 = vmatprep.mubr.bf16.mxu1 %v4787_v48  ;;  %2580 = vmatprep.mubr.bf16.mxu0 %v5199_v12 }
  0xe9   : > { %2678 = vmatmul.mubr.bf16.vlgmr.msra.gmra.mrb[80].mxu1 %v4428_v3  ;;  %2581 = vmatmul.mubr.bf16.gmra.mrb[80].mxu0 %v5121_v41  ;;  %v1553_v3 = vrot.slane %v1551_v40, 1 }
  0xea   : > { %2685 = vmatprep.mubr.bf16.mxu1 %v4838_v56  ;;  %2588 = vmatprep.mubr.bf16.mxu0 %v5214_v8 }
  0xf1   : > { %2686 = vmatmul.mubr.bf16.gmra.mrb[84].mxu1 %v4429_v19  ;;  %2589 = vmatmul.mubr.bf16.gmra.mrb[84].mxu0 %v5145_v62 }
  0xf2   : > { %2693 = vmatprep.mubr.bf16.mxu1 %v4920_v53  ;;  %2596 = vmatprep.mubr.bf16.mxu0 %v5231_v37 }
  0xf9   : > { %2694 = vmatmul.mubr.bf16.gmra.mrb[88].mxu1 %v4430_v29  ;;  %2597 = vmatmul.mubr.bf16.gmra.mrb[88].mxu0 %v5167_v11 }
  0xfa   : > { %2701 = vmatprep.mubr.bf16.mxu1 %v4979_v23  ;;  %2604 = vmatprep.mubr.bf16.mxu0 %v5244_v58 }
  0xfb   : > { %v3781_v52 = vpop.f32.mrb[0].mxu0 }
  0xfc   : > { %v3782_v48 = vpop.f32.mrb[1].mxu0 }
  0xfd   : > { %v5286_v5 = vadd.f32 %v3782_v48, %v3781_v52  ;;  %v3784_v49 = vpop.f32.mrb[2].mxu0  ;;  %v5328_v48 = vsel %vm1260_vm1, %v1549_v0, %v1553_v3 }
  0xfe   : > { %v3785_v1 = vpop.f32.mrb[3].mxu0 }
  0xff   : > { %v5288_v45 = vadd.f32 %v3785_v1, %v3784_v49 }
 0x101   : > { %2702 = vmatmul.mubr.bf16.gmra.mrb[92].mxu1 %v4922_v43  ;;  %2605 = vmatmul.mubr.bf16.gmra.mrb[92].mxu0 %v4671_v42 }
 0x102   : > { %2709 = vmatprep.mubr.bf16.mxu1 %v5016_v17  ;;  %2612 = vmatprep.mubr.bf16.mxu0 %v5254_v54 }
 0x109   : > { %2710 = vmatmul.mubr.bf16.gmra.mrb[96].mxu1 %v4958_v28  ;;  %v3853_v56 = vpop.f32.mrb[0].mxu1  ;;  %2613 = vmatmul.mubr.bf16.gmra.mrb[96].mxu0 %v4738_v2 }
 0x10a   : > { %2717 = vmatprep.mubr.bf16.mxu1 %v5056_v33  ;;  %v3854_v53 = vpop.f32.mrb[1].mxu1  ;;  %2620 = vmatprep.mubr.bf16.mxu0 %v5264_v13 }
 0x10b   : > { %v5301_v23 = vadd.f32 %v3854_v53, %v3853_v56  ;;  %v3856_v30 = vpop.f32.mrb[2].mxu1 }
 0x10c   : > { %v3857_v43 = vpop.f32.mrb[3].mxu1 }
 0x10d   : > { %v5303_v32 = vadd.f32 %v3857_v43, %v3856_v30 }
 0x10e   : > { %v3787_v34 = vpop.f32.mrb[4].mxu0 }
 0x10f   : > { %v3788_v17 = vpop.f32.mrb[5].mxu0 }
 0x110   : > { %v5305_v39 = vadd.f32 %v3788_v17, %v3787_v34  ;;  %v3790_v28 = vpop.f32.mrb[6].mxu0 }
 0x111   : > { %2718 = vmatmul.mubr.bf16.gmra.mrb[100].mxu1 %v5018_v46  ;;  %v3791_v36 = vpop.f32.mrb[7].mxu0  ;;  %2621 = vmatmul.mubr.bf16.gmra.mrb[100].mxu0 %v4818_v20  ;;  %v5317_v46 = vsel %vm1469_vm0, %v1556_v7, %v1557_v59 }
 0x112   : > { %2725 = vmatprep.mubr.bf16.mxu1 %v5092_v47  ;;  %v5310_v33 = vadd.f32 %v3791_v36, %v3790_v28  ;;  %2628 = vmatprep.mubr.bf16.mxu0 %v5274_v57 }
 0x118   : > { %v3859_v24 = vpop.f32.mrb[4].mxu1 }
 0x119   : > { %2726 = vmatmul.mubr.bf16.gmra.mrb[104].mxu1 %v5062_v10  ;;  %v3860_v47 = vpop.f32.mrb[5].mxu1  ;;  %2629 = vmatmul.mubr.bf16.gmra.mrb[104].mxu0 %v4873_v55 }
 0x11a   : > { %2733 = vmatprep.mubr.bf16.mxu1 %v5121_v41  ;;  %v5322_v35 = vadd.f32 %v3860_v47, %v3859_v24  ;;  %v3862_v18 = vpop.f32.mrb[6].mxu1  ;;  %2636 = vmatprep.mubr.bf16.mxu0 %v5317_v46 }
 0x11b   : > { %v3863_v19 = vpop.f32.mrb[7].mxu1 }
 0x11c   : > { %v5325_v52 = vadd.f32 %v3863_v19, %v3862_v18 }
 0x11f   : > { %v3793_v49 = vpop.f32.mrb[8].mxu0 }
 0x120   : > { %v3794_v10 = vpop.f32.mrb[9].mxu0 }
 0x121   : > { %2734 = vmatmul.mubr.bf16.gmra.mrb[108].mxu1 %v5102_v60  ;;  %v5331_v1 = vadd.f32 %v3794_v10, %v3793_v49  ;;  %v3796_v41 = vpop.f32.mrb[10].mxu0  ;;  %2637 = vmatmul.mubr.bf16.gmra.mrb[108].mxu0 %v5328_v48 }
 0x122   : > { %2741 = vmatprep.mubr.bf16.mxu1 %v5145_v62  ;;  %v3797_v29 = vpop.f32.mrb[11].mxu0  ;;  %4253 = vmatprep.mubr.bf16.mxu0 %v5010_v16 }
 0x123   : > { %v5336_v56 = vadd.f32 %v3797_v29, %v3796_v41 }
 0x125   : > { %v3865_v53 = vpop.f32.mrb[8].mxu1 }
 0x126   : > { %v3866_v30 = vpop.f32.mrb[9].mxu1 }
 0x127   : > { %v5338_v43 = vadd.f32 %v3866_v30, %v3865_v53  ;;  %v3868_v34 = vpop.f32.mrb[10].mxu1  ;;  %v5378_v30 = vld [vmem:[#allocation2 + $0xcc] sm:$0xff]  }
 0x128   : > { %v3869_v17 = vpop.f32.mrb[11].mxu1 }
 0x129   : > { %2742 = vmatmul.mubr.bf16.gmra.mrb[112].mxu1 %v5118_v26  ;;  %v5341_v60 = vadd.f32 %v3869_v17, %v3868_v34  ;;  %4254 = vmatmul.mubr.bf16.vlgmr.msra.gmra.mrb[112].mxu0 %v5045_v27  ;;  %v4417_v34 = vld [vmem:[#allocation2 + $0xd4] ss:$0 sps:$4 sm:$0x11]   ;;  %v1572_v17 = vshll.u32 %v5378_v30, 16 }
 0x12a   : > { %2749 = vmatprep.mubr.bf16.mxu1 %v5167_v11  ;;  %v3799_v62 = vpop.f32.mrb[12].mxu0  ;;  %4257 = vmatprep.mubr.bf16.mxu0 %v5087_v38 }
 0x12b   : > { %v3800_v16 = vpop.f32.mrb[13].mxu0 }
 0x12c   : > { %v5346_v9 = vadd.f32 %v3800_v16, %v3799_v62  ;;  %v3802_v28 = vpop.f32.mrb[14].mxu0 }
 0x12d   : > { %v3803_v36 = vpop.f32.mrb[15].mxu0 }
 0x12e   : > { %v5348_v61 = vadd.f32 %v3803_v36, %v3802_v28 }
 0x131   : > { %2750 = vmatmul.mubr.bf16.gmra.mrb[116].mxu1 %v5151_v51  ;;  %4258 = vmatmul.mubr.bf16.gmra.mrb[116].mxu0 %v5116_v31 }
 0x132   : > { %2757 = vmatprep.mubr.bf16.mxu1 %v4671_v42  ;;  %4261 = vmatprep.mubr.bf16.mxu0 %v5148_v14 }
 0x134   : > { %v3871_v27 = vpop.f32.mrb[12].mxu1 }
 0x135   : > { %v3872_v26 = vpop.f32.mrb[13].mxu1 }
 0x136   : > { %v5354_v11 = vadd.f32 %v3872_v26, %v3871_v27  ;;  %v3874_v38 = vpop.f32.mrb[14].mxu1 }
 0x137   : > { %v3875_v7 = vpop.f32.mrb[15].mxu1 }
 0x138   : > { %v5356_v59 = vadd.f32 %v3875_v7, %v3874_v38  ;;  %v1574_v7 = vrot.slane %v1572_v17, 1 }
 0x139   : > { %2758 = vmatmul.mubr.bf16.gmra.mrb[120].mxu1 %v5221_v4  ;;  %4262 = vmatmul.mubr.bf16.gmra.mrb[120].mxu0 %v5164_v15 }
 0x13a   : > { %2765 = vmatprep.mubr.bf16.mxu1 %v4738_v2  ;;  %4265 = vmatprep.mubr.bf16.mxu0 %v5183_v21 }
 0x13c   : > { %v3805_v31 = vpop.f32.mrb[16].mxu0  ;;  %v3893_v42 = vpop.f32.mrb[16].mxu1 }
 0x13d   : > { %v3806_v51 = vpop.f32.mrb[17].mxu0  ;;  %v3894_v14 = vpop.f32.mrb[17].mxu1 }
 0x13e   : > { %v5362_v22 = vadd.f32 %v3806_v51, %v3805_v31  ;;  %v3808_v6 = vpop.f32.mrb[18].mxu0  ;;  %v3895_v40 = vadd.f32 %v3894_v14, %v3893_v42  ;;  %v3896_v24 = vpop.f32.mrb[18].mxu1 }
 0x13f   : > { %v3809_v47 = vpop.f32.mrb[19].mxu0  ;;  %v3897_v18 = vpop.f32.mrb[19].mxu1 }
 0x140   : > { %v5364_v0 = vadd.f32 %v3809_v47, %v3808_v6  ;;  %v5367_v4 = vadd.f32 %v3895_v40, %v5286_v5  ;;  %v3898_v15 = vadd.f32 %v3897_v18, %v3896_v24 }
 0x141   : > { %2766 = vmatmul.mubr.bf16.gmra.mrb[124].mxu1 %v5238_v25  ;;  %4266 = vmatmul.mubr.bf16.gmra.mrb[124].mxu0 %v5199_v12 }
 0x142   : > { %v5372_v2 = vadd.f32 %v3898_v15, %v5288_v45  ;;  %2773 = vmatprep.mubr.bf16.mxu1 %v4818_v20  ;;  %4269 = vmatprep.mubr.bf16.mxu0 %v5214_v8 }
 0x144   : > { %v3811_v21 = vpop.f32.mrb[20].mxu0  ;;  %v3899_v3 = vpop.f32.mrb[20].mxu1 }
 0x145   : > { %v3812_v19 = vpop.f32.mrb[21].mxu0  ;;  %v3900_v49 = vpop.f32.mrb[21].mxu1 }
 0x146   : > { %v5376_v10 = vadd.f32 %v3812_v19, %v3811_v21  ;;  %v3814_v5 = vpop.f32.mrb[22].mxu0  ;;  %v3901_v41 = vadd.f32 %v3900_v49, %v3899_v3  ;;  %v3902_v29 = vpop.f32.mrb[22].mxu1 }
 0x147   : > { %v3815_v53 = vpop.f32.mrb[23].mxu0  ;;  %v3903_v25 = vpop.f32.mrb[23].mxu1 }
 0x148   : > { %v5380_v12 = vadd.f32 %v3815_v53, %v3814_v5  ;;  %v5383_v45 = vadd.f32 %v3901_v41, %v5305_v39  ;;  %v3904_v20 = vadd.f32 %v3903_v25, %v3902_v29  ;;  %v1582_v5 = vrot.slane %v5378_v30, 1 }
 0x149   : > { %2774 = vmatmul.mubr.bf16.gmra.mrb[128].mxu1 %v5248_v50  ;;  %4270 = vmatmul.mubr.bf16.gmra.mrb[128].mxu0 %v5231_v37  ;;  %v1583_v41 = vrot.slane %v4417_v34, 1 }
 0x14a   : > { %v5388_v8 = vadd.f32 %v3904_v20, %v5310_v33  ;;  %2781 = vmatprep.mubr.bf16.mxu1 %v4873_v55  ;;  %4273 = vmatprep.mubr.bf16.mxu0 %v5244_v58  ;;  %v1570_v33 = vshrl.u32 %v5378_v30, 16  ;;  %v1577_v55 = vshll.u32 %v4417_v34, 16 }
 0x14c   : > { %v3817_v62 = vpop.f32.mrb[24].mxu0  ;;  %v3905_v16 = vpop.f32.mrb[24].mxu1  ;;  %v1575_v14 = vor.u32 %v1574_v7, %v1570_v33  ;;  %v1579_v6 = vrot.slane %v1577_v55, 1 }
 0x14d   : > { %v3818_v28 = vpop.f32.mrb[25].mxu0  ;;  %v3906_v39 = vpop.f32.mrb[25].mxu1 }
 0x14e   : > { %v5393_v36 = vadd.f32 %v3818_v28, %v3817_v62  ;;  %v3820_v27 = vpop.f32.mrb[26].mxu0  ;;  %v3907_v50 = vadd.f32 %v3906_v39, %v3905_v16  ;;  %v3908_v26 = vpop.f32.mrb[26].mxu1 }
 0x14f   : > { %v3821_v37 = vpop.f32.mrb[27].mxu0  ;;  %v3909_v38 = vpop.f32.mrb[27].mxu1 }
 0x150   : > { %v5396_v31 = vadd.f32 %v3821_v37, %v3820_v27  ;;  %v5399_v58 = vadd.f32 %v3907_v50, %v5331_v1  ;;  %v3910_v42 = vadd.f32 %v3909_v38, %v3908_v26 }
 0x151   : > { %2782 = vmatmul.mubr.bf16.gmra.mrb[132].mxu1 %v5258_v44  ;;  %4274 = vmatmul.mubr.bf16.gmra.mrb[132].mxu0 %v5254_v54 }
 0x152   : > { %v5404_v51 = vadd.f32 %v3910_v42, %v5336_v56  ;;  %2789 = vmatprep.mubr.bf16.mxu1 %v5328_v48  ;;  %4277 = vmatprep.mubr.bf16.mxu0 %v5264_v13  ;;  %v1580_v56 = vsel %vm1260_vm1, %v1575_v14, %v1579_v6 }
 0x154   : > { %v3823_v40 = vpop.f32.mrb[28].mxu0  ;;  %v3911_v24 = vpop.f32.mrb[28].mxu1 }
 0x155   : > { %v3824_v47 = vpop.f32.mrb[29].mxu0  ;;  %v3912_v18 = vpop.f32.mrb[29].mxu1 }
 0x156   : > { %v5408_v1 = vadd.f32 %v3824_v47, %v3823_v40  ;;  %v3826_v15 = vpop.f32.mrb[30].mxu0  ;;  %v3913_v21 = vadd.f32 %v3912_v18, %v3911_v24  ;;  %v3914_v44 = vpop.f32.mrb[30].mxu1 }
 0x157   : > { %v3827_v3 = vpop.f32.mrb[31].mxu0  ;;  %v3915_v54 = vpop.f32.mrb[31].mxu1 }
 0x158   : > { %v5411_v19 = vadd.f32 %v3827_v3, %v3826_v15  ;;  %v5414_v48 = vadd.f32 %v3913_v21, %v5346_v9  ;;  %v3916_v13 = vadd.f32 %v3915_v54, %v3914_v44 }
 0x159   : > { %2790 = vmatmul.mubr.bf16.gmra.mrb[136].mxu1 %v5266_v63  ;;  %4278 = vmatmul.mubr.bf16.gmra.mrb[136].mxu0 %v5274_v57  ;;  %v1584_v57 = vsel %vm1469_vm0, %v1582_v5, %v1583_v41 }
 0x15a   : > { %v5419_v49 = vadd.f32 %v3916_v13, %v5348_v61  ;;  %2797 = vmatprep.mubr.bf16.mxu1 %v1580_v56  ;;  %4281 = vmatprep.mubr.bf16.mxu0 %v5317_v46 }
 0x15c   : > { %v3829_v29 = vpop.f32.mrb[32].mxu0  ;;  %v3917_v53 = vpop.f32.mrb[32].mxu1 }
 0x15d   : > { %v3830_v25 = vpop.f32.mrb[33].mxu0  ;;  %v3918_v20 = vpop.f32.mrb[33].mxu1 }
 0x15e   : > { %v5423_v9 = vadd.f32 %v3830_v25, %v3829_v29  ;;  %v3832_v17 = vpop.f32.mrb[34].mxu0  ;;  %v3919_v62 = vadd.f32 %v3918_v20, %v3917_v53  ;;  %v3920_v63 = vpop.f32.mrb[34].mxu1 }
 0x15f   : > { %v3833_v16 = vpop.f32.mrb[35].mxu0  ;;  %v3921_v61 = vpop.f32.mrb[35].mxu1 }
 0x160   : > { %v3834_v28 = vadd.f32 %v3833_v16, %v3832_v17  ;;  %v5427_v39 = vadd.f32 %v3919_v62, %v5362_v22  ;;  %v3922_v46 = vadd.f32 %v3921_v61, %v3920_v63 }
 0x161   : > { %2798 = vmatmul.mubr.bf16.gmra.mrb[140].mxu1 %v5378_v30  ;;  %4282 = vmatmul.mubr.bf16.gmra.mrb[140].mxu0 %v1584_v57 }
 0x162   : > { %v5431_v34 = vadd.f32 %v3922_v46, %v5364_v0 }
 0x164   : > { %v3835_v27 = vpop.f32.mrb[36].mxu0  ;;  %v3923_v50 = vpop.f32.mrb[36].mxu1 }
 0x165   : > { %v3836_v26 = vpop.f32.mrb[37].mxu0  ;;  %v3924_v37 = vpop.f32.mrb[37].mxu1 }
 0x166   : > { %v5433_v38 = vadd.f32 %v3836_v26, %v3835_v27  ;;  %v3838_v33 = vpop.f32.mrb[38].mxu0  ;;  %v3925_v7 = vadd.f32 %v3924_v37, %v3923_v50  ;;  %v3926_v55 = vpop.f32.mrb[38].mxu1 }
 0x167   : > { %v3839_v42 = vpop.f32.mrb[39].mxu0  ;;  %v3927_v14 = vpop.f32.mrb[39].mxu1 }
 0x168   : > { %v3840_v22 = vadd.f32 %v3839_v42, %v3838_v33  ;;  %v5436_v6 = vadd.f32 %v3925_v7, %v5376_v10  ;;  %v3928_v30 = vadd.f32 %v3927_v14, %v3926_v55 }
 0x16a   : > { %v5439_v40 = vadd.f32 %v3928_v30, %v5380_v12 }
 0x16c   : > { %v3841_v0 = vpop.f32.mrb[40].mxu0  ;;  %v3929_v24 = vpop.f32.mrb[40].mxu1 }
 0x16d   : > { %v3842_v47 = vpop.f32.mrb[41].mxu0  ;;  %v3930_v18 = vpop.f32.mrb[41].mxu1 }
 0x16e   : > { %v5441_v15 = vadd.f32 %v3842_v47, %v3841_v0  ;;  %v3844_v21 = vpop.f32.mrb[42].mxu0  ;;  %v3931_v44 = vadd.f32 %v3930_v18, %v3929_v24  ;;  %v3932_v3 = vpop.f32.mrb[42].mxu1 }
 0x16f   : > { %v3845_v54 = vpop.f32.mrb[43].mxu0  ;;  %v3933_v56 = vpop.f32.mrb[43].mxu1 }
 0x170   : > { %v5443_v13 = vadd.f32 %v3845_v54, %v3844_v21  ;;  %v5446_v10 = vadd.f32 %v3931_v44, %v5393_v36  ;;  %v3934_v5 = vadd.f32 %v3933_v56, %v3932_v3 }
 0x172   : > { %v5449_v12 = vadd.f32 %v3934_v5, %v5396_v31 }
 0x174   : > { %v3935_v41 = vpop.f32.mrb[44].mxu1  ;;  %v3847_v29 = vpop.f32.mrb[44].mxu0 }
 0x175   : > { %v3936_v53 = vpop.f32.mrb[45].mxu1  ;;  %v3848_v25 = vpop.f32.mrb[45].mxu0 }
 0x176   : > { %v3937_v20 = vadd.f32 %v3936_v53, %v3935_v41  ;;  %v3938_v17 = vpop.f32.mrb[46].mxu1  ;;  %v5451_v62 = vadd.f32 %v3848_v25, %v3847_v29  ;;  %v3850_v63 = vpop.f32.mrb[46].mxu0 }
 0x177   : > { %v3939_v16 = vpop.f32.mrb[47].mxu1  ;;  %v3851_v57 = vpop.f32.mrb[47].mxu0 }
 0x178   : > { %v5454_v61 = vadd.f32 %v3937_v20, %v5408_v1  ;;  %v3940_v36 = vadd.f32 %v3939_v16, %v3938_v17  ;;  %v5456_v46 = vadd.f32 %v3851_v57, %v3850_v63 }
 0x17a   : > { %v5459_v31 = vadd.f32 %v3940_v36, %v5411_v19 }
 0x17c   : > { %v3941_v27 = vpop.f32.mrb[48].mxu1  ;;  %v4005_v50 = vpop.f32.mrb[48].mxu0 }
 0x17d   : > { %v3942_v26 = vpop.f32.mrb[49].mxu1  ;;  %v4006_v37 = vpop.f32.mrb[49].mxu0 }
 0x17e   : > { %v3943_v33 = vadd.f32 %v3942_v26, %v3941_v27  ;;  %v3944_v7 = vpop.f32.mrb[50].mxu1  ;;  %v4007_v55 = vadd.f32 %v4006_v37, %v4005_v50  ;;  %v4008_v42 = vpop.f32.mrb[50].mxu0 }
 0x17f   : > { %v3945_v14 = vpop.f32.mrb[51].mxu1  ;;  %v4009_v30 = vpop.f32.mrb[51].mxu0 }
 0x180   : > { %v5462_v0 = vadd.f32 %v3943_v33, %v5423_v9  ;;  %v3946_v1 = vadd.f32 %v3945_v14, %v3944_v7  ;;  %v5465_v24 = vadd.f32 %v4007_v55, %v5367_v4  ;;  %v4010_v47 = vadd.f32 %v4009_v30, %v4008_v42 }
 0x182   : > { %v5467_v19 = vadd.f32 %v3946_v1, %v3834_v28  ;;  %v5470_v18 = vadd.f32 %v4010_v47, %v5372_v2 }
 0x184   : > { %v3947_v21 = vpop.f32.mrb[52].mxu1  ;;  %v4011_v44 = vpop.f32.mrb[52].mxu0 }
 0x185   : > { %v3948_v3 = vpop.f32.mrb[53].mxu1  ;;  %v4012_v54 = vpop.f32.mrb[53].mxu0 }
 0x186   : > { %v3949_v56 = vadd.f32 %v3948_v3, %v3947_v21  ;;  %v3950_v5 = vpop.f32.mrb[54].mxu1  ;;  %v4013_v41 = vadd.f32 %v4012_v54, %v4011_v44  ;;  %v4014_v29 = vpop.f32.mrb[54].mxu0 }
 0x187   : > { %v3951_v9 = vpop.f32.mrb[55].mxu1  ;;  %v4015_v53 = vpop.f32.mrb[55].mxu0 }
 0x188   : > { %v5473_v25 = vadd.f32 %v3949_v56, %v5433_v38  ;;  %v3952_v4 = vadd.f32 %v3951_v9, %v3950_v5  ;;  %v5476_v28 = vadd.f32 %v4013_v41, %v5383_v45  ;;  %v4016_v20 = vadd.f32 %v4015_v53, %v4014_v29 }
 0x18a   : > { %v5478_v2 = vadd.f32 %v3952_v4, %v3840_v22  ;;  %v5481_v17 = vadd.f32 %v4016_v20, %v5388_v8 }
 0x18c   : > { %v3953_v63 = vpop.f32.mrb[56].mxu1  ;;  %v4017_v16 = vpop.f32.mrb[56].mxu0 }
 0x18d   : > { %v3954_v57 = vpop.f32.mrb[57].mxu1  ;;  %v4018_v36 = vpop.f32.mrb[57].mxu0 }
 0x18e   : > { %v3955_v27 = vadd.f32 %v3954_v57, %v3953_v63  ;;  %v3956_v50 = vpop.f32.mrb[58].mxu1  ;;  %v4019_v26 = vadd.f32 %v4018_v36, %v4017_v16  ;;  %v4020_v37 = vpop.f32.mrb[58].mxu0 }
 0x18f   : > { %v3957_v38 = vpop.f32.mrb[59].mxu1  ;;  %v4021_v33 = vpop.f32.mrb[59].mxu0 }
 0x190   : > { %v5484_v7 = vadd.f32 %v3955_v27, %v5441_v15  ;;  %v3958_v45 = vadd.f32 %v3957_v38, %v3956_v50  ;;  %v5487_v22 = vadd.f32 %v4019_v26, %v5399_v58  ;;  %v4022_v55 = vadd.f32 %v4021_v33, %v4020_v37 }
 0x192   : > { %v5490_v8 = vadd.f32 %v3958_v45, %v5443_v13  ;;  %v5493_v42 = vadd.f32 %v4022_v55, %v5404_v51 }
 0x194   : > { %v3959_v14 = vpop.f32.mrb[60].mxu1  ;;  %v4023_v30 = vpop.f32.mrb[60].mxu0 }
 0x195   : > { %v3960_v1 = vpop.f32.mrb[61].mxu1  ;;  %v4024_v47 = vpop.f32.mrb[61].mxu0 }
 0x196   : > { %v3961_v21 = vadd.f32 %v3960_v1, %v3959_v14  ;;  %v3962_v44 = vpop.f32.mrb[62].mxu1  ;;  %v4025_v3 = vadd.f32 %v4024_v47, %v4023_v30  ;;  %v4026_v15 = vpop.f32.mrb[62].mxu0 }
 0x197   : > { %v3963_v54 = vpop.f32.mrb[63].mxu1  ;;  %v4027_v56 = vpop.f32.mrb[63].mxu0 }
 0x198   : > { %v5496_v58 = vadd.f32 %v3961_v21, %v5451_v62  ;;  %v3964_v5 = vadd.f32 %v3963_v54, %v3962_v44  ;;  %v5499_v13 = vadd.f32 %v4025_v3, %v5414_v48  ;;  %v4028_v41 = vadd.f32 %v4027_v56, %v4026_v15 }
 0x19a   : > { %v5502_v51 = vadd.f32 %v3964_v5, %v5456_v46  ;;  %v5505_v29 = vadd.f32 %v4028_v41, %v5419_v49 }
 0x19c   : > { %v3965_v9 = vpop.f32.mrb[64].mxu1  ;;  %v4029_v53 = vpop.f32.mrb[64].mxu0 }
 0x19d   : > { %v3966_v4 = vpop.f32.mrb[65].mxu1  ;;  %v4030_v20 = vpop.f32.mrb[65].mxu0 }
 0x19e   : > { %v3967_v63 = vadd.f32 %v3966_v4, %v3965_v9  ;;  %v3968_v16 = vpop.f32.mrb[66].mxu1  ;;  %v4031_v57 = vadd.f32 %v4030_v20, %v4029_v53  ;;  %v4032_v62 = vpop.f32.mrb[66].mxu0 }
 0x19f   : > { %v3969_v36 = vpop.f32.mrb[67].mxu1  ;;  %v4033_v27 = vpop.f32.mrb[67].mxu0 }
 0x1a0   : > { %v5508_v48 = vadd.f32 %v3967_v63, %v5301_v23  ;;  %v3970_v50 = vadd.f32 %v3969_v36, %v3968_v16  ;;  %v5511_v46 = vadd.f32 %v4031_v57, %v5427_v39  ;;  %v4034_v26 = vadd.f32 %v4033_v27, %v4032_v62 }
 0x1a2   : > { %v5514_v49 = vadd.f32 %v3970_v50, %v5303_v32  ;;  %v5517_v37 = vadd.f32 %v4034_v26, %v5431_v34 }
 0x1a4   : > { %v3971_v38 = vpop.f32.mrb[68].mxu1  ;;  %v4035_v33 = vpop.f32.mrb[68].mxu0 }
 0x1a5   : > { %v3972_v45 = vpop.f32.mrb[69].mxu1  ;;  %v4036_v55 = vpop.f32.mrb[69].mxu0 }
 0x1a6   : > { %v3973_v14 = vadd.f32 %v3972_v45, %v3971_v38  ;;  %v3974_v30 = vpop.f32.mrb[70].mxu1  ;;  %v4037_v1 = vadd.f32 %v4036_v55, %v4035_v33  ;;  %v4038_v23 = vpop.f32.mrb[70].mxu0 }
 0x1a7   : > { %v3975_v47 = vpop.f32.mrb[71].mxu1  ;;  %v4039_v21 = vpop.f32.mrb[71].mxu0 }
 0x1a8   : > { %v5520_v39 = vadd.f32 %v3973_v14, %v5322_v35  ;;  %v3976_v44 = vadd.f32 %v3975_v47, %v3974_v30  ;;  %v5523_v32 = vadd.f32 %v4037_v1, %v5436_v6  ;;  %v4040_v3 = vadd.f32 %v4039_v21, %v4038_v23 }
 0x1aa   : > { %v5526_v34 = vadd.f32 %v3976_v44, %v5325_v52  ;;  %v5529_v15 = vadd.f32 %v4040_v3, %v5439_v40 }
 0x1ac   : > { %v3977_v54 = vpop.f32.mrb[72].mxu1  ;;  %v4041_v56 = vpop.f32.mrb[72].mxu0 }
 0x1ad   : > { %v3978_v5 = vpop.f32.mrb[73].mxu1  ;;  %v4042_v41 = vpop.f32.mrb[73].mxu0 }
 0x1ae   : > { %v3979_v9 = vadd.f32 %v3978_v5, %v3977_v54  ;;  %v3980_v53 = vpop.f32.mrb[74].mxu1  ;;  %v4043_v4 = vadd.f32 %v4042_v41, %v4041_v56  ;;  %v4044_v35 = vpop.f32.mrb[74].mxu0 }
 0x1af   : > { %v3981_v20 = vpop.f32.mrb[75].mxu1  ;;  %v4045_v63 = vpop.f32.mrb[75].mxu0 }
 0x1b0   : > { %v5532_v6 = vadd.f32 %v3979_v9, %v5338_v43  ;;  %v3982_v16 = vadd.f32 %v3981_v20, %v3980_v53  ;;  %v5535_v52 = vadd.f32 %v4043_v4, %v5446_v10  ;;  %v4046_v57 = vadd.f32 %v4045_v63, %v4044_v35 }
 0x1b2   : > { %v5538_v40 = vadd.f32 %v3982_v16, %v5341_v60  ;;  %v5541_v62 = vadd.f32 %v4046_v57, %v5449_v12 }
 0x1b4   : > { %v3983_v36 = vpop.f32.mrb[76].mxu1  ;;  %v4047_v27 = vpop.f32.mrb[76].mxu0 }
 0x1b5   : > { %v3984_v50 = vpop.f32.mrb[77].mxu1  ;;  %v4048_v26 = vpop.f32.mrb[77].mxu0 }
 0x1b6   : > { %v3985_v38 = vadd.f32 %v3984_v50, %v3983_v36  ;;  %v3986_v33 = vpop.f32.mrb[78].mxu1  ;;  %v4049_v45 = vadd.f32 %v4048_v26, %v4047_v27  ;;  %v4050_v43 = vpop.f32.mrb[78].mxu0 }
 0x1b7   : > { %v3987_v55 = vpop.f32.mrb[79].mxu1  ;;  %v4051_v14 = vpop.f32.mrb[79].mxu0 }
 0x1b8   : > { %v5544_v10 = vadd.f32 %v3985_v38, %v5354_v11  ;;  %v3988_v30 = vadd.f32 %v3987_v55, %v3986_v33  ;;  %v5547_v60 = vadd.f32 %v4049_v45, %v5454_v61  ;;  %v4052_v1 = vadd.f32 %v4051_v14, %v4050_v43 }
 0x1ba   : > { %v5550_v12 = vadd.f32 %v3988_v30, %v5356_v59  ;;  %v5553_v23 = vadd.f32 %v4052_v1, %v5459_v31 }
 0x1bc   : > { %v4117_v47 = vpop.f32.mrb[80].mxu1  ;;  %v4053_v21 = vpop.f32.mrb[80].mxu0 }
 0x1bd   : > { %v4118_v44 = vpop.f32.mrb[81].mxu1  ;;  %v4054_v3 = vpop.f32.mrb[81].mxu0 }
 0x1be   : > { %v4119_v54 = vadd.f32 %v4118_v44, %v4117_v47  ;;  %v4120_v56 = vpop.f32.mrb[82].mxu1  ;;  %v4055_v5 = vadd.f32 %v4054_v3, %v4053_v21  ;;  %v4056_v11 = vpop.f32.mrb[82].mxu0 }
 0x1bf   : > { %v4121_v41 = vpop.f32.mrb[83].mxu1  ;;  %v4057_v9 = vpop.f32.mrb[83].mxu0 }
 0x1c0   : > { %v4122_v53 = vadd.f32 %v4121_v41, %v4120_v56  ;;  %v5556_v61 = vadd.f32 %v4119_v54, %v5465_v24  ;;  %v5559_v59 = vadd.f32 %v4055_v5, %v5462_v0  ;;  %v4058_v4 = vadd.f32 %v4057_v9, %v4056_v11 }
 0x1c2   : > { %v5562_v31 = vadd.f32 %v4122_v53, %v5470_v18  ;;  %v5565_v35 = vadd.f32 %v4058_v4, %v5467_v19 }
 0x1c4   : > { %v4123_v20 = vpop.f32.mrb[84].mxu1  ;;  %v4059_v63 = vpop.f32.mrb[84].mxu0 }
 0x1c5   : > { %v4124_v16 = vpop.f32.mrb[85].mxu1  ;;  %v4060_v57 = vpop.f32.mrb[85].mxu0 }
 0x1c6   : > { %v4125_v36 = vadd.f32 %v4124_v16, %v4123_v20  ;;  %v4126_v27 = vpop.f32.mrb[86].mxu1  ;;  %v4061_v50 = vadd.f32 %v4060_v57, %v4059_v63  ;;  %v4062_v26 = vpop.f32.mrb[86].mxu0 }
 0x1c7   : > { %v4127_v24 = vpop.f32.mrb[87].mxu1  ;;  %v4063_v38 = vpop.f32.mrb[87].mxu0 }
 0x1c8   : > { %v4128_v33 = vadd.f32 %v4127_v24, %v4126_v27  ;;  %v5568_v0 = vadd.f32 %v4125_v36, %v5476_v28  ;;  %v5571_v18 = vadd.f32 %v4061_v50, %v5473_v25  ;;  %v4064_v45 = vadd.f32 %v4063_v38, %v4062_v26 }
 0x1ca   : > { %v5574_v19 = vadd.f32 %v4128_v33, %v5481_v17  ;;  %v5577_v43 = vadd.f32 %v4064_v45, %v5478_v2 }
 0x1cc   : > { %v4129_v55 = vpop.f32.mrb[88].mxu1  ;;  %v4065_v14 = vpop.f32.mrb[88].mxu0 }
 0x1cd   : > { %v4130_v30 = vpop.f32.mrb[89].mxu1  ;;  %v4066_v1 = vpop.f32.mrb[89].mxu0 }
 0x1ce   : > { %v4131_v47 = vadd.f32 %v4130_v30, %v4129_v55  ;;  %v4132_v21 = vpop.f32.mrb[90].mxu1  ;;  %v4067_v44 = vadd.f32 %v4066_v1, %v4065_v14  ;;  %v4068_v3 = vpop.f32.mrb[90].mxu0 }
 0x1cf   : > { %v4133_v28 = vpop.f32.mrb[91].mxu1  ;;  %v4069_v54 = vpop.f32.mrb[91].mxu0 }
 0x1d0   : > { %v4134_v56 = vadd.f32 %v4133_v28, %v4132_v21  ;;  %v5580_v25 = vadd.f32 %v4131_v47, %v5487_v22  ;;  %v5583_v17 = vadd.f32 %v4067_v44, %v5484_v7  ;;  %v4070_v5 = vadd.f32 %v4069_v54, %v4068_v3 }
 0x1d2   : > { %v5586_v2 = vadd.f32 %v4134_v56, %v5493_v42  ;;  %v5589_v11 = vadd.f32 %v4070_v5, %v5490_v8 }
 0x1d4   : > { %v4135_v41 = vpop.f32.mrb[92].mxu1  ;;  %v4071_v9 = vpop.f32.mrb[92].mxu0 }
 0x1d5   : > { %v4136_v53 = vpop.f32.mrb[93].mxu1  ;;  %v4072_v4 = vpop.f32.mrb[93].mxu0 }
 0x1d6   : > { %v4137_v20 = vadd.f32 %v4136_v53, %v4135_v41  ;;  %v4138_v63 = vpop.f32.mrb[94].mxu1  ;;  %v4073_v16 = vadd.f32 %v4072_v4, %v4071_v9  ;;  %v4074_v57 = vpop.f32.mrb[94].mxu0 }
 0x1d7   : > { %v4139_v22 = vpop.f32.mrb[95].mxu1  ;;  %v4075_v36 = vpop.f32.mrb[95].mxu0 }
 0x1d8   : > { %v4140_v27 = vadd.f32 %v4139_v22, %v4138_v63  ;;  %v5592_v7 = vadd.f32 %v4137_v20, %v5499_v13  ;;  %v5595_v42 = vadd.f32 %v4073_v16, %v5496_v58  ;;  %v4076_v50 = vadd.f32 %v4075_v36, %v4074_v57 }
 0x1da   : > { %v5598_v8 = vadd.f32 %v4140_v27, %v5505_v29  ;;  %v5601_v26 = vadd.f32 %v4076_v50, %v5502_v51 }
 0x1dc   : > { %v4141_v24 = vpop.f32.mrb[96].mxu1  ;;  %v4077_v38 = vpop.f32.mrb[96].mxu0 }
 0x1dd   : > { %v4142_v33 = vpop.f32.mrb[97].mxu1  ;;  %v4078_v45 = vpop.f32.mrb[97].mxu0 }
 0x1de   : > { %v4143_v55 = vadd.f32 %v4142_v33, %v4141_v24  ;;  %v4144_v14 = vpop.f32.mrb[98].mxu1  ;;  %v4079_v30 = vadd.f32 %v4078_v45, %v4077_v38  ;;  %v4080_v1 = vpop.f32.mrb[98].mxu0 }
 0x1df   : > { %v4145_v13 = vpop.f32.mrb[99].mxu1  ;;  %v4081_v47 = vpop.f32.mrb[99].mxu0 }
 0x1e0   : > { %v4146_v21 = vadd.f32 %v4145_v13, %v4144_v14  ;;  %v5604_v58 = vadd.f32 %v4143_v55, %v5511_v46  ;;  %v5607_v29 = vadd.f32 %v4079_v30, %v5508_v48  ;;  %v4082_v44 = vadd.f32 %v4081_v47, %v4080_v1 }
 0x1e2   : > { %v5610_v51 = vadd.f32 %v4146_v21, %v5517_v37  ;;  %v5613_v3 = vadd.f32 %v4082_v44, %v5514_v49 }
 0x1e4   : > { %v4147_v28 = vpop.f32.mrb[100].mxu1  ;;  %v4083_v54 = vpop.f32.mrb[100].mxu0 }
 0x1e5   : > { %v4148_v56 = vpop.f32.mrb[101].mxu1  ;;  %v4084_v5 = vpop.f32.mrb[101].mxu0 }
 0x1e6   : > { %v4149_v41 = vadd.f32 %v4148_v56, %v4147_v28  ;;  %v4150_v9 = vpop.f32.mrb[102].mxu1  ;;  %v4085_v53 = vadd.f32 %v4084_v5, %v4083_v54  ;;  %v4086_v4 = vpop.f32.mrb[102].mxu0 }
 0x1e7   : > { %v4151_v46 = vpop.f32.mrb[103].mxu1  ;;  %v4087_v20 = vpop.f32.mrb[103].mxu0 }
 0x1e8   : > { %v4152_v63 = vadd.f32 %v4151_v46, %v4150_v9  ;;  %v5616_v48 = vadd.f32 %v4149_v41, %v5523_v32  ;;  %v5619_v37 = vadd.f32 %v4085_v53, %v5520_v39  ;;  %v4088_v16 = vadd.f32 %v4087_v20, %v4086_v4 }
 0x1ea   : > { %v5622_v49 = vadd.f32 %v4152_v63, %v5529_v15  ;;  %v5625_v57 = vadd.f32 %v4088_v16, %v5526_v34 }
 0x1ec   : > { %v4153_v22 = vpop.f32.mrb[104].mxu1  ;;  %v4089_v36 = vpop.f32.mrb[104].mxu0 }
 0x1ed   : > { %v4154_v27 = vpop.f32.mrb[105].mxu1  ;;  %v4090_v50 = vpop.f32.mrb[105].mxu0 }
 0x1ee   : > { %v4155_v24 = vadd.f32 %v4154_v27, %v4153_v22  ;;  %v4156_v38 = vpop.f32.mrb[106].mxu1  ;;  %v4091_v33 = vadd.f32 %v4090_v50, %v4089_v36  ;;  %v4092_v45 = vpop.f32.mrb[106].mxu0 }
 0x1ef   : > { %v4157_v32 = vpop.f32.mrb[107].mxu1  ;;  %v4093_v55 = vpop.f32.mrb[107].mxu0 }
 0x1f0   : > { %v4158_v14 = vadd.f32 %v4157_v32, %v4156_v38  ;;  %v5628_v39 = vadd.f32 %v4155_v24, %v5535_v52  ;;  %v5631_v15 = vadd.f32 %v4091_v33, %v5532_v6  ;;  %v4094_v30 = vadd.f32 %v4093_v55, %v4092_v45 }
 0x1f2   : > { %v5634_v34 = vadd.f32 %v4158_v14, %v5541_v62  ;;  %v5637_v1 = vadd.f32 %v4094_v30, %v5538_v40 }
 0x1f4   : > { %v4159_v13 = vpop.f32.mrb[108].mxu1  ;;  %v4095_v47 = vpop.f32.mrb[108].mxu0 }
 0x1f5   : > { %v4160_v21 = vpop.f32.mrb[109].mxu1  ;;  %v4096_v44 = vpop.f32.mrb[109].mxu0 }
 0x1f6   : > { %v4161_v28 = vadd.f32 %v4160_v21, %v4159_v13  ;;  %v4162_v54 = vpop.f32.mrb[110].mxu1  ;;  %v4097_v56 = vadd.f32 %v4096_v44, %v4095_v47  ;;  %v4098_v5 = vpop.f32.mrb[110].mxu0 }
 0x1f7   : > { %v4163_v52 = vpop.f32.mrb[111].mxu1  ;;  %v4099_v41 = vpop.f32.mrb[111].mxu0 }
 0x1f8   : > { %v4164_v9 = vadd.f32 %v4163_v52, %v4162_v54  ;;  %v5640_v6 = vadd.f32 %v4161_v28, %v5547_v60  ;;  %v5643_v62 = vadd.f32 %v4097_v56, %v5544_v10  ;;  %v4100_v53 = vadd.f32 %v4099_v41, %v4098_v5 }
 0x1fa   : > { %v5646_v40 = vadd.f32 %v4164_v9, %v5553_v23  ;;  %v5649_v4 = vadd.f32 %v4100_v53, %v5550_v12 }
 0x1fc   : > { %v4165_v46 = vpop.f32.mrb[112].mxu1  ;;  %v4255_v20 = vpop.f32.mrb[112].mxu0 }
 0x1fd   : > { %v4166_v63 = vpop.f32.mrb[113].mxu1  ;;  %v2849_v16 = vadd.f32 %v4255_v20, %v5568_v0  ;;  %v2840_v22 = vpop.f32.mrb[113].mxu0 }
 0x1fe   : > { %v4167_v36 = vadd.f32 %v4166_v63, %v4165_v46  ;;  %v4168_v60 = vpop.f32.mrb[114].mxu1  ;;  %v2841_v27 = vadd.f32 %v2840_v22, %v5556_v61  ;;  %v4256_v10 = vpop.f32.mrb[114].mxu0 }
 0x1ff   : > { %v4169_v50 = vpop.f32.mrb[115].mxu1  ;;  %v2852_v24 = vadd.f32 %v4256_v10, %v5574_v19  ;;  %v2843_v23 = vpop.f32.mrb[115].mxu0  ;;  %v3007_v14 = vmul.f32 %v2849_v16, %v2849_v16 }
 0x200   : > { %v4170_v38 = vadd.f32 %v4169_v50, %v4168_v60  ;;  %v5655_v33 = vadd.f32 %v4167_v36, %v5559_v59  ;;  %v2844_v12 = vadd.f32 %v2843_v23, %v5562_v31  ;;  %v3005_v19 = vmul.f32 %v2841_v27, %v2841_v27 }
 0x201   : > { %v3663_v61 = vpack.c.bf16 %v2852_v24, %v2849_v16  ;;  %v3008_v56 = vmul.f32 %v2852_v24, %v2852_v24 }
 0x202   : > { %v5666_v0 = vadd.f32 %v4170_v38, %v5565_v35  ;;  %v2967_v45 = vadd.f32 %v2844_v12, %v2841_v27  ;;  %v3006_v32 = vmul.f32 %v2844_v12, %v2844_v12  ;;  %v3658_v55 = vpack.c.bf16 %v2844_v12, %v2841_v27 }
 0x203   : > { %3750 = vst [vmem:[%s5662_s17 + $0x8] sm:$0xff] %v3663_v61  }
 0x204   : > { %v4171_v59 = vpop.f32.mrb[116].mxu1  ;;  %v2968_v30 = vadd.f32 %v2967_v45, %v2849_v16  ;;  %v3037_v13 = vadd.f32 %v3006_v32, %v3005_v19  ;;  %3659 = vst [vmem:[%s5662_s17] sm:$0xff] %v3658_v55   ;;  %v4259_v47 = vpop.f32.mrb[116].mxu0 }
 0x205   : > { %v4172_v21 = vpop.f32.mrb[117].mxu1  ;;  %v2865_v44 = vadd.f32 %v4259_v47, %v5592_v7  ;;  %v2856_v28 = vpop.f32.mrb[117].mxu0 }
 0x206   : > { %v4173_v31 = vadd.f32 %v4172_v21, %v4171_v59  ;;  %v4174_v54 = vpop.f32.mrb[118].mxu1  ;;  %v3038_v35 = vadd.f32 %v3037_v13, %v3007_v14  ;;  %v2857_v5 = vadd.f32 %v2856_v28, %v5580_v25  ;;  %v2969_v52 = vadd.f32 %v2968_v30, %v2852_v24  ;;  %v4260_v41 = vpop.f32.mrb[118].mxu0 }
 0x207   : > { %v4175_v9 = vpop.f32.mrb[119].mxu1  ;;  %v2868_v53 = vadd.f32 %v4260_v41, %v5598_v8  ;;  %v2859_v46 = vpop.f32.mrb[119].mxu0  ;;  %v3011_v23 = vmul.f32 %v2865_v44, %v2865_v44 }
 0x208   : > { %v4176_v20 = vadd.f32 %v4175_v9, %v4174_v54  ;;  %v5674_v63 = vadd.f32 %v4173_v31, %v5571_v18  ;;  %v2970_v7 = vadd.f32 %v2969_v52, %v2857_v5  ;;  %v3009_v16 = vmul.f32 %v2857_v5, %v2857_v5 }
 0x209   : > { %v3039_v22 = vadd.f32 %v3038_v35, %v3008_v56  ;;  %v2860_v36 = vadd.f32 %v2859_v46, %v5586_v2  ;;  %v3673_v60 = vpack.c.bf16 %v2868_v53, %v2865_v44  ;;  %v3012_v55 = vmul.f32 %v2868_v53, %v2868_v53 }
 0x20a   : > { %v5678_v25 = vadd.f32 %v4176_v20, %v5577_v43 }
 0x20b   : > { %v3040_v27 = vadd.f32 %v3039_v22, %v3009_v16  ;;  %v2971_v10 = vadd.f32 %v2970_v7, %v2860_v36  ;;  %v3010_v50 = vmul.f32 %v2860_v36, %v2860_v36  ;;  %v3668_v24 = vpack.c.bf16 %v2860_v36, %v2857_v5  ;;  %3752 = vst [vmem:[%s5662_s17 + $0x18] sm:$0xff] %v3673_v60  }
 0x20c   : > { %v4177_v8 = vpop.f32.mrb[120].mxu1  ;;  %v4263_v12 = vpop.f32.mrb[120].mxu0 }
 0x20d   : > { %v2972_v38 = vadd.f32 %v2971_v10, %v2865_v44  ;;  %v3041_v18 = vadd.f32 %v3040_v27, %v3010_v50  ;;  %3751 = vst [vmem:[%s5662_s17 + $0x10] sm:$0xff] %v3668_v24   ;;  %v4178_v61 = vpop.f32.mrb[121].mxu1  ;;  %v2881_v19 = vadd.f32 %v4263_v12, %v5616_v48  ;;  %v2872_v45 = vpop.f32.mrb[121].mxu0 }
 0x20e   : > { %v4179_v2 = vadd.f32 %v4178_v61, %v4177_v8  ;;  %v4180_v32 = vpop.f32.mrb[122].mxu1  ;;  %v2873_v59 = vadd.f32 %v2872_v45, %v5604_v58  ;;  %v4264_v30 = vpop.f32.mrb[122].mxu0 }
 0x20f   : > { %v3042_v43 = vadd.f32 %v3041_v18, %v3011_v23  ;;  %v2973_v14 = vadd.f32 %v2972_v38, %v2868_v53  ;;  %v4181_v13 = vpop.f32.mrb[123].mxu1  ;;  %v2884_v47 = vadd.f32 %v4264_v30, %v5622_v49  ;;  %v2875_v21 = vpop.f32.mrb[123].mxu0  ;;  %v3015_v53 = vmul.f32 %v2881_v19, %v2881_v19 }
 0x210   : > { %v4182_v44 = vadd.f32 %v4181_v13, %v4180_v32  ;;  %v5686_v28 = vadd.f32 %v4179_v2, %v5583_v17  ;;  %v3013_v31 = vmul.f32 %v2873_v59, %v2873_v59  ;;  %v2876_v56 = vadd.f32 %v2875_v21, %v5610_v51 }
 0x211   : > { %v2974_v48 = vadd.f32 %v2973_v14, %v2873_v59  ;;  %v3043_v54 = vadd.f32 %v3042_v43, %v3012_v55  ;;  %v3683_v35 = vpack.c.bf16 %v2884_v47, %v2881_v19  ;;  %v3016_v60 = vmul.f32 %v2884_v47, %v2884_v47 }
 0x212   : > { %v5690_v58 = vadd.f32 %v4182_v44, %v5589_v11  ;;  %v3014_v41 = vmul.f32 %v2876_v56, %v2876_v56  ;;  %v3678_v9 = vpack.c.bf16 %v2876_v56, %v2873_v59 }
 0x213   : > { %v3044_v5 = vadd.f32 %v3043_v54, %v3013_v31  ;;  %v2975_v52 = vadd.f32 %v2974_v48, %v2876_v56  ;;  %3754 = vst [vmem:[%s5662_s17 + $0x28] sm:$0xff] %v3683_v35  }
 0x214   : > { %v4183_v49 = vpop.f32.mrb[124].mxu1  ;;  %3753 = vst [vmem:[%s5662_s17 + $0x20] sm:$0xff] %v3678_v9   ;;  %v4267_v20 = vpop.f32.mrb[124].mxu0 }
 0x215   : > { %v2976_v46 = vadd.f32 %v2975_v52, %v2881_v19  ;;  %v3045_v17 = vadd.f32 %v3044_v5, %v3014_v41  ;;  %v4184_v7 = vpop.f32.mrb[125].mxu1  ;;  %v2897_v16 = vadd.f32 %v4267_v20, %v5640_v6  ;;  %v2888_v22 = vpop.f32.mrb[125].mxu0 }
 0x216   : > { %v4185_v51 = vadd.f32 %v4184_v7, %v4183_v49  ;;  %v4186_v36 = vpop.f32.mrb[126].mxu1  ;;  %v2889_v27 = vadd.f32 %v2888_v22, %v5628_v39  ;;  %v4268_v50 = vpop.f32.mrb[126].mxu0 }
 0x217   : > { %v3046_v11 = vadd.f32 %v3045_v17, %v3015_v53  ;;  %v2977_v10 = vadd.f32 %v2976_v46, %v2884_v47  ;;  %v4187_v24 = vpop.f32.mrb[127].mxu1  ;;  %v2900_v8 = vadd.f32 %v4268_v50, %v5646_v40  ;;  %v2891_v23 = vpop.f32.mrb[127].mxu0  ;;  %v3019_v40 = vmul.f32 %v2897_v16, %v2897_v16 }
 0x218   : > { %v4188_v38 = vadd.f32 %v4187_v24, %v4186_v36  ;;  %v2768_v18 = vadd.f32 %v4185_v51, %v5595_v42  ;;  %v3017_v6 = vmul.f32 %v2889_v27, %v2889_v27  ;;  %v2892_v19 = vadd.f32 %v2891_v23, %v5634_v34 }
 0x219   : > { %v2978_v12 = vadd.f32 %v2977_v10, %v2889_v27  ;;  %v3047_v61 = vadd.f32 %v3046_v11, %v3016_v60  ;;  %v3693_v45 = vpack.c.bf16 %v2900_v8, %v2897_v16  ;;  %v3020_v48 = vmul.f32 %v2900_v8, %v2900_v8 }
 0x21a   : > { %v2771_v2 = vadd.f32 %v4188_v38, %v5601_v26  ;;  %v3018_v55 = vmul.f32 %v2892_v19, %v2892_v19  ;;  %v3688_v43 = vpack.c.bf16 %v2892_v19, %v2889_v27 }
 0x21b   : > { %v3048_v39 = vadd.f32 %v3047_v61, %v3017_v6  ;;  %v2979_v32 = vadd.f32 %v2978_v12, %v2892_v19  ;;  %3756 = vst [vmem:[%s5662_s17 + $0x38] sm:$0xff] %v3693_v45  }
 0x21c   : > { %v4189_v59 = vpop.f32.mrb[128].mxu1  ;;  %3755 = vst [vmem:[%s5662_s17 + $0x30] sm:$0xff] %v3688_v43   ;;  %v4271_v42 = vpop.f32.mrb[128].mxu0 }
 0x21d   : > { %v2980_v14 = vadd.f32 %v2979_v32, %v2897_v16  ;;  %v3049_v30 = vadd.f32 %v3048_v39, %v3018_v55  ;;  %v4190_v13 = vpop.f32.mrb[129].mxu1  ;;  %v2913_v47 = vadd.f32 %v4271_v42, %v5674_v63  ;;  %v2904_v21 = vpop.f32.mrb[129].mxu0 }
 0x21e   : > { %v4191_v44 = vadd.f32 %v4190_v13, %v4189_v59  ;;  %v4192_v34 = vpop.f32.mrb[130].mxu1  ;;  %v2905_v26 = vadd.f32 %v2904_v21, %v5655_v33  ;;  %v4272_v56 = vpop.f32.mrb[130].mxu0 }
 0x21f   : > { %v3050_v31 = vadd.f32 %v3049_v30, %v3019_v40  ;;  %v2981_v54 = vadd.f32 %v2980_v14, %v2900_v8  ;;  %v4193_v35 = vpop.f32.mrb[131].mxu1  ;;  %v2916_v5 = vadd.f32 %v4272_v56, %v5678_v25  ;;  %v2907_v52 = vpop.f32.mrb[131].mxu0  ;;  %v3023_v25 = vmul.f32 %v2913_v47, %v2913_v47 }
 0x220   : > { %v4194_v41 = vadd.f32 %v4193_v35, %v4192_v34  ;;  %v2776_v9 = vadd.f32 %v4191_v44, %v5607_v29  ;;  %v3021_v63 = vmul.f32 %v2905_v26, %v2905_v26  ;;  %v2908_v46 = vadd.f32 %v2907_v52, %v5666_v0 }
 0x221   : > { %v2982_v49 = vadd.f32 %v2981_v54, %v2905_v26  ;;  %v3051_v53 = vadd.f32 %v3050_v31, %v3020_v48  ;;  %v3703_v17 = vpack.c.bf16 %v2916_v5, %v2913_v47  ;;  %v3024_v0 = vmul.f32 %v2916_v5, %v2916_v5 }
 0x222   : > { %v2779_v20 = vadd.f32 %v4194_v41, %v5613_v3  ;;  %v3022_v16 = vmul.f32 %v2908_v46, %v2908_v46  ;;  %v3698_v22 = vpack.c.bf16 %v2908_v46, %v2905_v26 }
 0x223   : > { %v3052_v33 = vadd.f32 %v3051_v53, %v3021_v63  ;;  %v2983_v7 = vadd.f32 %v2982_v49, %v2908_v46  ;;  %3758 = vst [vmem:[%s5662_s17 + $0x48] sm:$0xff] %v3703_v17  }
 0x224   : > { %v4195_v51 = vpop.f32.mrb[132].mxu1  ;;  %3757 = vst [vmem:[%s5662_s17 + $0x40] sm:$0xff] %v3698_v22   ;;  %v4275_v29 = vpop.f32.mrb[132].mxu0 }
 0x225   : > { %v2984_v36 = vadd.f32 %v2983_v7, %v2913_v47  ;;  %v3053_v60 = vadd.f32 %v3052_v33, %v3022_v16  ;;  %v4196_v11 = vpop.f32.mrb[133].mxu1  ;;  %v2929_v27 = vadd.f32 %v4275_v29, %v2768_v18  ;;  %v2920_v10 = vpop.f32.mrb[133].mxu0 }
 0x226   : > { %v4197_v50 = vadd.f32 %v4196_v11, %v4195_v51  ;;  %v4198_v24 = vpop.f32.mrb[134].mxu1  ;;  %v2921_v3 = vadd.f32 %v2920_v10, %v5686_v28  ;;  %v4276_v38 = vpop.f32.mrb[134].mxu0 }
 0x227   : > { %v3054_v8 = vadd.f32 %v3053_v60, %v3023_v25  ;;  %v2985_v23 = vadd.f32 %v2984_v36, %v2916_v5  ;;  %v4199_v12 = vpop.f32.mrb[135].mxu1  ;;  %v2932_v6 = vadd.f32 %v4276_v38, %v2771_v2  ;;  %v2923_v61 = vpop.f32.mrb[135].mxu0  ;;  %v3027_v2 = vmul.f32 %v2929_v27, %v2929_v27 }
 0x228   : > { %v2784_v19 = vadd.f32 %v4197_v50, %v5619_v37  ;;  %v4200_v45 = vadd.f32 %v4199_v12, %v4198_v24  ;;  %v3025_v32 = vmul.f32 %v2921_v3, %v2921_v3  ;;  %v2924_v55 = vadd.f32 %v2923_v61, %v5690_v58 }
 0x229   : > { %v2986_v39 = vadd.f32 %v2985_v23, %v2921_v3  ;;  %v3055_v18 = vadd.f32 %v3054_v8, %v3024_v0  ;;  %v3713_v43 = vpack.c.bf16 %v2932_v6, %v2929_v27  ;;  %v3028_v58 = vmul.f32 %v2932_v6, %v2932_v6 }
 0x22a   : > { %v2787_v59 = vadd.f32 %v4200_v45, %v5625_v57  ;;  %v3026_v14 = vmul.f32 %v2924_v55, %v2924_v55  ;;  %v3708_v30 = vpack.c.bf16 %v2924_v55, %v2921_v3 }
 0x22b   : > { %v3056_v40 = vadd.f32 %v3055_v18, %v3025_v32  ;;  %v2987_v28 = vadd.f32 %v2986_v39, %v2924_v55  ;;  %3760 = vst [vmem:[%s5662_s17 + $0x58] sm:$0xff] %v3713_v43  }
 0x22c   : > { %v4201_v42 = vpop.f32.mrb[136].mxu1  ;;  %3759 = vst [vmem:[%s5662_s17 + $0x50] sm:$0xff] %v3708_v30   ;;  %v4279_v37 = vpop.f32.mrb[136].mxu0 }
 0x22d   : > { %v2988_v13 = vadd.f32 %v2987_v28, %v2929_v27  ;;  %v3057_v47 = vadd.f32 %v3056_v40, %v3026_v14  ;;  %v4202_v21 = vpop.f32.mrb[137].mxu1  ;;  %v2945_v44 = vadd.f32 %v4279_v37, %v2784_v19  ;;  %v2936_v34 = vpop.f32.mrb[137].mxu0 }
 0x22e   : > { %v4203_v48 = vadd.f32 %v4202_v21, %v4201_v42  ;;  %v4204_v31 = vpop.f32.mrb[138].mxu1  ;;  %v2937_v54 = vadd.f32 %v2936_v34, %v2776_v9  ;;  %v4280_v56 = vpop.f32.mrb[138].mxu0 }
 0x22f   : > { %v3058_v26 = vadd.f32 %v3057_v47, %v3027_v2  ;;  %v2989_v57 = vadd.f32 %v2988_v13, %v2932_v6  ;;  %v4205_v35 = vpop.f32.mrb[139].mxu1  ;;  %v2948_v5 = vadd.f32 %v4280_v56, %v2787_v59  ;;  %v2939_v52 = vpop.f32.mrb[139].mxu0  ;;  %v3031_v33 = vmul.f32 %v2945_v44, %v2945_v44 }
 0x230   : > { %v4206_v41 = vadd.f32 %v4205_v35, %v4204_v31  ;;  %v2792_v49 = vadd.f32 %v4203_v48, %v5631_v15  ;;  %v3029_v53 = vmul.f32 %v2937_v54, %v2937_v54  ;;  %v2940_v17 = vadd.f32 %v2939_v52, %v2779_v20 }
 0x231   : > { %v2990_v63 = vadd.f32 %v2989_v57, %v2937_v54  ;;  %v3059_v46 = vadd.f32 %v3058_v26, %v3028_v58  ;;  %v3723_v7 = vpack.c.bf16 %v2948_v5, %v2945_v44  ;;  %v3032_v60 = vmul.f32 %v2948_v5, %v2948_v5 }
 0x232   : > { %v2795_v16 = vadd.f32 %v4206_v41, %v5637_v1  ;;  %v3030_v51 = vmul.f32 %v2940_v17, %v2940_v17  ;;  %v3718_v25 = vpack.c.bf16 %v2940_v17, %v2937_v54 }
 0x233   : > { %v3060_v22 = vadd.f32 %v3059_v46, %v3029_v53  ;;  %v2991_v9 = vadd.f32 %v2990_v63, %v2940_v17  ;;  %3762 = vst [vmem:[%s5662_s17 + $0x68] sm:$0xff] %v3723_v7  }
 0x234   : > { %v4207_v36 = vpop.f32.mrb[140].mxu1  ;;  %3761 = vst [vmem:[%s5662_s17 + $0x60] sm:$0xff] %v3718_v25   ;;  %v4283_v15 = vpop.f32.mrb[140].mxu0 }
 0x235   : > { %v2992_v29 = vadd.f32 %v2991_v9, %v2945_v44  ;;  %v3061_v11 = vadd.f32 %v3060_v22, %v3030_v51  ;;  %v4208_v27 = vpop.f32.mrb[141].mxu1  ;;  %v2952_v10 = vpop.f32.mrb[141].mxu0 }
 0x236   : > { %v4209_v50 = vadd.f32 %v4208_v27, %v4207_v36  ;;  %v4210_v24 = vpop.f32.mrb[142].mxu1  ;;  %v2953_v0 = vadd.f32 %v2952_v10, %v2792_v49  ;;  %v4284_v3 = vpop.f32.mrb[142].mxu0 }
 0x237   : > { %v3062_v20 = vadd.f32 %v3061_v11, %v3031_v33  ;;  %v2993_v8 = vadd.f32 %v2992_v29, %v2948_v5  ;;  %v4211_v1 = vpop.f32.mrb[143].mxu1  ;;  %v2955_v23 = vpop.f32.mrb[143].mxu0 }
 0x238   : > { %v2800_v38 = vadd.f32 %v4209_v50, %v5643_v62  ;;  %v4212_v12 = vadd.f32 %v4211_v1, %v4210_v24  ;;  %v3033_v61 = vmul.f32 %v2953_v0, %v2953_v0  ;;  %v2956_v45 = vadd.f32 %v2955_v23, %v2795_v16 }
 0x239   : > { %v2994_v6 = vadd.f32 %v2993_v8, %v2953_v0  ;;  %v3063_v19 = vadd.f32 %v3062_v20, %v3032_v60 }
 0x23a   : > { %v2961_v39 = vadd.f32 %v4283_v15, %v2800_v38  ;;  %v2803_v32 = vadd.f32 %v4212_v12, %v5649_v4  ;;  %v3034_v43 = vmul.f32 %v2956_v45, %v2956_v45  ;;  %v3728_v59 = vpack.c.bf16 %v2956_v45, %v2953_v0 }
 0x23b   : > { %v3064_v18 = vadd.f32 %v3063_v19, %v3033_v61  ;;  %v2995_v55 = vadd.f32 %v2994_v6, %v2956_v45 }
 0x23c   : > { %v3035_v40 = vmul.f32 %v2961_v39, %v2961_v39  ;;  %v2964_v28 = vadd.f32 %v4284_v3, %v2803_v32  ;;  %3763 = vst [vmem:[%s5662_s17 + $0x70] sm:$0xff] %v3728_v59  }
 0x23d   : > { %v3065_v14 = vadd.f32 %v3064_v18, %v3034_v43  ;;  %v2996_v30 = vadd.f32 %v2995_v55, %v2961_v39 }
 0x23e   : > { %v3036_v62 = vmul.f32 %v2964_v28, %v2964_v28  ;;  %v3733_v42 = vpack.c.bf16 %v2964_v28, %v2961_v39 }
 0x23f   : > { %v3066_v2 = vadd.f32 %v3065_v14, %v3035_v40  ;;  %v2997_v13 = vadd.f32 %v2996_v30, %v2964_v28 }
 0x240   : > { %3764 = vst [vmem:[%s5662_s17 + $0x78] sm:$0xff] %v3733_v42  }
 0x241   : > { %v2998_v47 = vrot.slane %v2997_v13, 4  ;;  %v3067_v37 = vadd.f32 %v3066_v2, %v3036_v62 }
 0x243   : > { %v2999_v21 = vadd.f32 %v2998_v47, %v2997_v13  ;;  %v3068_v4 = vrot.slane %v3067_v37, 4 }
 0x245   : > { %v3000_v44 = vrot.slane %v2999_v21, 2  ;;  %v3069_v34 = vadd.f32 %v3068_v4, %v3067_v37 }
 0x247   : > { %v3001_v48 = vadd.f32 %v3000_v44, %v2999_v21  ;;  %v3070_v31 = vrot.slane %v3069_v34, 2 }
 0x249   : > { %v3002_v58 = vrot.slane %v3001_v48, 1  ;;  %v3071_v26 = vadd.f32 %v3070_v31, %v3069_v34 }
 0x24b   : > { %v3003_v54 = vadd.f32 %v3002_v58, %v3001_v48  ;;  %v3072_v57 = vrot.slane %v3071_v26, 1 }
 0x24d   : > { %3004 = vst [vmem:[%s292_s19] sm:$0x1] %v3003_v54  ;;  %v3073_v56 = vadd.f32 %v3072_v57, %v3071_v26 }
 0x24f   : > { %3074 = vst [vmem:[%s295_s28] sm:$0x1] %v3073_v56 }
 0x250 PF: > { %s18_s24 = sadd.s32 1, %s4437_s24  }
 0x251   : > { %p15_p4 = scmp.ge.s32.totalorder %s18_s24, 4  }
 0x253   :  { %17 = sbr.rel (!%p15_p4) target bundleno = 1 (0x1), region = 95 }

</bundles_post_ra>
